<compile_context>
chip_gen: v5e
topology: v5e:2x2
jax: 0.10.0
libtpu: 0.0.40
codegen_flags: <defaults>
</compile_context>

<pallas_src>
import functools

import jax
import jax.numpy as jnp
from jax.experimental import pallas as pl
from jax.experimental.pallas import tpu as pltpu

LANE = 128  # every channel dim is zero-padded to a full lane width


# ----------------------------------------------------------------------------- kernel

def gcn_fused_kernel(lap2_ref, x_ref, pool_ref, ysep_ref,
                     wblk_ref, bblk_ref, wmix_ref, bmix_ref,
                     wemb_ref, bemb_ref,
                     w0a_ref, w0b_ref, b0_ref, w1_ref, b1_ref, w2_ref, b2_ref,
                     o_ref, *, K, K_mix, depth, h_pad):
    """One grid step = one tile of G block-diagonally packed graphs."""
    f32, bf16 = jnp.float32, jnp.bfloat16
    lap2 = lap2_ref[...]                                   # [M, M] bf16, equals 2 * L_hat

    def cheb_project(h, w_of_k, bias, k_order):
        # sum_k T_k(L_hat, h) @ W_k + bias, accumulated per order (no basis concat).
        hb = h.astype(bf16)
        acc = jnp.dot(hb, w_of_k(0), preferred_element_type=f32) + bias
        if k_order > 1:
            tkm2 = h                                                           # T_0 (f32)
            tkm1 = 0.5 * jnp.dot(lap2, hb, preferred_element_type=f32)         # T_1 = L_hat @ h
            tkm1_b = tkm1.astype(bf16)
            acc = acc + jnp.dot(tkm1_b, w_of_k(1), preferred_element_type=f32)
            for k in range(2, k_order):
                tk = jnp.dot(lap2, tkm1_b, preferred_element_type=f32) - tkm2  # 2 L T_{k-1} - T_{k-2}
                tk_b = tk.astype(bf16)
                acc = acc + jnp.dot(tk_b, w_of_k(k), preferred_element_type=f32)
                tkm2, tkm1, tkm1_b = tkm1, tk, tk_b
        return acc

    # --- GraphResnet: depth x [ relu(ChebConv_K(h)) + ChebConv_1(h) ]  (dropout p=0) ---
    h = x_ref[...]                                          # [M, 128] f32
    for i in range(depth):
        z = cheb_project(h, lambda k, _b=i * K: wblk_ref[_b + k], bblk_ref[i], K)  # [M, 2*h_pad]
        h = jnp.maximum(z[:, :h_pad], 0.0) + z[:, h_pad:]   # main (relu'd) + K=1 skip

    # --- conv_mix (ChebConv K_mix) ---
    h = cheb_project(h, lambda k: wmix_ref[k], bmix_ref[...], K_mix)            # [M, 128]

    # --- head, batched over the G graphs of this tile ---
    pooled = jnp.dot(pool_ref[...], h, preferred_element_type=f32)              # [Gp, 128]
    emb = jnp.dot(ysep_ref[...].astype(bf16), wemb_ref[...],
                  preferred_element_type=f32) + bemb_ref[...]                    # [Gp, 128]
    # relu(concat(pooled, emb)) @ W0 == relu(pooled) @ W0a + relu(emb) @ W0b  (no concat)
    z = (jnp.dot(jnp.maximum(pooled, 0.0).astype(bf16), w0a_ref[...],
                 preferred_element_type=f32)
         + jnp.dot(jnp.maximum(emb, 0.0).astype(bf16), w0b_ref[...],
                   preferred_element_type=f32)
         + b0_ref[...])
    z = jnp.dot(jnp.maximum(z, 0.0).astype(bf16), w1_ref[...],
                preferred_element_type=f32) + b1_ref[...]
    z = jnp.dot(jnp.maximum(z, 0.0).astype(bf16), w2_ref[...],
                preferred_element_type=f32) + b2_ref[...]
    o_ref[...] = jax.nn.sigmoid(z)                                               # [Gp, 128]


# ----------------------------------------------------------------------------- wrapper

def gcn_model_forward(packed, lap2_p, x_p, pool_p, ysep_p, *, K=4, K_mix=2, depth=3,
                      graphs_per_tile=4, out_dim=1):
    """Full fused forward. Inputs are already block-diagonally packed (see pack_inputs)."""
    T, MP, _ = lap2_p.shape
    GP = pool_p.shape[1]
    FP = x_p.shape[2]
    h_pad = packed["b_blocks"].shape[2] // 2

    def whole(arr):  # full-array block, constant index -> DMA'd once, stays VMEM-resident
        nd = arr.ndim
        return pl.BlockSpec(arr.shape, lambda t, _nd=nd: (0,) * _nd)

    in_specs = [
        pl.BlockSpec((None, MP, MP), lambda t: (t, 0, 0)),   # 2*L_hat block-diag (bf16)
        pl.BlockSpec((None, MP, FP), lambda t: (t, 0, 0)),   # node features
        pl.BlockSpec((None, GP, MP), lambda t: (t, 0, 0)),   # per-graph mean-pool rows
        pl.BlockSpec((None, GP, FP), lambda t: (t, 0, 0)),   # y[:, :-1] per graph
        whole(packed["w_blocks"]), whole(packed["b_blocks"]),
        whole(packed["w_mix"]), whole(packed["b_mix"]),
        whole(packed["w_emb"]), whole(packed["b_emb"]),
        whole(packed["w0a"]), whole(packed["w0b"]), whole(packed["b0"]),
        whole(packed["w1"]), whole(packed["b1"]),
        whole(packed["w2"]), whole(packed["b2"]),
    ]

    out = pl.pallas_call(
        functools.partial(gcn_fused_kernel, K=K, K_mix=K_mix, depth=depth, h_pad=h_pad),
        grid=(T,),
        in_specs=in_specs,
        out_specs=pl.BlockSpec((None, GP, LANE), lambda t: (t, 0, 0)),
        out_shape=jax.ShapeDtypeStruct((T, GP, LANE), jnp.float32),
        compiler_params=pltpu.CompilerParams(
            dimension_semantics=("parallel",),       # tiles are independent -> 2nd TC on v7x
            vmem_limit_bytes=32 * 1024 * 1024,
        ),
    )(lap2_p, x_p, pool_p, ysep_p,
      packed["w_blocks"], packed["b_blocks"],
      packed["w_mix"], packed["b_mix"],
      packed["w_emb"], packed["b_emb"],
      packed["w0a"], packed["w0b"], packed["b0"],
      packed["w1"], packed["b1"],
      packed["w2"], packed["b2"])
    G = graphs_per_tile
    return out[:, :G, :out_dim].reshape(T * G, out_dim)    # strip padding -> [B, out_dim]


# ----------------------------------------------------------------------------- params

def init_params(key, node_feat_dim, graph_enc_dim=64, nh=42, K=4, K_mix=2,
                inp_embed_dim=32, ff_layers=(64, 32), out_dim=1):
    """PyTorch-equivalent (unpadded, f32) parameters."""
    def nrm(k, shape, scale=0.1):
        return scale * jax.random.normal(k, shape, dtype=jnp.float32)

    keys = iter(jax.random.split(key, 64))
    params = {"blocks": []}
    cin = node_feat_dim
    for _ in range(3):
        params["blocks"].append({
            "wk": nrm(next(keys), (K, cin, nh)),        # Kipfblock ChebConv(K=4)
            "bk": nrm(next(keys), (nh,)),
            "ws": nrm(next(keys), (1, cin, nh)),        # skip ChebConv(K=1)
            "bs": nrm(next(keys), (nh,)),
        })
        cin = nh
    params["mix_w"] = nrm(next(keys), (K_mix, nh, graph_enc_dim))
    params["mix_b"] = nrm(next(keys), (graph_enc_dim,))
    params["embed_w"] = nrm(next(keys), (node_feat_dim - 1, inp_embed_dim))
    params["embed_b"] = nrm(next(keys), (inp_embed_dim,))
    sizes = [graph_enc_dim + inp_embed_dim] + list(ff_layers) + [out_dim]
    for i in range(3):
        params[f"ff{i}_w"] = nrm(next(keys), (sizes[i], sizes[i + 1]))
        params[f"ff{i}_b"] = nrm(next(keys), (sizes[i + 1],))
    return params


def pack_params(params, node_feat_dim, nh=42, K=4, K_mix=2, graph_enc_dim=64, depth=3):
    """Zero-pad channel dims to 128 lanes; store one [128, 2*128] weight slab per
    (block, Chebyshev order) with the K=1 skip fused into order-0's upper output half.
    Weights are bf16 (MXU operands), biases stay f32 (added to f32 accumulators)."""
    assert node_feat_dim <= LANE and nh <= LANE and graph_enc_dim <= LANE
    HP = LANE

    def pad2(a, r, c):
        return (jnp.zeros((r, c), jnp.float32)
                .at[:a.shape[0], :a.shape[1]].set(a).astype(jnp.bfloat16))

    def pad_row(v, c):
        return jnp.zeros((1, c), jnp.float32).at[0, :v.shape[0]].set(v)

    w_blocks, b_blocks = [], []
    for blk in params["blocks"]:
        wk, ws = blk["wk"], blk["ws"][0]
        cin = wk.shape[1]
        for k in range(K):
            W = jnp.zeros((LANE, 2 * HP), jnp.float32)
            W = W.at[:cin, :nh].set(wk[k])                  # main path, order k
            if k == 0:
                W = W.at[:cin, HP:HP + nh].set(ws)          # skip (uses T0 = x only)
            w_blocks.append(W)
        b = jnp.zeros((1, 2 * HP), jnp.float32)
        b = b.at[0, :nh].set(blk["bk"]).at[0, HP:HP + nh].set(blk["bs"])
        b_blocks.append(b)

    w_mix = []
    for k in range(K_mix):
        W = jnp.zeros((HP, LANE), jnp.float32)
        W = W.at[:nh, :graph_enc_dim].set(params["mix_w"][k])
        w_mix.append(W)

    return {
        "w_blocks": jnp.stack(w_blocks).astype(jnp.bfloat16),   # [depth*K, 128, 256] bf16
        "b_blocks": jnp.stack(b_blocks),                        # [depth, 1, 256] f32
        "w_mix": jnp.stack(w_mix).astype(jnp.bfloat16),         # [K_mix, 128, 128] bf16
        "b_mix": pad_row(params["mix_b"], LANE),
        "w_emb": pad2(params["embed_w"], LANE, LANE),
        "b_emb": pad_row(params["embed_b"], LANE),
        "w0a": pad2(params["ff0_w"][:graph_enc_dim], LANE, LANE),   # pooled slice of ff0
        "w0b": pad2(params["ff0_w"][graph_enc_dim:], LANE, LANE),   # embed slice of ff0
        "b0": pad_row(params["ff0_b"], LANE),
        "w1": pad2(params["ff1_w"], LANE, LANE),
        "b1": pad_row(params["ff1_b"], LANE),
        "w2": pad2(params["ff2_w"], LANE, LANE),
        "b2": pad_row(params["ff2_b"], LANE),
    }


# ----------------------------------------------------------------------------- data

def build_graphs(batch_size, n):
    """Deterministic per-graph ring + one chord; returns per-graph scaled Laplacians
    L_hat = -D^-1/2 A D^-1/2  (sym normalization, lambda_max = 2, PyG default)."""
    laps = []
    for g in range(batch_size):
        adj = jnp.zeros((n, n), jnp.float32)
        for i in range(n):
            j = (i + 1) % n
            adj = adj.at[i, j].set(1.0).at[j, i].set(1.0)
        a, b = g % n, (g + n // 2) % n
        adj = adj.at[a, b].set(1.0).at[b, a].set(1.0)
        deg = adj.sum(axis=1)
        dinv = jnp.where(deg > 0, 1.0 / jnp.sqrt(deg), 0.0)
        laps.append(-(dinv[:, None] * adj * dinv[None, :]))
    return jnp.stack(laps)                                      # [B, n, n]


def pack_inputs(x, y, lap_b, batch_size, n, node_feat_dim, graphs_per_tile):
    """Pack G graphs per grid tile: block-diagonal (pre-doubled) Laplacian, stacked node
    features, strictly per-graph mean-pool rows, and per-graph y[:, :-1] rows."""
    G = graphs_per_tile
    assert batch_size % G == 0, "batch must be divisible by graphs_per_tile"
    T = batch_size // G
    M = G * n
    MP = ((M + 7) // 8) * 8
    GP = ((G + 7) // 8) * 8
    FP = LANE

    x_t = x.reshape(T, M, node_feat_dim)
    x_p = jnp.zeros((T, MP, FP), jnp.float32).at[:, :M, :node_feat_dim].set(x_t)

    lap_t = (2.0 * lap_b).reshape(T, G, n, n)        # fold Chebyshev 2x at pack time
    lap2_p = jnp.zeros((T, MP, MP), jnp.float32)
    pool_p = jnp.zeros((T, GP, MP), jnp.float32)
    for g in range(G):                               # block-diagonal placement
        lap2_p = lap2_p.at[:, g * n:(g + 1) * n, g * n:(g + 1) * n].set(lap_t[:, g])
        pool_p = pool_p.at[:, g, g * n:(g + 1) * n].set(1.0 / n)   # per-graph mean only

    ysep_p = jnp.zeros((T, GP, FP), jnp.float32)
    ysep_p = ysep_p.at[:, :G, :node_feat_dim - 1].set(
        y[:, :-1].reshape(T, G, node_feat_dim - 1))               # data.y[:, :-1]
    return lap2_p.astype(jnp.bfloat16), x_p, pool_p, ysep_p


# ----------------------------------------------------------------------------- reference

def reference_forward(params, lap_b, x_b, y):
    """Pure-JAX f32 reference of GCNModel.forward (eval mode, dropout_prob=0)."""
    def cheb(lap, x, w, bias):
        Kk = w.shape[0]
        out = x @ w[0]
        if Kk > 1:
            t0, t1 = x, lap @ x
            out = out + t1 @ w[1]
            for k in range(2, Kk):
                t2 = 2.0 * (lap @ t1) - t0
                out = out + t2 @ w[k]
                t0, t1 = t1, t2
        return out + bias

    def graph_net(lap, h):
        for blk in params["blocks"]:
            main = jnp.maximum(cheb(lap, h, blk["wk"], blk["bk"]), 0.0)
            skip = cheb(lap, h, blk["ws"], blk["bs"])
            h = main + skip
        h = cheb(lap, h, params["mix_w"], params["mix_b"])
        return h.mean(axis=0)

    pooled = jax.vmap(graph_net)(lap_b, x_b)                    # [B, graph_enc_dim]
    emb = y[:, :-1] @ params["embed_w"] + params["embed_b"]
    z = jnp.concatenate([pooled, emb], axis=1)
    for i in range(3):
        z = jnp.maximum(z, 0.0)
        z = z @ params[f"ff{i}_w"] + params[f"ff{i}_b"]
    return jax.nn.sigmoid(z)


# ----------------------------------------------------------------------------- main

if __name__ == "__main__":
    B = 8                      # graphs in batch
    nodes_per_graph = 16
    node_feat_dim = 8
    graphs_per_tile = 4        # -> M = 64 node rows/tile, 2 tiles (>= 2 for v7x megacore)
                               # production: choose so M ~= 128 (v5e) / 256 (v6e, v7x)
    N = B * nodes_per_graph

    key = jax.random.PRNGKey(0)
    k_par, k_x, k_y = jax.random.split(key, 3)

    params = init_params(k_par, node_feat_dim)
    packed = pack_params(params, node_feat_dim)

    x = jax.random.normal(k_x, (N, node_feat_dim), dtype=jnp.float32)   # data.x
    y = jax.random.normal(k_y, (B, node_feat_dim), dtype=jnp.float32)   # data.y
    lap_b = build_graphs(B, nodes_per_graph)
    lap2_p, x_p, pool_p, ysep_p = pack_inputs(x, y, lap_b, B, nodes_per_graph,
                                              node_feat_dim, graphs_per_tile)

    fwd = jax.jit(functools.partial(gcn_model_forward, K=4, K_mix=2, depth=3,
                                    graphs_per_tile=graphs_per_tile))
    out = fwd(packed, lap2_p, x_p, pool_p, ysep_p)
    out = jax.block_until_ready(out)

    with jax.default_matmul_precision("highest"):
        ref = reference_forward(params, lap_b,
                                x.reshape(B, nodes_per_graph, node_feat_dim), y)

    assert out.shape == (B, 1)
    assert bool(jnp.all((out >= 0.0) & (out <= 1.0)))
    assert bool(jnp.allclose(out, ref, atol=2e-2, rtol=2e-2)), (out, ref)
    print("KERNEL_OK")
</pallas_src>

<mosaic_0001>
module attributes {stable_mosaic.version = 11 : i64} {
  func.func @gcn_fused_kernel(%arg0: i32, %arg1: memref<1x64x64xbf16, #tpu.memory_space<vmem>>, %arg2: memref<1x64x128xf32, #tpu.memory_space<vmem>>, %arg3: memref<1x8x64xf32, #tpu.memory_space<vmem>>, %arg4: memref<1x8x128xf32, #tpu.memory_space<vmem>>, %arg5: memref<12x128x256xbf16, #tpu.memory_space<vmem>>, %arg6: memref<3x1x256xf32, #tpu.memory_space<vmem>>, %arg7: memref<2x128x128xbf16, #tpu.memory_space<vmem>>, %arg8: memref<1x128xf32, #tpu.memory_space<vmem>>, %arg9: memref<128x128xbf16, #tpu.memory_space<vmem>>, %arg10: memref<1x128xf32, #tpu.memory_space<vmem>>, %arg11: memref<128x128xbf16, #tpu.memory_space<vmem>>, %arg12: memref<128x128xbf16, #tpu.memory_space<vmem>>, %arg13: memref<1x128xf32, #tpu.memory_space<vmem>>, %arg14: memref<128x128xbf16, #tpu.memory_space<vmem>>, %arg15: memref<1x128xf32, #tpu.memory_space<vmem>>, %arg16: memref<128x128xbf16, #tpu.memory_space<vmem>>, %arg17: memref<1x128xf32, #tpu.memory_space<vmem>>, %arg18: memref<1x8x128xf32, #tpu.memory_space<vmem>>) attributes {dimension_semantics = [#tpu.dimension_semantics<parallel>], iteration_bounds = array<i64: 2>, scalar_prefetch = 0 : i64, scratch_operands = 0 : i64, tpu.core_type = #tpu.core_type<tc>, window_params = [{transform_indices = @transform_0, window_bounds = array<i64: 1, 64, 64>}, {transform_indices = @transform_1, window_bounds = array<i64: 1, 64, 128>}, {transform_indices = @transform_2, window_bounds = array<i64: 1, 8, 64>}, {transform_indices = @transform_3, window_bounds = array<i64: 1, 8, 128>}, {pipeline_mode = #tpu.pipeline_mode<synchronous>, transform_indices = @transform_4, window_bounds = array<i64: 12, 128, 256>}, {pipeline_mode = #tpu.pipeline_mode<synchronous>, transform_indices = @transform_5, window_bounds = array<i64: 3, 1, 256>}, {pipeline_mode = #tpu.pipeline_mode<synchronous>, transform_indices = @transform_6, window_bounds = array<i64: 2, 128, 128>}, {pipeline_mode = #tpu.pipeline_mode<synchronous>, transform_indices = @transform_7, window_bounds = array<i64: 1, 128>}, {pipeline_mode = #tpu.pipeline_mode<synchronous>, transform_indices = @transform_8, window_bounds = array<i64: 128, 128>}, {pipeline_mode = #tpu.pipeline_mode<synchronous>, transform_indices = @transform_9, window_bounds = array<i64: 1, 128>}, {pipeline_mode = #tpu.pipeline_mode<synchronous>, transform_indices = @transform_10, window_bounds = array<i64: 128, 128>}, {pipeline_mode = #tpu.pipeline_mode<synchronous>, transform_indices = @transform_11, window_bounds = array<i64: 128, 128>}, {pipeline_mode = #tpu.pipeline_mode<synchronous>, transform_indices = @transform_12, window_bounds = array<i64: 1, 128>}, {pipeline_mode = #tpu.pipeline_mode<synchronous>, transform_indices = @transform_13, window_bounds = array<i64: 128, 128>}, {pipeline_mode = #tpu.pipeline_mode<synchronous>, transform_indices = @transform_14, window_bounds = array<i64: 1, 128>}, {pipeline_mode = #tpu.pipeline_mode<synchronous>, transform_indices = @transform_15, window_bounds = array<i64: 128, 128>}, {pipeline_mode = #tpu.pipeline_mode<synchronous>, transform_indices = @transform_16, window_bounds = array<i64: 1, 128>}, {transform_indices = @transform_17, window_bounds = array<i64: 1, 8, 128>}]} {
    %c0 = arith.constant 0 : index
    %c0_0 = arith.constant 0 : index
    %c0_1 = arith.constant 0 : index
    %0 = vector.load %arg1[%c0, %c0_0, %c0_1] : memref<1x64x64xbf16, #tpu.memory_space<vmem>>, vector<1x64x64xbf16>
    %1 = vector.shape_cast %0 : vector<1x64x64xbf16> to vector<64x64xbf16>
    %c0_2 = arith.constant 0 : index
    %c0_3 = arith.constant 0 : index
    %c0_4 = arith.constant 0 : index
    %2 = vector.load %arg2[%c0_2, %c0_3, %c0_4] : memref<1x64x128xf32, #tpu.memory_space<vmem>>, vector<1x64x128xf32>
    %3 = vector.shape_cast %2 : vector<1x64x128xf32> to vector<64x128xf32>
    %c0_5 = arith.constant 0 : index
    %c0_6 = arith.constant 0 : index
    %c0_7 = arith.constant 0 : index
    %4 = vector.load %arg6[%c0_5, %c0_6, %c0_7] : memref<3x1x256xf32, #tpu.memory_space<vmem>>, vector<1x1x256xf32>
    %5 = vector.shape_cast %4 : vector<1x1x256xf32> to vector<1x256xf32>
    %6 = arith.truncf %3 : vector<64x128xf32> to vector<64x128xbf16>
    %c0_8 = arith.constant 0 : index
    %c0_9 = arith.constant 0 : index
    %c0_10 = arith.constant 0 : index
    %7 = vector.load %arg5[%c0_8, %c0_9, %c0_10] : memref<12x128x256xbf16, #tpu.memory_space<vmem>>, vector<1x128x256xbf16>
    %8 = vector.shape_cast %7 : vector<1x128x256xbf16> to vector<128x256xbf16>
    %cst = arith.constant dense<0.000000e+00> : vector<64x256xf32>
    %9 = tpu.matmul %6, %8, %cst {dimension_numbers = #tpu.dot_dimension_numbers<[1], [0], [0], [1], [0, 0, 1, 1], [], []>} : vector<64x128xbf16>, vector<128x256xbf16>, vector<64x256xf32> -> vector<64x256xf32>
    %10 = vector.broadcast %5 : vector<1x256xf32> to vector<64x256xf32>
    %11 = arith.addf %9, %10 : vector<64x256xf32>
    %cst_11 = arith.constant dense<0.000000e+00> : vector<64x128xf32>
    %12 = tpu.matmul %1, %6, %cst_11 {dimension_numbers = #tpu.dot_dimension_numbers<[1], [0], [0], [1], [0, 0, 1, 1], [], []>} : vector<64x64xbf16>, vector<64x128xbf16>, vector<64x128xf32> -> vector<64x128xf32>
    %cst_12 = arith.constant 5.000000e-01 : f32
    %13 = vector.broadcast %cst_12 : f32 to vector<64x128xf32>
    %14 = arith.mulf %13, %12 : vector<64x128xf32>
    %15 = arith.truncf %14 : vector<64x128xf32> to vector<64x128xbf16>
    %c1 = arith.constant 1 : index
    %c0_13 = arith.constant 0 : index
    %c0_14 = arith.constant 0 : index
    %16 = vector.load %arg5[%c1, %c0_13, %c0_14] : memref<12x128x256xbf16, #tpu.memory_space<vmem>>, vector<1x128x256xbf16>
    %17 = vector.shape_cast %16 : vector<1x128x256xbf16> to vector<128x256xbf16>
    %cst_15 = arith.constant dense<0.000000e+00> : vector<64x256xf32>
    %18 = tpu.matmul %15, %17, %cst_15 {dimension_numbers = #tpu.dot_dimension_numbers<[1], [0], [0], [1], [0, 0, 1, 1], [], []>} : vector<64x128xbf16>, vector<128x256xbf16>, vector<64x256xf32> -> vector<64x256xf32>
    %19 = arith.addf %11, %18 : vector<64x256xf32>
    %cst_16 = arith.constant dense<0.000000e+00> : vector<64x128xf32>
    %20 = tpu.matmul %1, %15, %cst_16 {dimension_numbers = #tpu.dot_dimension_numbers<[1], [0], [0], [1], [0, 0, 1, 1], [], []>} : vector<64x64xbf16>, vector<64x128xbf16>, vector<64x128xf32> -> vector<64x128xf32>
    %21 = arith.subf %20, %3 : vector<64x128xf32>
    %22 = arith.truncf %21 : vector<64x128xf32> to vector<64x128xbf16>
    %c2 = arith.constant 2 : index
    %c0_17 = arith.constant 0 : index
    %c0_18 = arith.constant 0 : index
    %23 = vector.load %arg5[%c2, %c0_17, %c0_18] : memref<12x128x256xbf16, #tpu.memory_space<vmem>>, vector<1x128x256xbf16>
    %24 = vector.shape_cast %23 : vector<1x128x256xbf16> to vector<128x256xbf16>
    %cst_19 = arith.constant dense<0.000000e+00> : vector<64x256xf32>
    %25 = tpu.matmul %22, %24, %cst_19 {dimension_numbers = #tpu.dot_dimension_numbers<[1], [0], [0], [1], [0, 0, 1, 1], [], []>} : vector<64x128xbf16>, vector<128x256xbf16>, vector<64x256xf32> -> vector<64x256xf32>
    %26 = arith.addf %19, %25 : vector<64x256xf32>
    %cst_20 = arith.constant dense<0.000000e+00> : vector<64x128xf32>
    %27 = tpu.matmul %1, %22, %cst_20 {dimension_numbers = #tpu.dot_dimension_numbers<[1], [0], [0], [1], [0, 0, 1, 1], [], []>} : vector<64x64xbf16>, vector<64x128xbf16>, vector<64x128xf32> -> vector<64x128xf32>
    %28 = arith.subf %27, %14 : vector<64x128xf32>
    %29 = arith.truncf %28 : vector<64x128xf32> to vector<64x128xbf16>
    %c3 = arith.constant 3 : index
    %c0_21 = arith.constant 0 : index
    %c0_22 = arith.constant 0 : index
    %30 = vector.load %arg5[%c3, %c0_21, %c0_22] : memref<12x128x256xbf16, #tpu.memory_space<vmem>>, vector<1x128x256xbf16>
    %31 = vector.shape_cast %30 : vector<1x128x256xbf16> to vector<128x256xbf16>
    %cst_23 = arith.constant dense<0.000000e+00> : vector<64x256xf32>
    %32 = tpu.matmul %29, %31, %cst_23 {dimension_numbers = #tpu.dot_dimension_numbers<[1], [0], [0], [1], [0, 0, 1, 1], [], []>} : vector<64x128xbf16>, vector<128x256xbf16>, vector<64x256xf32> -> vector<64x256xf32>
    %33 = arith.addf %26, %32 : vector<64x256xf32>
    %34 = vector.extract_strided_slice %33 {offsets = [0, 0], sizes = [64, 128], strides = [1, 1]} : vector<64x256xf32> to vector<64x128xf32>
    %cst_24 = arith.constant 0.000000e+00 : f32
    %35 = vector.broadcast %cst_24 : f32 to vector<64x128xf32>
    %36 = arith.maximumf %34, %35 : vector<64x128xf32>
    %37 = vector.extract_strided_slice %33 {offsets = [0, 128], sizes = [64, 128], strides = [1, 1]} : vector<64x256xf32> to vector<64x128xf32>
    %38 = arith.addf %36, %37 : vector<64x128xf32>
    %c1_25 = arith.constant 1 : index
    %c0_26 = arith.constant 0 : index
    %c0_27 = arith.constant 0 : index
    %39 = vector.load %arg6[%c1_25, %c0_26, %c0_27] : memref<3x1x256xf32, #tpu.memory_space<vmem>>, vector<1x1x256xf32>
    %40 = vector.shape_cast %39 : vector<1x1x256xf32> to vector<1x256xf32>
    %41 = arith.truncf %38 : vector<64x128xf32> to vector<64x128xbf16>
    %c4 = arith.constant 4 : index
    %c0_28 = arith.constant 0 : index
    %c0_29 = arith.constant 0 : index
    %42 = vector.load %arg5[%c4, %c0_28, %c0_29] : memref<12x128x256xbf16, #tpu.memory_space<vmem>>, vector<1x128x256xbf16>
    %43 = vector.shape_cast %42 : vector<1x128x256xbf16> to vector<128x256xbf16>
    %cst_30 = arith.constant dense<0.000000e+00> : vector<64x256xf32>
    %44 = tpu.matmul %41, %43, %cst_30 {dimension_numbers = #tpu.dot_dimension_numbers<[1], [0], [0], [1], [0, 0, 1, 1], [], []>} : vector<64x128xbf16>, vector<128x256xbf16>, vector<64x256xf32> -> vector<64x256xf32>
    %45 = vector.broadcast %40 : vector<1x256xf32> to vector<64x256xf32>
    %46 = arith.addf %44, %45 : vector<64x256xf32>
    %cst_31 = arith.constant dense<0.000000e+00> : vector<64x128xf32>
    %47 = tpu.matmul %1, %41, %cst_31 {dimension_numbers = #tpu.dot_dimension_numbers<[1], [0], [0], [1], [0, 0, 1, 1], [], []>} : vector<64x64xbf16>, vector<64x128xbf16>, vector<64x128xf32> -> vector<64x128xf32>
    %cst_32 = arith.constant 5.000000e-01 : f32
    %48 = vector.broadcast %cst_32 : f32 to vector<64x128xf32>
    %49 = arith.mulf %48, %47 : vector<64x128xf32>
    %50 = arith.truncf %49 : vector<64x128xf32> to vector<64x128xbf16>
    %c5 = arith.constant 5 : index
    %c0_33 = arith.constant 0 : index
    %c0_34 = arith.constant 0 : index
    %51 = vector.load %arg5[%c5, %c0_33, %c0_34] : memref<12x128x256xbf16, #tpu.memory_space<vmem>>, vector<1x128x256xbf16>
    %52 = vector.shape_cast %51 : vector<1x128x256xbf16> to vector<128x256xbf16>
    %cst_35 = arith.constant dense<0.000000e+00> : vector<64x256xf32>
    %53 = tpu.matmul %50, %52, %cst_35 {dimension_numbers = #tpu.dot_dimension_numbers<[1], [0], [0], [1], [0, 0, 1, 1], [], []>} : vector<64x128xbf16>, vector<128x256xbf16>, vector<64x256xf32> -> vector<64x256xf32>
    %54 = arith.addf %46, %53 : vector<64x256xf32>
    %cst_36 = arith.constant dense<0.000000e+00> : vector<64x128xf32>
    %55 = tpu.matmul %1, %50, %cst_36 {dimension_numbers = #tpu.dot_dimension_numbers<[1], [0], [0], [1], [0, 0, 1, 1], [], []>} : vector<64x64xbf16>, vector<64x128xbf16>, vector<64x128xf32> -> vector<64x128xf32>
    %56 = arith.subf %55, %38 : vector<64x128xf32>
    %57 = arith.truncf %56 : vector<64x128xf32> to vector<64x128xbf16>
    %c6 = arith.constant 6 : index
    %c0_37 = arith.constant 0 : index
    %c0_38 = arith.constant 0 : index
    %58 = vector.load %arg5[%c6, %c0_37, %c0_38] : memref<12x128x256xbf16, #tpu.memory_space<vmem>>, vector<1x128x256xbf16>
    %59 = vector.shape_cast %58 : vector<1x128x256xbf16> to vector<128x256xbf16>
    %cst_39 = arith.constant dense<0.000000e+00> : vector<64x256xf32>
    %60 = tpu.matmul %57, %59, %cst_39 {dimension_numbers = #tpu.dot_dimension_numbers<[1], [0], [0], [1], [0, 0, 1, 1], [], []>} : vector<64x128xbf16>, vector<128x256xbf16>, vector<64x256xf32> -> vector<64x256xf32>
    %61 = arith.addf %54, %60 : vector<64x256xf32>
    %cst_40 = arith.constant dense<0.000000e+00> : vector<64x128xf32>
    %62 = tpu.matmul %1, %57, %cst_40 {dimension_numbers = #tpu.dot_dimension_numbers<[1], [0], [0], [1], [0, 0, 1, 1], [], []>} : vector<64x64xbf16>, vector<64x128xbf16>, vector<64x128xf32> -> vector<64x128xf32>
    %63 = arith.subf %62, %49 : vector<64x128xf32>
    %64 = arith.truncf %63 : vector<64x128xf32> to vector<64x128xbf16>
    %c7 = arith.constant 7 : index
    %c0_41 = arith.constant 0 : index
    %c0_42 = arith.constant 0 : index
    %65 = vector.load %arg5[%c7, %c0_41, %c0_42] : memref<12x128x256xbf16, #tpu.memory_space<vmem>>, vector<1x128x256xbf16>
    %66 = vector.shape_cast %65 : vector<1x128x256xbf16> to vector<128x256xbf16>
    %cst_43 = arith.constant dense<0.000000e+00> : vector<64x256xf32>
    %67 = tpu.matmul %64, %66, %cst_43 {dimension_numbers = #tpu.dot_dimension_numbers<[1], [0], [0], [1], [0, 0, 1, 1], [], []>} : vector<64x128xbf16>, vector<128x256xbf16>, vector<64x256xf32> -> vector<64x256xf32>
    %68 = arith.addf %61, %67 : vector<64x256xf32>
    %69 = vector.extract_strided_slice %68 {offsets = [0, 0], sizes = [64, 128], strides = [1, 1]} : vector<64x256xf32> to vector<64x128xf32>
    %cst_44 = arith.constant 0.000000e+00 : f32
    %70 = vector.broadcast %cst_44 : f32 to vector<64x128xf32>
    %71 = arith.maximumf %69, %70 : vector<64x128xf32>
    %72 = vector.extract_strided_slice %68 {offsets = [0, 128], sizes = [64, 128], strides = [1, 1]} : vector<64x256xf32> to vector<64x128xf32>
    %73 = arith.addf %71, %72 : vector<64x128xf32>
    %c2_45 = arith.constant 2 : index
    %c0_46 = arith.constant 0 : index
    %c0_47 = arith.constant 0 : index
    %74 = vector.load %arg6[%c2_45, %c0_46, %c0_47] : memref<3x1x256xf32, #tpu.memory_space<vmem>>, vector<1x1x256xf32>
    %75 = vector.shape_cast %74 : vector<1x1x256xf32> to vector<1x256xf32>
    %76 = arith.truncf %73 : vector<64x128xf32> to vector<64x128xbf16>
    %c8 = arith.constant 8 : index
    %c0_48 = arith.constant 0 : index
    %c0_49 = arith.constant 0 : index
    %77 = vector.load %arg5[%c8, %c0_48, %c0_49] : memref<12x128x256xbf16, #tpu.memory_space<vmem>>, vector<1x128x256xbf16>
    %78 = vector.shape_cast %77 : vector<1x128x256xbf16> to vector<128x256xbf16>
    %cst_50 = arith.constant dense<0.000000e+00> : vector<64x256xf32>
    %79 = tpu.matmul %76, %78, %cst_50 {dimension_numbers = #tpu.dot_dimension_numbers<[1], [0], [0], [1], [0, 0, 1, 1], [], []>} : vector<64x128xbf16>, vector<128x256xbf16>, vector<64x256xf32> -> vector<64x256xf32>
    %80 = vector.broadcast %75 : vector<1x256xf32> to vector<64x256xf32>
    %81 = arith.addf %79, %80 : vector<64x256xf32>
    %cst_51 = arith.constant dense<0.000000e+00> : vector<64x128xf32>
    %82 = tpu.matmul %1, %76, %cst_51 {dimension_numbers = #tpu.dot_dimension_numbers<[1], [0], [0], [1], [0, 0, 1, 1], [], []>} : vector<64x64xbf16>, vector<64x128xbf16>, vector<64x128xf32> -> vector<64x128xf32>
    %cst_52 = arith.constant 5.000000e-01 : f32
    %83 = vector.broadcast %cst_52 : f32 to vector<64x128xf32>
    %84 = arith.mulf %83, %82 : vector<64x128xf32>
    %85 = arith.truncf %84 : vector<64x128xf32> to vector<64x128xbf16>
    %c9 = arith.constant 9 : index
    %c0_53 = arith.constant 0 : index
    %c0_54 = arith.constant 0 : index
    %86 = vector.load %arg5[%c9, %c0_53, %c0_54] : memref<12x128x256xbf16, #tpu.memory_space<vmem>>, vector<1x128x256xbf16>
    %87 = vector.shape_cast %86 : vector<1x128x256xbf16> to vector<128x256xbf16>
    %cst_55 = arith.constant dense<0.000000e+00> : vector<64x256xf32>
    %88 = tpu.matmul %85, %87, %cst_55 {dimension_numbers = #tpu.dot_dimension_numbers<[1], [0], [0], [1], [0, 0, 1, 1], [], []>} : vector<64x128xbf16>, vector<128x256xbf16>, vector<64x256xf32> -> vector<64x256xf32>
    %89 = arith.addf %81, %88 : vector<64x256xf32>
    %cst_56 = arith.constant dense<0.000000e+00> : vector<64x128xf32>
    %90 = tpu.matmul %1, %85, %cst_56 {dimension_numbers = #tpu.dot_dimension_numbers<[1], [0], [0], [1], [0, 0, 1, 1], [], []>} : vector<64x64xbf16>, vector<64x128xbf16>, vector<64x128xf32> -> vector<64x128xf32>
    %91 = arith.subf %90, %73 : vector<64x128xf32>
    %92 = arith.truncf %91 : vector<64x128xf32> to vector<64x128xbf16>
    %c10 = arith.constant 10 : index
    %c0_57 = arith.constant 0 : index
    %c0_58 = arith.constant 0 : index
    %93 = vector.load %arg5[%c10, %c0_57, %c0_58] : memref<12x128x256xbf16, #tpu.memory_space<vmem>>, vector<1x128x256xbf16>
    %94 = vector.shape_cast %93 : vector<1x128x256xbf16> to vector<128x256xbf16>
    %cst_59 = arith.constant dense<0.000000e+00> : vector<64x256xf32>
    %95 = tpu.matmul %92, %94, %cst_59 {dimension_numbers = #tpu.dot_dimension_numbers<[1], [0], [0], [1], [0, 0, 1, 1], [], []>} : vector<64x128xbf16>, vector<128x256xbf16>, vector<64x256xf32> -> vector<64x256xf32>
    %96 = arith.addf %89, %95 : vector<64x256xf32>
    %cst_60 = arith.constant dense<0.000000e+00> : vector<64x128xf32>
    %97 = tpu.matmul %1, %92, %cst_60 {dimension_numbers = #tpu.dot_dimension_numbers<[1], [0], [0], [1], [0, 0, 1, 1], [], []>} : vector<64x64xbf16>, vector<64x128xbf16>, vector<64x128xf32> -> vector<64x128xf32>
    %98 = arith.subf %97, %84 : vector<64x128xf32>
    %99 = arith.truncf %98 : vector<64x128xf32> to vector<64x128xbf16>
    %c11 = arith.constant 11 : index
    %c0_61 = arith.constant 0 : index
    %c0_62 = arith.constant 0 : index
    %100 = vector.load %arg5[%c11, %c0_61, %c0_62] : memref<12x128x256xbf16, #tpu.memory_space<vmem>>, vector<1x128x256xbf16>
    %101 = vector.shape_cast %100 : vector<1x128x256xbf16> to vector<128x256xbf16>
    %cst_63 = arith.constant dense<0.000000e+00> : vector<64x256xf32>
    %102 = tpu.matmul %99, %101, %cst_63 {dimension_numbers = #tpu.dot_dimension_numbers<[1], [0], [0], [1], [0, 0, 1, 1], [], []>} : vector<64x128xbf16>, vector<128x256xbf16>, vector<64x256xf32> -> vector<64x256xf32>
    %103 = arith.addf %96, %102 : vector<64x256xf32>
    %104 = vector.extract_strided_slice %103 {offsets = [0, 0], sizes = [64, 128], strides = [1, 1]} : vector<64x256xf32> to vector<64x128xf32>
    %cst_64 = arith.constant 0.000000e+00 : f32
    %105 = vector.broadcast %cst_64 : f32 to vector<64x128xf32>
    %106 = arith.maximumf %104, %105 : vector<64x128xf32>
    %107 = vector.extract_strided_slice %103 {offsets = [0, 128], sizes = [64, 128], strides = [1, 1]} : vector<64x256xf32> to vector<64x128xf32>
    %108 = arith.addf %106, %107 : vector<64x128xf32>
    %c0_65 = arith.constant 0 : index
    %c0_66 = arith.constant 0 : index
    %109 = vector.load %arg8[%c0_65, %c0_66] : memref<1x128xf32, #tpu.memory_space<vmem>>, vector<1x128xf32>
    %110 = arith.truncf %108 : vector<64x128xf32> to vector<64x128xbf16>
    %c0_67 = arith.constant 0 : index
    %c0_68 = arith.constant 0 : index
    %c0_69 = arith.constant 0 : index
    %111 = vector.load %arg7[%c0_67, %c0_68, %c0_69] : memref<2x128x128xbf16, #tpu.memory_space<vmem>>, vector<1x128x128xbf16>
    %112 = vector.shape_cast %111 : vector<1x128x128xbf16> to vector<128x128xbf16>
    %cst_70 = arith.constant dense<0.000000e+00> : vector<64x128xf32>
    %113 = tpu.matmul %110, %112, %cst_70 {dimension_numbers = #tpu.dot_dimension_numbers<[1], [0], [0], [1], [0, 0, 1, 1], [], []>} : vector<64x128xbf16>, vector<128x128xbf16>, vector<64x128xf32> -> vector<64x128xf32>
    %114 = vector.broadcast %109 : vector<1x128xf32> to vector<64x128xf32>
    %115 = arith.addf %113, %114 : vector<64x128xf32>
    %cst_71 = arith.constant dense<0.000000e+00> : vector<64x128xf32>
    %116 = tpu.matmul %1, %110, %cst_71 {dimension_numbers = #tpu.dot_dimension_numbers<[1], [0], [0], [1], [0, 0, 1, 1], [], []>} : vector<64x64xbf16>, vector<64x128xbf16>, vector<64x128xf32> -> vector<64x128xf32>
    %cst_72 = arith.constant 5.000000e-01 : f32
    %117 = vector.broadcast %cst_72 : f32 to vector<64x128xf32>
    %118 = arith.mulf %117, %116 : vector<64x128xf32>
    %119 = arith.truncf %118 : vector<64x128xf32> to vector<64x128xbf16>
    %c1_73 = arith.constant 1 : index
    %c0_74 = arith.constant 0 : index
    %c0_75 = arith.constant 0 : index
    %120 = vector.load %arg7[%c1_73, %c0_74, %c0_75] : memref<2x128x128xbf16, #tpu.memory_space<vmem>>, vector<1x128x128xbf16>
    %121 = vector.shape_cast %120 : vector<1x128x128xbf16> to vector<128x128xbf16>
    %cst_76 = arith.constant dense<0.000000e+00> : vector<64x128xf32>
    %122 = tpu.matmul %119, %121, %cst_76 {dimension_numbers = #tpu.dot_dimension_numbers<[1], [0], [0], [1], [0, 0, 1, 1], [], []>} : vector<64x128xbf16>, vector<128x128xbf16>, vector<64x128xf32> -> vector<64x128xf32>
    %123 = arith.addf %115, %122 : vector<64x128xf32>
    %c0_77 = arith.constant 0 : index
    %c0_78 = arith.constant 0 : index
    %c0_79 = arith.constant 0 : index
    %124 = vector.load %arg3[%c0_77, %c0_78, %c0_79] : memref<1x8x64xf32, #tpu.memory_space<vmem>>, vector<1x8x64xf32>
    %125 = vector.shape_cast %124 : vector<1x8x64xf32> to vector<8x64xf32>
    %cst_80 = arith.constant dense<0.000000e+00> : vector<8x128xf32>
    %126 = tpu.matmul %125, %123, %cst_80 {dimension_numbers = #tpu.dot_dimension_numbers<[1], [0], [0], [1], [0, 0, 1, 1], [], []>} : vector<8x64xf32>, vector<64x128xf32>, vector<8x128xf32> -> vector<8x128xf32>
    %c0_81 = arith.constant 0 : index
    %c0_82 = arith.constant 0 : index
    %c0_83 = arith.constant 0 : index
    %127 = vector.load %arg4[%c0_81, %c0_82, %c0_83] : memref<1x8x128xf32, #tpu.memory_space<vmem>>, vector<1x8x128xf32>
    %128 = vector.shape_cast %127 : vector<1x8x128xf32> to vector<8x128xf32>
    %129 = arith.truncf %128 : vector<8x128xf32> to vector<8x128xbf16>
    %c0_84 = arith.constant 0 : index
    %c0_85 = arith.constant 0 : index
    %130 = vector.load %arg9[%c0_84, %c0_85] : memref<128x128xbf16, #tpu.memory_space<vmem>>, vector<128x128xbf16>
    %cst_86 = arith.constant dense<0.000000e+00> : vector<8x128xf32>
    %131 = tpu.matmul %129, %130, %cst_86 {dimension_numbers = #tpu.dot_dimension_numbers<[1], [0], [0], [1], [0, 0, 1, 1], [], []>} : vector<8x128xbf16>, vector<128x128xbf16>, vector<8x128xf32> -> vector<8x128xf32>
    %c0_87 = arith.constant 0 : index
    %c0_88 = arith.constant 0 : index
    %132 = vector.load %arg10[%c0_87, %c0_88] : memref<1x128xf32, #tpu.memory_space<vmem>>, vector<1x128xf32>
    %133 = vector.broadcast %132 : vector<1x128xf32> to vector<8x128xf32>
    %134 = arith.addf %131, %133 : vector<8x128xf32>
    %cst_89 = arith.constant 0.000000e+00 : f32
    %135 = vector.broadcast %cst_89 : f32 to vector<8x128xf32>
    %136 = arith.maximumf %126, %135 : vector<8x128xf32>
    %137 = arith.truncf %136 : vector<8x128xf32> to vector<8x128xbf16>
    %c0_90 = arith.constant 0 : index
    %c0_91 = arith.constant 0 : index
    %138 = vector.load %arg11[%c0_90, %c0_91] : memref<128x128xbf16, #tpu.memory_space<vmem>>, vector<128x128xbf16>
    %cst_92 = arith.constant dense<0.000000e+00> : vector<8x128xf32>
    %139 = tpu.matmul %137, %138, %cst_92 {dimension_numbers = #tpu.dot_dimension_numbers<[1], [0], [0], [1], [0, 0, 1, 1], [], []>} : vector<8x128xbf16>, vector<128x128xbf16>, vector<8x128xf32> -> vector<8x128xf32>
    %cst_93 = arith.constant 0.000000e+00 : f32
    %140 = vector.broadcast %cst_93 : f32 to vector<8x128xf32>
    %141 = arith.maximumf %134, %140 : vector<8x128xf32>
    %142 = arith.truncf %141 : vector<8x128xf32> to vector<8x128xbf16>
    %c0_94 = arith.constant 0 : index
    %c0_95 = arith.constant 0 : index
    %143 = vector.load %arg12[%c0_94, %c0_95] : memref<128x128xbf16, #tpu.memory_space<vmem>>, vector<128x128xbf16>
    %cst_96 = arith.constant dense<0.000000e+00> : vector<8x128xf32>
    %144 = tpu.matmul %142, %143, %cst_96 {dimension_numbers = #tpu.dot_dimension_numbers<[1], [0], [0], [1], [0, 0, 1, 1], [], []>} : vector<8x128xbf16>, vector<128x128xbf16>, vector<8x128xf32> -> vector<8x128xf32>
    %145 = arith.addf %139, %144 : vector<8x128xf32>
    %c0_97 = arith.constant 0 : index
    %c0_98 = arith.constant 0 : index
    %146 = vector.load %arg13[%c0_97, %c0_98] : memref<1x128xf32, #tpu.memory_space<vmem>>, vector<1x128xf32>
    %147 = vector.broadcast %146 : vector<1x128xf32> to vector<8x128xf32>
    %148 = arith.addf %145, %147 : vector<8x128xf32>
    %cst_99 = arith.constant 0.000000e+00 : f32
    %149 = vector.broadcast %cst_99 : f32 to vector<8x128xf32>
    %150 = arith.maximumf %148, %149 : vector<8x128xf32>
    %151 = arith.truncf %150 : vector<8x128xf32> to vector<8x128xbf16>
    %c0_100 = arith.constant 0 : index
    %c0_101 = arith.constant 0 : index
    %152 = vector.load %arg14[%c0_100, %c0_101] : memref<128x128xbf16, #tpu.memory_space<vmem>>, vector<128x128xbf16>
    %cst_102 = arith.constant dense<0.000000e+00> : vector<8x128xf32>
    %153 = tpu.matmul %151, %152, %cst_102 {dimension_numbers = #tpu.dot_dimension_numbers<[1], [0], [0], [1], [0, 0, 1, 1], [], []>} : vector<8x128xbf16>, vector<128x128xbf16>, vector<8x128xf32> -> vector<8x128xf32>
    %c0_103 = arith.constant 0 : index
    %c0_104 = arith.constant 0 : index
    %154 = vector.load %arg15[%c0_103, %c0_104] : memref<1x128xf32, #tpu.memory_space<vmem>>, vector<1x128xf32>
    %155 = vector.broadcast %154 : vector<1x128xf32> to vector<8x128xf32>
    %156 = arith.addf %153, %155 : vector<8x128xf32>
    %cst_105 = arith.constant 0.000000e+00 : f32
    %157 = vector.broadcast %cst_105 : f32 to vector<8x128xf32>
    %158 = arith.maximumf %156, %157 : vector<8x128xf32>
    %159 = arith.truncf %158 : vector<8x128xf32> to vector<8x128xbf16>
    %c0_106 = arith.constant 0 : index
    %c0_107 = arith.constant 0 : index
    %160 = vector.load %arg16[%c0_106, %c0_107] : memref<128x128xbf16, #tpu.memory_space<vmem>>, vector<128x128xbf16>
    %cst_108 = arith.constant dense<0.000000e+00> : vector<8x128xf32>
    %161 = tpu.matmul %159, %160, %cst_108 {dimension_numbers = #tpu.dot_dimension_numbers<[1], [0], [0], [1], [0, 0, 1, 1], [], []>} : vector<8x128xbf16>, vector<128x128xbf16>, vector<8x128xf32> -> vector<8x128xf32>
    %c0_109 = arith.constant 0 : index
    %c0_110 = arith.constant 0 : index
    %162 = vector.load %arg17[%c0_109, %c0_110] : memref<1x128xf32, #tpu.memory_space<vmem>>, vector<1x128xf32>
    %163 = vector.broadcast %162 : vector<1x128xf32> to vector<8x128xf32>
    %164 = arith.addf %161, %163 : vector<8x128xf32>
    %165 = arith.negf %164 : vector<8x128xf32>
    %166 = math.exp %165 : vector<8x128xf32>
    %cst_111 = arith.constant 1.000000e+00 : f32
    %167 = vector.broadcast %cst_111 : f32 to vector<8x128xf32>
    %168 = arith.addf %167, %166 : vector<8x128xf32>
    %169 = arith.divf %167, %168 : vector<8x128xf32>
    %c0_112 = arith.constant 0 : index
    %c0_113 = arith.constant 0 : index
    %c0_114 = arith.constant 0 : index
    %170 = vector.load %arg18[%c0_112, %c0_113, %c0_114] : memref<1x8x128xf32, #tpu.memory_space<vmem>>, vector<1x8x128xf32>
    %171 = vector.shape_cast %170 : vector<1x8x128xf32> to vector<8x128xf32>
    %172 = vector.shape_cast %169 : vector<8x128xf32> to vector<1x8x128xf32>
    tpu.vector_store %arg18[%c0_112, %c0_113, %c0_114], %172 {strides = array<i32>} : memref<1x8x128xf32, #tpu.memory_space<vmem>>, vector<1x8x128xf32>,
    return
  }
  func.func @transform_0(%arg0: i32) -> (i32, i32, i32) {
    %c0_i32 = arith.constant 0 : i32
    %c0_i32_0 = arith.constant 0 : i32
    %c0_i32_1 = arith.constant 0 : i32
    return %arg0, %c0_i32, %c0_i32_0 : i32, i32, i32
  }
  func.func @transform_1(%arg0: i32) -> (i32, i32, i32) {
    %c0_i32 = arith.constant 0 : i32
    %c0_i32_0 = arith.constant 0 : i32
    %c0_i32_1 = arith.constant 0 : i32
    return %arg0, %c0_i32, %c0_i32_0 : i32, i32, i32
  }
  func.func @transform_2(%arg0: i32) -> (i32, i32, i32) {
    %c0_i32 = arith.constant 0 : i32
    %c0_i32_0 = arith.constant 0 : i32
    %c0_i32_1 = arith.constant 0 : i32
    return %arg0, %c0_i32, %c0_i32_0 : i32, i32, i32
  }
  func.func @transform_3(%arg0: i32) -> (i32, i32, i32) {
    %c0_i32 = arith.constant 0 : i32
    %c0_i32_0 = arith.constant 0 : i32
    %c0_i32_1 = arith.constant 0 : i32
    return %arg0, %c0_i32, %c0_i32_0 : i32, i32, i32
  }
  func.func @transform_4(%arg0: i32) -> (i32, i32, i32) {
    %c0_i32 = arith.constant 0 : i32
    %c0_i32_0 = arith.constant 0 : i32
    %c0_i32_1 = arith.constant 0 : i32
    %c0_i32_2 = arith.constant 0 : i32
    return %c0_i32, %c0_i32_0, %c0_i32_1 : i32, i32, i32
  }
  func.func @transform_5(%arg0: i32) -> (i32, i32, i32) {
    %c0_i32 = arith.constant 0 : i32
    %c0_i32_0 = arith.constant 0 : i32
    %c0_i32_1 = arith.constant 0 : i32
    %c0_i32_2 = arith.constant 0 : i32
    return %c0_i32, %c0_i32_0, %c0_i32_1 : i32, i32, i32
  }
  func.func @transform_6(%arg0: i32) -> (i32, i32, i32) {
    %c0_i32 = arith.constant 0 : i32
    %c0_i32_0 = arith.constant 0 : i32
    %c0_i32_1 = arith.constant 0 : i32
    %c0_i32_2 = arith.constant 0 : i32
    return %c0_i32, %c0_i32_0, %c0_i32_1 : i32, i32, i32
  }
  func.func @transform_7(%arg0: i32) -> (i32, i32) {
    %c0_i32 = arith.constant 0 : i32
    %c0_i32_0 = arith.constant 0 : i32
    %c0_i32_1 = arith.constant 0 : i32
    return %c0_i32, %c0_i32_0 : i32, i32
  }
  func.func @transform_8(%arg0: i32) -> (i32, i32) {
    %c0_i32 = arith.constant 0 : i32
    %c0_i32_0 = arith.constant 0 : i32
    %c0_i32_1 = arith.constant 0 : i32
    return %c0_i32, %c0_i32_0 : i32, i32
  }
  func.func @transform_9(%arg0: i32) -> (i32, i32) {
    %c0_i32 = arith.constant 0 : i32
    %c0_i32_0 = arith.constant 0 : i32
    %c0_i32_1 = arith.constant 0 : i32
    return %c0_i32, %c0_i32_0 : i32, i32
  }
  func.func @transform_10(%arg0: i32) -> (i32, i32) {
    %c0_i32 = arith.constant 0 : i32
    %c0_i32_0 = arith.constant 0 : i32
    %c0_i32_1 = arith.constant 0 : i32
    return %c0_i32, %c0_i32_0 : i32, i32
  }
  func.func @transform_11(%arg0: i32) -> (i32, i32) {
    %c0_i32 = arith.constant 0 : i32
    %c0_i32_0 = arith.constant 0 : i32
    %c0_i32_1 = arith.constant 0 : i32
    return %c0_i32, %c0_i32_0 : i32, i32
  }
  func.func @transform_12(%arg0: i32) -> (i32, i32) {
    %c0_i32 = arith.constant 0 : i32
    %c0_i32_0 = arith.constant 0 : i32
    %c0_i32_1 = arith.constant 0 : i32
    return %c0_i32, %c0_i32_0 : i32, i32
  }
  func.func @transform_13(%arg0: i32) -> (i32, i32) {
    %c0_i32 = arith.constant 0 : i32
    %c0_i32_0 = arith.constant 0 : i32
    %c0_i32_1 = arith.constant 0 : i32
    return %c0_i32, %c0_i32_0 : i32, i32
  }
  func.func @transform_14(%arg0: i32) -> (i32, i32) {
    %c0_i32 = arith.constant 0 : i32
    %c0_i32_0 = arith.constant 0 : i32
    %c0_i32_1 = arith.constant 0 : i32
    return %c0_i32, %c0_i32_0 : i32, i32
  }
  func.func @transform_15(%arg0: i32) -> (i32, i32) {
    %c0_i32 = arith.constant 0 : i32
    %c0_i32_0 = arith.constant 0 : i32
    %c0_i32_1 = arith.constant 0 : i32
    return %c0_i32, %c0_i32_0 : i32, i32
  }
  func.func @transform_16(%arg0: i32) -> (i32, i32) {
    %c0_i32 = arith.constant 0 : i32
    %c0_i32_0 = arith.constant 0 : i32
    %c0_i32_1 = arith.constant 0 : i32
    return %c0_i32, %c0_i32_0 : i32, i32
  }
  func.func @transform_17(%arg0: i32) -> (i32, i32, i32) {
    %c0_i32 = arith.constant 0 : i32
    %c0_i32_0 = arith.constant 0 : i32
    %c0_i32_1 = arith.constant 0 : i32
    return %arg0, %c0_i32, %c0_i32_0 : i32, i32, i32
  }
}

</mosaic_0001>

<bundles_post_ra>
// kernel: gcn_model_forward.1
= control target key start
LH: loop header
LB: loop body
LE: loop exit
PB: predicated region body
PF: predicated region fallthrough
CT: control target
= control target key end

     0   :  { %s7505_s0 = inlined_call_operand.hbm [shape: bf16[2,64,64], index: 0, kind: input, shape index: {}]   ;;  %s7506_s1 = inlined_call_operand.hbm [shape: f32[2,64,128], index: 1, kind: input, shape index: {}]   ;;  %s7507_s2 = inlined_call_operand.hbm [shape: f32[2,8,64], index: 2, kind: input, shape index: {}]   ;;  %s7508_s3 = inlined_call_operand.hbm [shape: f32[2,8,128], index: 3, kind: input, shape index: {}]   ;;  %s7509_s4 = inlined_call_operand.hbm [shape: bf16[12,128,256], index: 4, kind: input, shape index: {}]   ;;  %s7510_s5 = inlined_call_operand.hbm [shape: f32[3,1,256], index: 5, kind: input, shape index: {}]   ;;  %s7511_s6 = inlined_call_operand.hbm [shape: bf16[2,128,128], index: 6, kind: input, shape index: {}]   ;;  %s7512_s7 = inlined_call_operand.vmem [shape: f32[1,128], index: 7, kind: input, shape index: {}]   ;;  %s7513_s8 = inlined_call_operand.hbm [shape: bf16[128,128], index: 8, kind: input, shape index: {}]   ;;  %s7514_s9 = inlined_call_operand.vmem [shape: f32[1,128], index: 9, kind: input, shape index: {}]   ;;  %s7515_s10 = inlined_call_operand.hbm [shape: bf16[128,128], index: 10, kind: input, shape index: {}]   ;;  %s7516_s11 = inlined_call_operand.hbm [shape: bf16[128,128], index: 11, kind: input, shape index: {}]   ;;  %s7517_s12 = inlined_call_operand.hbm [shape: f32[1,128], index: 12, kind: input, shape index: {}]   ;;  %s7518_s13 = inlined_call_operand.hbm [shape: bf16[128,128], index: 13, kind: input, shape index: {}]   ;;  %s7519_s14 = inlined_call_operand.hbm [shape: f32[1,128], index: 14, kind: input, shape index: {}]   ;;  %s7520_s15 = inlined_call_operand.hbm [shape: bf16[128,128], index: 15, kind: input, shape index: {}]   ;;  %s7521_s16 = inlined_call_operand.hbm [shape: f32[1,128], index: 16, kind: input, shape index: {}]   ;;  %s7522_s17 = inlined_call_operand.vmem [shape: f32[2,8,128], index: 17, kind: output, shape index: {}]  }
   0x1   :  { %7534 = sst [smem:[#allocation35_spill]] %s7505_s0 }
   0x2   :  { %7535 = sst [smem:[#allocation36_spill]] %s7506_s1 }
   0x3   :  { %7536 = sst [smem:[#allocation37_spill]] %s7507_s2 }
   0x4   :  { %7537 = sst [smem:[#allocation38_spill]] %s7508_s3 }
   0x5   :  { %7538 = sst [smem:[#allocation39_spill]] %s7509_s4 }
   0x6   :  { %7539 = sst [smem:[#allocation40_spill]] %s7510_s5 }
   0x7   :  { %7540 = sst [smem:[#allocation41_spill]] %s7511_s6 }
   0x8   :  { %7541 = sst [smem:[#allocation42_spill]] %s7512_s7 }
   0x9   :  { %7542 = sst [smem:[#allocation43_spill]] %s7513_s8 }
   0xa   :  { %7543 = sst [smem:[#allocation44_spill]] %s7514_s9 }
   0xb   :  { %7544 = sst [smem:[#allocation45_spill]] %s7515_s10 }
   0xc   :  { %7545 = sst [smem:[#allocation46_spill]] %s7516_s11 }
   0xd   :  { %7546 = sst [smem:[#allocation47_spill]] %s7517_s12 }
   0xe   :  { %7547 = sst [smem:[#allocation48_spill]] %s7518_s13 }
   0xf   :  { %7548 = sst [smem:[#allocation49_spill]] %s7519_s14 }
  0x10   :  { %7549 = sst [smem:[#allocation50_spill]] %s7520_s15 }
  0x11   :  { %7550 = sst [smem:[#allocation51_spill]] %s7522_s17 }
  0x12   :  { %22 = vsyncpa [#allocation3], 0 }
  0x13   :  { %24 = vsyncpa [#allocation3 + $0x1], 0 }
  0x14   :  { %25 = vsyncpa [#allocation5], 0 }
  0x15   :  { %27 = vsyncpa [#allocation5 + $0x1], 0 }
  0x16   :  { %28 = vsyncpa [#allocation8], 0 }
  0x17   :  { %30 = vsyncpa [#allocation8 + $0x1], 0 }
  0x18   :  { %31 = vsyncpa [#allocation11], 0 }
  0x19   :  { %32 = vsyncpa [#allocation14], 0 }
  0x1a   :  { %33 = vsyncpa [#allocation17], 0 }
  0x1b   :  { %34 = vsyncpa [#allocation20], 0 }
  0x1c   :  { %35 = vsyncpa [#allocation23], 0  ;;  %s6466_s24 = smov 0   ;;  %s6468_s25 = smov 0  }
  0x1d   :  { %s6470_s26 = smov 0   ;;  %s6472_s27 = smov 0  }
  0x1e LB: > { %s7551_s4 = sld [smem:[#allocation39_spill]]  ;;  %s6490_s30 = sadd.s32 4294967295, %s6357_s27   ;;  %s6357_s27 = sphi %s6472_s27, %s7584_s27   ;;  %s6353_s26 = sphi %s6470_s26, %s7583_s26   ;;  %s6349_s25 = sphi %s6468_s25, %s7582_s25   ;;  %s6345_s24 = sphi %s6466_s24, %s7581_s24  }
  0x1f   : > { %p4299_p0 = scmp.ge.s32.totalorder %s6357_s27, 1  ;;  %p62_p1 = scmp.eq.s32.totalorder %s6490_s30, 0 }
  0x20   : > { %p449_p2 = scmp.lt.s32.totalorder %s6357_s27, 3  ;;  %s6359_s19 = smov [#allocation9]  }
  0x21   : > { %s462_s1 = sshll.u32 %s6359_s19, 4  ;;  %s7554_s5 = sld [smem:[#allocation40_spill]]  ;;  %s463_s1 = int_to_ptr.vmem [resolvable:$true] %s462_s1 }
  0x22   : > { %p6495_p3 = pnand %p4299_p0, %p449_p2  ;;  %s6360_s28 = smov [#allocation10]  }
  0x23   : > { %s476_s29 = sshll.u32 %s6360_s28, 4  ;;  %s7533_s19 = smov 8   ;;  %s477_s29 = int_to_ptr.vmem [resolvable:$true] %s476_s29 }
  0x24   : > { %s460_s0 = sshll.u32 %s7551_s4, 4  ;;  %p5705_p4 = pneg %p6495_p3  ;;  %s461_s0 = int_to_ptr.hbm [resolvable:$true] %s460_s0 }
  0x25   : > { %s7552_s18 = scalar_select %p6495_p3, 1, 0 }
  0x26   : > { %p6506_p5 = pnand %p5705_p4, %p62_p1  ;;  %s7532_s4 = smov 128  }
  0x27   : > { %7553 = sst [smem:[#allocation34_spill]] %s7552_s18  ;;  %s474_s22 = sshll.u32 %s7554_s5, 4  ;;  %s475_s22 = int_to_ptr.hbm [resolvable:$true] %s474_s22 }
  0x28   : > { %5708 = dma.hbm_to_vmem [thread:$0]  (!%p6506_p5), %s461_s0, 24576, %s463_s1, [#allocation8], %s7532_s4, %s7532_s4, %s7533_s19  }
  0x29   : > { %s6363_s20 = smov 32   ;;  %s6364_s21 = smov 2  }
  0x2a   : > { %5711 = dma.hbm_to_vmem [thread:$0]  (!%p6506_p5), %s475_s22, 96, %s477_s29, [#allocation11], %s6363_s20, %s6363_s20, %s6364_s21  }
  0x2b   : > { %s7556_s8 = sld [smem:[#allocation43_spill]]  ;;  %s6365_s28 = smov [#allocation13]  }
  0x2c   : > { %s507_s7 = sshll.u32 %s6365_s28, 4  ;;  %s7557_s11 = sld [smem:[#allocation46_spill]]  ;;  %s508_s7 = int_to_ptr.vmem [resolvable:$true] %s507_s7 }
  0x2d   : > { %s7528_s0 = smov 64   ;;  %s7530_s1 = smov 4  }
  0x2e   : > { %s6368_s5 = smov [#allocation16]   ;;  %s7558_s13 = sld [smem:[#allocation48_spill]] }
  0x2f   : > { %s538_s17 = sshll.u32 %s6368_s5, 4  ;;  %s7559_s15 = sld [smem:[#allocation50_spill]]  ;;  %s539_s17 = int_to_ptr.vmem [resolvable:$true] %s538_s17 }
  0x30   : > { %s6369_s18 = smov [#allocation19]   ;;  %s6550_s5 = sadd.s32 1, %s6357_s27  }
  0x31   : > { %s505_s9 = sshll.u32 %s7556_s8, 4  ;;  %s564_s21 = sshll.u32 %s6369_s18, 4  ;;  %s506_s9 = int_to_ptr.hbm [resolvable:$true] %s505_s9  ;;  %s565_s21 = int_to_ptr.vmem [resolvable:$true] %s564_s21 }
  0x32   : > { %s536_s2 = sshll.u32 %s7557_s11, 4  ;;  %s45_s22 = ssub.s32 %s6357_s27, %s6550_s5  ;;  %s537_s2 = int_to_ptr.hbm [resolvable:$true] %s536_s2 }
  0x33   : > { %5717 = dma.hbm_to_vmem [thread:$0]  (!%p6506_p5), %s506_s9, 1024, %s508_s7, [#allocation14], %s7528_s0, %s7528_s0, %s7530_s1  }
  0x34   : > { %s562_s20 = sshll.u32 %s7558_s13, 4  ;;  %p55_p6 = scmp.ne.s32.totalorder %s6353_s26, %s6349_s25  ;;  %s563_s20 = int_to_ptr.hbm [resolvable:$true] %s562_s20 }
  0x35   : > { %5723 = dma.hbm_to_vmem [thread:$0]  (!%p6506_p5), %s537_s2, 1024, %s539_s17, [#allocation17], %s7528_s0, %s7528_s0, %s7530_s1  }
  0x36   : > { %s588_s9 = sshll.u32 %s7559_s15, 4  ;;  %s6370_s2 = smov [#allocation22]   ;;  %s589_s9 = int_to_ptr.hbm [resolvable:$true] %s588_s9 }
  0x37   : > { %5729 = dma.hbm_to_vmem [thread:$0]  (!%p6506_p5), %s563_s20, 1024, %s565_s21, [#allocation20], %s7528_s0, %s7528_s0, %s7530_s1  }
  0x38   : > { %s590_s28 = sshll.u32 %s6370_s2, 4  ;;  %s48_s17 = sadd.s32 1, %s6353_s26  ;;  %s591_s28 = int_to_ptr.vmem [resolvable:$true] %s590_s28 }
  0x39   : > { %5735 = dma.hbm_to_vmem [thread:$0]  (!%p6506_p5), %s589_s9, 1024, %s591_s28, [#allocation23], %s7528_s0, %s7528_s0, %s7530_s1  }
  0x3a   : > { %p46_p7 = scmp.eq.s32.totalorder %s45_s22, 0  ;;  %p56_p8 = scmp.eq.s32.totalorder %s6357_s27, 0 }
  0x3b   : > { %p61_p9 = scmp.ne.s32.totalorder %s6349_s25, %s6345_s24  ;;  %p5763_p10 = scmp.lt.s32.totalorder %s6357_s27, 2 }
  0x3c   : > { %s6562_s29 = scalar_select %p46_p7, %s6353_s26, %s48_s17  }
  0x3d   : > { %p57_p11 = por %p56_p8, %p55_p6  ;;  %p6566_p12 = por %p62_p1, %p61_p9 }
  0x3e   : > { %s6571_s3 = sand.u32 1, %s6353_s26   ;;  %s5392_s18 = sshll.u32 %s6357_s27, 6 }
  0x3f   : > { %p6574_p13 = pnand %p5763_p10, %p57_p11  ;;  %s4315_s24 = sshll.u32 %s6571_s3, 6 }
  0x40   : > { %s7562_s28 = sld [smem:[#allocation36_spill]]  ;;  %s642_s22 = scalar_lea.vmem [#allocation4], %s4315_s24 }
  0x41   : > { %s650_s0 = sshll.u32 %s642_s22, 4  ;;  %s7563_s6 = sld [smem:[#allocation41_spill]]  ;;  %s651_s0 = int_to_ptr.vmem [resolvable:$true] %s650_s0 }
  0x42   : > { %s7564_s8 = sand.u32 1, %s6357_s27   ;;  %p6025_p2 = pneg %p6574_p13 }
  0x43   : > { %s6588_s11 = scalar_lea.sflag [#allocation5], %s7564_s8 }
  0x46   : > { %s647_s17 = scalar_lea.hbm %s7562_s28, %s5392_s18  ;;  %s6028_s21 = scalar_lea.hbm %s7562_s28, 128 }
  0x47   : > { %s648_s1 = sshll.u32 %s647_s17, 4  ;;  %s488_s7 = sshll.u32 %s7563_s6, 4  ;;  %s649_s1 = int_to_ptr.hbm [resolvable:$true] %s648_s1  ;;  %s489_s7 = int_to_ptr.hbm [resolvable:$true] %s488_s7 }
  0x48   : > { %s6021_s13 = sshra.s32 %s649_s1, 4  ;;  %s6022_s13 = int_to_ptr.hbm [resolvable:$true] %s6021_s13 }
  0x49   : > { %s6023_s15 = scalar_lea.hbm %s6022_s13, 64  ;;  %p6029_p7 = scmp.lt.s32.totalorder %s6022_s13, %s7562_s28 }
  0x4a   : > { %p6024_p0 = scmp.ne.s32.totalorder %s6022_s13, %s6023_s15  ;;  %p6030_p8 = scmp.lt.s32.totalorder %s6028_s21, %s6023_s15 }
  0x4c   : > { %p6026_p4 = pnand %p6025_p2, %p6024_p0  ;;  %p6031_p9 = por %p6030_p8, %p6029_p7 }
  0x4e   : > { %p6027_p6 = pneg %p6026_p4 }
  0x50   : > { %p6032_p10 = pnand %p6031_p9, %p6027_p6 }
  0x52   : > { %6035 = shalt.err (!%p6032_p10)
}
  0x53   : > { %s7565_s8 = smov 8   ;;  %s7566_s19 = smov 128  }
  0x54   : > { %5745 = dma.hbm_to_vmem [thread:$0]  (!%p6574_p13), %s649_s1, 1024, %s651_s0, %s6588_s11, %s7566_s19, %s7566_s19, %s7565_s8  }
  0x55   : > { %s6371_s17 = smov [#allocation12]   ;;  %s7567_s10 = sld [smem:[#allocation45_spill]] }
  0x56   : > { %s490_s22 = sshll.u32 %s6371_s17, 4  ;;  %s7568_s15 = smov 4   ;;  %s491_s22 = int_to_ptr.vmem [resolvable:$true] %s490_s22 }
  0x57   : > { %s7569_s21 = smov 64   ;;  %s7570_s12 = sld [smem:[#allocation47_spill]] }
  0x58   : > { %5714 = dma.hbm_to_vmem [thread:$0]  (!%p6506_p5), %s489_s7, 2048, %s491_s22, [#allocation11], %s7569_s21, %s7569_s21, %s7568_s15  }
  0x59   : > { %s6372_s0 = smov [#allocation15]   ;;  %s6373_s8 = smov [#allocation18]  }
  0x5a   : > { %s524_s1 = sshll.u32 %s6372_s0, 4  ;;  %s553_s19 = sshll.u32 %s6373_s8, 4  ;;  %s525_s1 = int_to_ptr.vmem [resolvable:$true] %s524_s1  ;;  %s554_s19 = int_to_ptr.vmem [resolvable:$true] %s553_s19 }
  0x5b   : > { %s522_s13 = sshll.u32 %s7567_s10, 4  ;;  %s7571_s14 = sld [smem:[#allocation49_spill]]  ;;  %s523_s13 = int_to_ptr.hbm [resolvable:$true] %s522_s13 }
  0x5c   : > { %5720 = dma.hbm_to_vmem [thread:$0]  (!%p6506_p5), %s523_s13, 1024, %s525_s1, [#allocation14], %s7569_s21, %s7569_s21, %s7568_s15  }
  0x5d   : > { %s551_s6 = sshll.u32 %s7570_s12, 4  ;;  %s603_s2 = sshll.u32 %s7521_s16, 4  ;;  %s552_s6 = int_to_ptr.hbm [resolvable:$true] %s551_s6  ;;  %s604_s2 = int_to_ptr.hbm [resolvable:$true] %s603_s2 }
  0x5e   : > { %5726 = dma.hbm_to_vmem [thread:$0]  (!%p6506_p5), %s552_s6, 16, %s554_s19, [#allocation17]  }
  0x5f   : > { %s6374_s4 = smov [#allocation21]   ;;  %s6375_s13 = smov [#allocation24]  }
  0x60   : > { %s579_s0 = sshll.u32 %s6374_s4, 4  ;;  %s605_s1 = sshll.u32 %s6375_s13, 4  ;;  %s580_s0 = int_to_ptr.vmem [resolvable:$true] %s579_s0  ;;  %s606_s1 = int_to_ptr.vmem [resolvable:$true] %s605_s1 }
  0x61   : > { %s577_s22 = sshll.u32 %s7571_s14, 4  ;;  %s4312_s8 = sshll.u32 %s6571_s3, 5  ;;  %s578_s22 = int_to_ptr.hbm [resolvable:$true] %s577_s22 }
  0x62   : > { %5732 = dma.hbm_to_vmem [thread:$0]  (!%p6506_p5), %s578_s22, 16, %s580_s0, [#allocation20]  }
  0x63   : > { %5738 = dma.hbm_to_vmem [thread:$0]  (!%p6506_p5), %s604_s2, 16, %s606_s1, [#allocation23]  }
  0x64   : > { %s5391_s6 = sshll.u32 %s6357_s27, 5  ;;  %s7572_s7 = sld [smem:[#allocation35_spill]] }
  0x65   : > { %s620_s18 = scalar_lea.vmem [#allocation2], %s4312_s8  ;;  %s4318_s12 = sshll.u32 %s6571_s3, 3 }
  0x66   : > { %s628_s4 = sshll.u32 %s620_s18, 4  ;;  %s617_s14 = scalar_lea.sflag [#allocation3], %s6571_s3  ;;  %s629_s4 = int_to_ptr.vmem [resolvable:$true] %s628_s4 }
  0x6a   : > { %s625_s24 = scalar_lea.hbm %s7572_s7, %s5391_s6  ;;  %s6208_s13 = scalar_lea.hbm %s7572_s7, 64 }
  0x6b   : > { %s626_s10 = sshll.u32 %s625_s24, 4  ;;  %s627_s10 = int_to_ptr.hbm [resolvable:$true] %s626_s10 }
  0x6c   : > { %s6201_s22 = sshra.s32 %s627_s10, 4  ;;  %s6202_s22 = int_to_ptr.hbm [resolvable:$true] %s6201_s22 }
  0x6d   : > { %s6203_s0 = scalar_lea.hbm %s6202_s22, 32  ;;  %p6209_p4 = scmp.lt.s32.totalorder %s6202_s22, %s7572_s7 }
  0x6e   : > { %p6204_p11 = scmp.ne.s32.totalorder %s6202_s22, %s6203_s0  ;;  %p6210_p6 = scmp.lt.s32.totalorder %s6208_s13, %s6203_s0 }
  0x70   : > { %p6206_p0 = pnand %p6204_p11, %p6025_p2  ;;  %p6211_p7 = por %p6210_p6, %p6209_p4 }
  0x72   : > { %p6207_p5 = pneg %p6206_p0 }
  0x74   : > { %p6212_p8 = pnand %p6211_p7, %p6207_p5 }
  0x76   : > { %6215 = shalt.err (!%p6212_p8)
}
  0x77   : > { %5742 = dma.hbm_to_vmem [thread:$0]  (!%p6574_p13), %s627_s10, 512, %s629_s4, %s617_s14, %s7569_s21, %s7569_s21, %s7568_s15  }
  0x78   : > { %s4319_s6 = sshll.u32 %s6357_s27, 3  ;;  %s7573_s24 = sld [smem:[#allocation37_spill]] }
  0x79   : > { %s664_s22 = scalar_lea.vmem [#allocation6], %s4318_s12 }
  0x7a   : > { %s672_s0 = sshll.u32 %s664_s22, 4  ;;  %s673_s0 = int_to_ptr.vmem [resolvable:$true] %s672_s0 }
  0x7e   : > { %s7574_s18 = smov %s7573_s24  ;;  %s668_s23 = scalar_lea.hbm %s7573_s24, %s4319_s6 }
  0x7f   : > { %s670_s2 = sshll.u32 %s668_s23, 4  ;;  %s6238_s15 = scalar_lea.hbm %s7574_s18, 16  ;;  %s671_s2 = int_to_ptr.hbm [resolvable:$true] %s670_s2 }
  0x80   : > { %s6231_s13 = sshra.s32 %s671_s2, 4  ;;  %s6232_s13 = int_to_ptr.hbm [resolvable:$true] %s6231_s13 }
  0x81   : > { %s6233_s1 = scalar_lea.hbm %s6232_s13, 8  ;;  %p6239_p0 = scmp.lt.s32.totalorder %s6232_s13, %s7574_s18 }
  0x82   : > { %p6234_p9 = scmp.ne.s32.totalorder %s6232_s13, %s6233_s1  ;;  %p6240_p5 = scmp.lt.s32.totalorder %s6238_s15, %s6233_s1 }
  0x84   : > { %p6236_p10 = pnand %p6234_p9, %p6025_p2  ;;  %p6241_p4 = por %p6240_p5, %p6239_p0 }
  0x86   : > { %p6237_p11 = pneg %p6236_p10 }
  0x88   : > { %p6242_p6 = pnand %p6241_p4, %p6237_p11 }
  0x8a   : > { %6245 = shalt.err (!%p6242_p6)
}
  0x8b   : > { %5748 = dma.hbm_to_vmem [thread:$0]  (!%p6574_p13), %s671_s2, 128, %s673_s0, %s6588_s11  }
  0x8c   : > { %s7575_s17 = sld [smem:[#allocation38_spill]]  ;;  %s683_s22 = scalar_lea.vmem [#allocation7], %s4318_s12 }
  0x8d   : > { %s691_s10 = sshll.u32 %s683_s22, 4  ;;  %s7576_s13 = sand.u32 1, %s6357_s27   ;;  %s692_s10 = int_to_ptr.vmem [resolvable:$true] %s691_s10 }
  0x8e   : > { %s680_s1 = scalar_lea.sflag [#allocation8], %s7576_s13 }
  0x92   : > { %s687_s24 = scalar_lea.hbm %s7575_s17, %s4319_s6  ;;  %s6268_s6 = scalar_lea.hbm %s7575_s17, 16 }
  0x93   : > { %s689_s23 = sshll.u32 %s687_s24, 4  ;;  %s690_s23 = int_to_ptr.hbm [resolvable:$true] %s689_s23 }
  0x94   : > { %s6261_s14 = sshra.s32 %s690_s23, 4  ;;  %s6262_s14 = int_to_ptr.hbm [resolvable:$true] %s6261_s14 }
  0x95   : > { %s6263_s15 = scalar_lea.hbm %s6262_s14, 8  ;;  %p6269_p10 = scmp.lt.s32.totalorder %s6262_s14, %s7575_s17 }
  0x96   : > { %p6264_p7 = scmp.ne.s32.totalorder %s6262_s14, %s6263_s15  ;;  %p6270_p11 = scmp.lt.s32.totalorder %s6268_s6, %s6263_s15 }
  0x98   : > { %p6266_p8 = pnand %p6264_p7, %p6025_p2  ;;  %p6271_p0 = por %p6270_p11, %p6269_p10 }
  0x9a   : > { %p6267_p9 = pneg %p6266_p8 }
  0x9c   : > { %p6272_p5 = pnand %p6271_p0, %p6267_p9 }
  0x9e   : > { %6275 = shalt.err (!%p6272_p5)
}
  0x9f   : > { %5751 = dma.hbm_to_vmem [thread:$0]  (!%p6574_p13), %s690_s23, 128, %s692_s10, %s680_s1  }
  0xa0   : > { %700 = sbr.rel (%p6495_p3) target bundleno = 3407 (0xd4f), region = 88  ;;  %s702_s27 = sand.u32 (!%p6495_p3), 1, %s6349_s25  }
  0xa1   : > { %s4323_s21 = sshll.u32 (!%p6495_p3), %s702_s27, 5  ;;  %s703_s4 = scalar_lea.sflag (!%p6495_p3), [#allocation3], %s702_s27 }
  0xa2   : > { %s6695_s8 = scalar_lea.vmem (!%p6495_p3), [#allocation2], %s4323_s21 }
  0xa5   : > { %6308 = dma.done.wait (%p6566_p12), %s703_s4, 512  }
  0xa6   : > { %6310 = vsyncadd (%p6566_p12), %s703_s4, 4294966784  ;;  %s712_s19 = sand.u32 1, %s6490_s30   ;;  %s4324_s9 = sshll.u32 %s702_s27, 6 }
  0xa7   : > { %s713_s24 = scalar_lea.sflag [#allocation5], %s712_s19  ;;  %s6702_s23 = scalar_lea.vmem [#allocation4], %s4324_s9 }
  0xa8   : > { %6312 = dma.done.wait (%p6566_p12), %s713_s24, 1152  }
  0xa9   : > { %6314 = vsyncadd (%p6566_p12), %s713_s24, 4294966144  ;;  %s4325_s22 = sshll.u32 %s702_s27, 3  ;;  %s733_s13 = scalar_lea.sflag [#allocation8], %s712_s19 }
  0xaa   : > { %s6708_s10 = scalar_lea.vmem [#allocation6], %s4325_s22  ;;  %s6710_s1 = scalar_lea.vmem [#allocation7], %s4325_s22 }
  0xab   : > { %6316 = dma.done.wait (%p6566_p12), %s733_s13, 128  }
  0xac   : > { %6318 = vsyncadd (%p6566_p12), %s733_s13, 4294967168 }
  0xad   : > { %6320 = dma.done.wait (%p62_p1), [#allocation8], 24576  }
  0xae   : > { %6322 = vsyncadd (%p62_p1), [#allocation8], 4294942720 }
  0xaf   : > { %6324 = dma.done.wait (%p62_p1), [#allocation11], 2144  }
  0xb0   : > { %6326 = vsyncadd (%p62_p1), [#allocation11], 4294965152 }
  0xb1   : > { %6328 = dma.done.wait (%p62_p1), [#allocation14], 2048  }
  0xb2   : > { %6330 = vsyncadd (%p62_p1), [#allocation14], 4294965248 }
  0xb3   : > { %6332 = dma.done.wait (%p62_p1), [#allocation17], 1040  }
  0xb4   : > { %6334 = vsyncadd (%p62_p1), [#allocation17], 4294966256 }
  0xb5   : > { %6336 = dma.done.wait (%p62_p1), [#allocation20], 1040  }
  0xb6   : > { %6338 = vsyncadd (%p62_p1), [#allocation20], 4294966256 }
  0xb7   : > { %6340 = dma.done.wait (%p62_p1), [#allocation23], 1040  }
  0xb8   : > { %6342 = vsyncadd (%p62_p1), [#allocation23], 4294966256  ;;  %v6741_v0 = vld [vmem:[%s6702_s23 + $0x30] sm:$0xff]  ;;  %v6744_v1 = vld [vmem:[%s6702_s23 + $0x38] sm:$0xff]  ;;  %vm1062_vm0 = vcmask 523264   ;;  %s7578_s15 = sld [smem:[#allocation42_spill]] }
  0xb9   : > { %v6747_v2 = vld [vmem:[%s6702_s23 + $0x20] sm:$0xff]  ;;  %v6751_v3 = vpack.c.bf16 %v6744_v1, %v6741_v0  ;;  %v6754_v4 = vld [vmem:[%s6702_s23 + $0x28] sm:$0xff]  ;;  %v6762_v6 = vld [vmem:[%s6702_s23 + $0x10] sm:$0xff]  ;;  %s7579_s6 = sld [smem:[#allocation44_spill]]  ;;  %p857_p1 = scmp.lt.s32.totalorder %s6490_s30, 1 }
  0xba   : > { %v6759_v5 = vpack.c.bf16 %v6754_v4, %v6747_v2  ;;  %v6765_v7 = vld [vmem:[%s6702_s23 + $0x18] sm:$0xff]  ;;  %v6773_v9 = vld [vmem:[%s6702_s23] sm:$0xff]  ;;  %v6776_v10 = vld [vmem:[%s6702_s23 + $0x8] sm:$0xff]  ;;  %s7580_s27 = sld [smem:[#allocation51_spill]] }
  0xbb   : > { %1079 = vmatpush.bf16.msra.mxu2 %v6751_v3  ;;  %v6770_v8 = vpack.c.bf16 %v6765_v7, %v6762_v6  ;;  %v6781_v11 = vpack.c.bf16 %v6776_v10, %v6773_v9  ;;  %v6784_v12 = vld [vmem:[%s6695_s8] sm:$0xff]  ;;  %v6790_v13 = vld [vmem:[%s6695_s8 + $0x8] sm:$0xff]  ;;  %v4397_v14 = vld [vmem:[#allocation9 + $0x70] sm:$0xf]  ;;  %s7586_s30 = smov (!%p857_p1, %s6490_s30), 1 }
  0xbc   : > { %v5412_v15 = vld [vmem:[#allocation9 + $0x74] sm:$0xf0]  ;;  %v4389_v16 = vld [vmem:[#allocation9 + $0x60] sm:$0xf]  ;;  %v5410_v18 = vld [vmem:[#allocation9 + $0x64] sm:$0xf0] }
  0xbd   : > { %v4398_v17 = vor.u32 %v5412_v15, %v4397_v14  ;;  %v4481_v19 = vld [vmem:[#allocation9 + $0xf0] sm:$0xf]  ;;  %v5428_v20 = vld [vmem:[#allocation9 + $0xf4] sm:$0xf0]  ;;  %v5427_v21 = vld [vmem:[#allocation9 + $0xf4] sm:$0xf]  ;;  %v4390_v22 = vor.u32 %v5410_v18, %v4389_v16 }
  0xbe   : > { %v4381_v23 = vld [vmem:[#allocation9 + $0x50] sm:$0xf]  ;;  %v5408_v24 = vld [vmem:[#allocation9 + $0x54] sm:$0xf0]  ;;  %v4482_v25 = vor.u32 %v5428_v20, %v4481_v19  ;;  %v4483_v26 = vld [vmem:[#allocation9 + $0xf8] sm:$0xf0] }
  0xbf   : > { %1080 = vmatpush.bf16.msra.mxu2 %v6759_v5  ;;  %984 = vmatpush.bf16.msra.mxu0 %v4398_v17  ;;  %v4486_v27 = vor.u32 %v5427_v21, %v4483_v26  ;;  %v5411_v28 = vld [vmem:[#allocation9 + $0x74] sm:$0xf]  ;;  %v4399_v29 = vld [vmem:[#allocation9 + $0x78] sm:$0xf0]  ;;  %v4473_v30 = vld [vmem:[#allocation9 + $0xe0] sm:$0xf]  ;;  %v4382_v39 = vor.u32 %v5408_v24, %v4381_v23 }
  0xc0   : > { %1213 = vmatpush.bf16.msra.mxu3 %v4482_v25  ;;  %v4402_v31 = vor.u32 %v5411_v28, %v4399_v29  ;;  %v5426_v32 = vld [vmem:[#allocation9 + $0xe4] sm:$0xf0]  ;;  %v5425_v33 = vld [vmem:[#allocation9 + $0xe4] sm:$0xf]  ;;  %v4475_v34 = vld [vmem:[#allocation9 + $0xe8] sm:$0xf0] }
  0xc1   : > { %v4373_v35 = vld [vmem:[#allocation9 + $0x40] sm:$0xf]  ;;  %v4474_v36 = vor.u32 %v5426_v32, %v4473_v30  ;;  %v4478_v37 = vor.u32 %v5425_v33, %v4475_v34  ;;  %v5409_v38 = vld [vmem:[#allocation9 + $0x64] sm:$0xf]  ;;  %v4391_v40 = vld [vmem:[#allocation9 + $0x68] sm:$0xf0] }
  0xc2   : > { %1013 = vmatpush.bf16.msra.mxu1 %v4402_v31  ;;  %v4465_v41 = vld [vmem:[#allocation9 + $0xd0] sm:$0xf]  ;;  %v5424_v42 = vld [vmem:[#allocation9 + $0xd4] sm:$0xf0]  ;;  %v5406_v43 = vld [vmem:[#allocation9 + $0x44] sm:$0xf0]  ;;  %v4394_v44 = vor.u32 %v5409_v38, %v4391_v40 }
  0xc3   : > { %1081 = vmatpush.bf16.msra.mxu2 %v6770_v8  ;;  %985 = vmatpush.bf16.msra.mxu0 %v4390_v22  ;;  %v5423_v45 = vld [vmem:[#allocation9 + $0xd4] sm:$0xf]  ;;  %v4467_v46 = vld [vmem:[#allocation9 + $0xd8] sm:$0xf0]  ;;  %v4466_v47 = vor.u32 %v5424_v42, %v4465_v41  ;;  %v4457_v52 = vld [vmem:[#allocation9 + $0xc0] sm:$0xf]  ;;  %v4374_v54 = vor.u32 %v5406_v43, %v4373_v35 }
  0xc4   : > { %1214 = vmatpush.bf16.msra.mxu3 %v4474_v36  ;;  %v5407_v48 = vld [vmem:[#allocation9 + $0x54] sm:$0xf]  ;;  %v4383_v49 = vld [vmem:[#allocation9 + $0x58] sm:$0xf0]  ;;  %v4470_v51 = vor.u32 %v5423_v45, %v4467_v46  ;;  %v5422_v53 = vld [vmem:[#allocation9 + $0xc4] sm:$0xf0] }
  0xc5   : > { %v6795_v50 = vld [vmem:[%s6695_s8 + $0x10] sm:$0xff]  ;;  %v4386_v56 = vor.u32 %v5407_v48, %v4383_v49  ;;  %v5421_v57 = vld [vmem:[#allocation9 + $0xc4] sm:$0xf]  ;;  %v4459_v58 = vld [vmem:[#allocation9 + $0xc8] sm:$0xf0]  ;;  %v4458_v62 = vor.u32 %v5422_v53, %v4457_v52  ;;  %s4338_s2 = sshll.u32 %s7586_s30, 3 }
  0xc6   : > { %v4365_v55 = vld [vmem:[#allocation9 + $0x30] sm:$0xf]  ;;  %1014 = vmatpush.bf16.msra.mxu1 %v4394_v44  ;;  %v5404_v59 = vld [vmem:[#allocation9 + $0x34] sm:$0xf0]  ;;  %v5405_v60 = vld [vmem:[#allocation9 + $0x44] sm:$0xf]  ;;  %v4462_v63 = vor.u32 %v5421_v57, %v4459_v58  ;;  %s860_s21 = scalar_lea.vmem %s7580_s27, %s4338_s2 }
  0xc7   : > { %1082 = vmatpush.bf16.msra.mxu2 %v6781_v11  ;;  %986 = vmatpush.bf16.msra.mxu0 %v4382_v39  ;;  %v4375_v61 = vld [vmem:[#allocation9 + $0x48] sm:$0xf0]  ;;  %v4449_v14 = vld [vmem:[#allocation9 + $0xb0] sm:$0xf]  ;;  %v5420_v15 = vld [vmem:[#allocation9 + $0xb4] sm:$0xf0]  ;;  %v4366_v16 = vor.u32 %v5404_v59, %v4365_v55 }
  0xc8   : > { %1215 = vmatpush.bf16.msra.mxu3 %v4466_v47  ;;  %v4378_v17 = vor.u32 %v5405_v60, %v4375_v61  ;;  %v5419_v18 = vld [vmem:[#allocation9 + $0xb4] sm:$0xf]  ;;  %v4451_v19 = vld [vmem:[#allocation9 + $0xb8] sm:$0xf0]  ;;  %v4357_v20 = vld [vmem:[#allocation9 + $0x20] sm:$0xf]  ;;  %v4450_v22 = vor.u32 %v5420_v15, %v4449_v14 }
  0xc9   : > { %v5402_v21 = vld [vmem:[#allocation9 + $0x24] sm:$0xf0]  ;;  %v4454_v23 = vor.u32 %v5419_v18, %v4451_v19  ;;  %v4349_v25 = vld [vmem:[#allocation9 + $0x10] sm:$0xf]  ;;  %v5400_v26 = vld [vmem:[#allocation9 + $0x14] sm:$0xf0] }
  0xca   : > { %4419 = vmatmul.msk.bf16.vlgmr.msra.gmra.mxu2 %vm1062_vm0, %v6784_v12  ;;  %1015 = vmatpush.bf16.msra.mxu1 %v4386_v56  ;;  %v4358_v24 = vor.u32 %v5402_v21, %v4357_v20  ;;  %v6800_v28 = vld [vmem:[%s6695_s8 + $0x18] sm:$0xff]  ;;  %v4341_v29 = vld [vmem:[#allocation9] sm:$0xf]  ;;  %v5398_v30 = vld [vmem:[#allocation9 + $0x4] sm:$0xf0] }
  0xcb   : > { %1242 = vmatpush.bf16.msrb.mxu2 %v4486_v27  ;;  %987 = vmatpush.bf16.msra.mxu0 %v4374_v54  ;;  %v4350_v27 = vor.u32 %v5400_v26, %v4349_v25  ;;  %v4342_v31 = vor.u32 %v5398_v30, %v4341_v29  ;;  %v5403_v32 = vld [vmem:[#allocation9 + $0x34] sm:$0xf]  ;;  %v4367_v33 = vld [vmem:[#allocation9 + $0x38] sm:$0xf0]  ;;  %v4441_v34 = vld [vmem:[#allocation9 + $0xa0] sm:$0xf] }
  0xcc   : > { %1216 = vmatpush.bf16.msra.mxu3 %v4458_v62  ;;  %v4370_v35 = vor.u32 %v5403_v32, %v4367_v33  ;;  %v5418_v36 = vld [vmem:[#allocation9 + $0xa4] sm:$0xf0]  ;;  %v4443_v38 = vld [vmem:[#allocation9 + $0xa8] sm:$0xf0]  ;;  %v5401_v41 = vld [vmem:[#allocation9 + $0x24] sm:$0xf] }
  0xcd   : > { %v4442_v39 = vor.u32 %v5418_v36, %v4441_v34  ;;  %v4359_v42 = vld [vmem:[#allocation9 + $0x28] sm:$0xf0]  ;;  %v4433_v43 = vld [vmem:[#allocation9 + $0x90] sm:$0xf]  ;;  %v5416_v45 = vld [vmem:[#allocation9 + $0x94] sm:$0xf0] }
  0xce   : > { %1016 = vmatpush.bf16.msra.mxu1 %v4378_v17  ;;  %v4362_v44 = vor.u32 %v5401_v41, %v4359_v42  ;;  %v5415_v46 = vld [vmem:[#allocation9 + $0x94] sm:$0xf]  ;;  %v4435_v47 = vld [vmem:[#allocation9 + $0x98] sm:$0xf0]  ;;  %v4434_v48 = vor.u32 %v5416_v45, %v4433_v43  ;;  %v4425_v53 = vld [vmem:[#allocation9 + $0x80] sm:$0xf] }
  0xcf   : > { %1243 = vmatpush.bf16.msrb.mxu2 %v4478_v37  ;;  %988 = vmatpush.bf16.msra.mxu0 %v4366_v16  ;;  %v5417_v37 = vld [vmem:[#allocation9 + $0xa4] sm:$0xf]  ;;  %v4438_v49 = vor.u32 %v5415_v46, %v4435_v47  ;;  %v4351_v52 = vld [vmem:[#allocation9 + $0x18] sm:$0xf0]  ;;  %v5414_v55 = vld [vmem:[#allocation9 + $0x84] sm:$0xf0] }
  0xd0   : > { %1217 = vmatpush.bf16.msra.mxu3 %v4450_v22  ;;  %v4446_v40 = vor.u32 %v5417_v37, %v4443_v38  ;;  %v5413_v56 = vld [vmem:[#allocation9 + $0x84] sm:$0xf]  ;;  %v4427_v57 = vld [vmem:[#allocation9 + $0x88] sm:$0xf0]  ;;  %v4426_v58 = vor.u32 %v5414_v55, %v4425_v53  ;;  %v878_v34 = vld [vmem:[#allocation10] sm:$0x3] }
  0xd1   : > { %v4430_v59 = vor.u32 %v5413_v56, %v4427_v57  ;;  %v5397_v60 = vld [vmem:[#allocation9 + $0x4] sm:$0xf]  ;;  %v4343_v61 = vld [vmem:[#allocation9 + $0x8] sm:$0xf0]  ;;  %v6850_v36 = vperm.slane %v878_v34, 0 }
  0xd2   : > { %1017 = vmatpush.bf16.msra.mxu1 %v4370_v35  ;;  %v4346_v62 = vor.u32 %v5397_v60, %v4343_v61  ;;  %v6848_v35 = vperm.slane %v878_v34, 1  ;;  %v4549_v45 = vld [vmem:[#allocation9 + $0x170] sm:$0xf]  ;;  %v5444_v46 = vld [vmem:[#allocation9 + $0x174] sm:$0xf0] }
  0xd3   : > { %1244 = vmatpush.bf16.msrb.mxu2 %v4470_v51  ;;  %989 = vmatpush.bf16.msra.mxu0 %v4358_v24  ;;  %v5399_v51 = vld [vmem:[#allocation9 + $0x14] sm:$0xf]  ;;  %v4541_v55 = vld [vmem:[#allocation9 + $0x160] sm:$0xf]  ;;  %v5442_v56 = vld [vmem:[#allocation9 + $0x164] sm:$0xf0] }
  0xd4   : > { %1218 = vmatpush.bf16.msra.mxu3 %v4442_v39  ;;  %v4354_v54 = vor.u32 %v5399_v51, %v4351_v52  ;;  %v5443_v47 = vld [vmem:[#allocation9 + $0x174] sm:$0xf]  ;;  %v5441_v57 = vld [vmem:[#allocation9 + $0x164] sm:$0xf]  ;;  %v4533_v60 = vld [vmem:[#allocation9 + $0x150] sm:$0xf] }
  0xd5   : > { %v5440_v61 = vld [vmem:[#allocation9 + $0x154] sm:$0xf0] }
  0xd6   : > { %1018 = vmatpush.bf16.msra.mxu1 %v4362_v44 }
  0xd7   : > { %1245 = vmatpush.bf16.msrb.mxu2 %v4462_v63  ;;  %990 = vmatpush.bf16.msra.mxu0 %v4350_v27 }
  0xd8   : > { %1219 = vmatpush.bf16.msra.mxu3 %v4434_v48  ;;  %v4550_v48 = vor.u32 %v5444_v46, %v4549_v45  ;;  %v5435_v45 = vld [vmem:[#allocation9 + $0x134] sm:$0xf]  ;;  %v4519_v46 = vld [vmem:[#allocation9 + $0x138] sm:$0xf0] }
  0xda   : > { %4420 = vmatmul.msk.bf16.gmra.mxu2 %vm1062_vm0, %v6790_v13  ;;  %1019 = vmatpush.bf16.msra.mxu1 %v4354_v54 }
  0xdb   : > { %1246 = vmatpush.bf16.msrb.mxu2 %v4454_v23  ;;  %991 = vmatpush.bf16.msra.mxu0 %v4342_v31 }
  0xdc   : > { %1220 = vmatpush.bf16.msra.mxu3 %v4426_v58  ;;  %v4542_v58 = vor.u32 %v5442_v56, %v4541_v55  ;;  %v4509_v55 = vld [vmem:[#allocation9 + $0x120] sm:$0xf]  ;;  %v5434_v56 = vld [vmem:[#allocation9 + $0x124] sm:$0xf0] }
  0xde   : > { %992 = vmatmul.bf16.vlgmr.msra.gmra.mxu0 %v6781_v11  ;;  %1020 = vmatpush.bf16.msra.mxu1 %v4346_v62 }
  0xdf   : > { %1247 = vmatpush.bf16.msrb.mxu2 %v4446_v40 }
  0xe1   : > { %1021 = vmatmul.bf16.vlgmr.msra.gmra.mxu1 %v6781_v11 }
  0xe2   : > { %1425 = vmatpush.bf16.msrb.mxu1 %v4550_v48  ;;  %v4522_v48 = vor.u32 %v5435_v45, %v4519_v46  ;;  %v4495_v45 = vld [vmem:[#allocation9 + $0x108] sm:$0xf0] }
  0xe3   : > { %1248 = vmatpush.bf16.msrb.mxu2 %v4438_v49  ;;  %v4551_v49 = vld [vmem:[#allocation9 + $0x178] sm:$0xf0] }
  0xe4   : > { %v4554_v51 = vor.u32 %v5443_v47, %v4551_v49 }
  0xe6   : > { %1454 = vmatpush.bf16.msrb.mxu3 %v4554_v51  ;;  %1426 = vmatpush.bf16.msrb.mxu1 %v4542_v58  ;;  %v4510_v58 = vor.u32 %v5434_v56, %v4509_v55 }
  0xe7   : > { %1249 = vmatpush.bf16.msrb.mxu2 %v4430_v59  ;;  %v4543_v59 = vld [vmem:[#allocation9 + $0x168] sm:$0xf0] }
  0xea   : > { %4421 = vmatmul.msk.bf16.gmra.mxu2 %vm1062_vm0, %v6795_v50 }
  0xee   : > { %997 = vmatmul.bf16.gmra.mxu0 %v6770_v8 }
  0xf1   : > { %1026 = vmatmul.bf16.gmra.mxu1 %v6770_v8 }
  0xfa   : > { %4422 = vmatmul.msk.bf16.gmra.mxu2 %vm1062_vm0, %v6800_v28 }
  0xfe   : > { %1002 = vmatmul.bf16.gmra.mxu0 %v6759_v5 }
 0x101   : > { %1031 = vmatmul.bf16.gmra.mxu1 %v6759_v5 }
 0x10e   : > { %1007 = vmatmul.bf16.gmra.mxu0 %v6751_v3 }
 0x111   : > { %1036 = vmatmul.bf16.gmra.mxu1 %v6751_v3 }
 0x14d   : > { %v1084_v63 = vpop.f32.mrf.mxu2 }
 0x14e   : > { %v6809_v15 = vmul.f32 0.5, %v1084_v63  ;;  %v4546_v63 = vor.u32 %v5441_v57, %v4543_v59  ;;  %v5433_v57 = vld [vmem:[#allocation9 + $0x124] sm:$0xf]  ;;  %v4511_v59 = vld [vmem:[#allocation9 + $0x128] sm:$0xf0] }
 0x150   : > { %1455 = vmatpush.bf16.msrb.mxu3 %v4546_v63  ;;  %v5432_v63 = vld [vmem:[#allocation9 + $0x114] sm:$0xf0] }
 0x155   : > { %v1086_v14 = vpop.f32.mrf.mxu2 }
 0x156   : > { %v6811_v16 = vmul.f32 0.5, %v1086_v14  ;;  %v5439_v14 = vld [vmem:[#allocation9 + $0x154] sm:$0xf] }
 0x158   : > { %v1112_v17 = vpack.c.bf16 %v6811_v16, %v6809_v15 }
 0x15a   : > { %1221 = vmatmul.bf16.vlgmr.msra.gmra.mxu3 %v1112_v17  ;;  %1250 = vmatmul.bf16.vlgmr.msrb.gmra.mxu2 %v1112_v17 }
 0x15b   : > { %v993_v3 = vpop.f32.mrf.mxu0 }
 0x15c   : > { %v994_v38 = vadd.f32 %v993_v3, %v6850_v36  ;;  %v5438_v3 = vld [vmem:[#allocation9 + $0x144] sm:$0xf0] }
 0x15d   : > { %v1089_v18 = vpop.f32.mrf.mxu2 }
 0x15e   : > { %v6817_v19 = vmul.f32 0.5, %v1089_v18  ;;  %v1022_v31 = vpop.f32.mrf.mxu1  ;;  %v4534_v18 = vor.u32 %v5440_v61, %v4533_v60  ;;  %v4514_v60 = vor.u32 %v5433_v57, %v4511_v59  ;;  %v4501_v61 = vld [vmem:[#allocation9 + $0x110] sm:$0xf] }
 0x15f   : > { %v1023_v37 = vadd.f32 %v1022_v31, %v6848_v35  ;;  %v5437_v31 = vld [vmem:[#allocation9 + $0x144] sm:$0xf] }
 0x160   : > { %1427 = vmatpush.bf16.msrb.mxu1 %v4534_v18  ;;  %v4503_v18 = vld [vmem:[#allocation9 + $0x118] sm:$0xf0] }
 0x163   : > { %v6844_v32 = vpop.f32.mrf.mxu0 }
 0x165   : > { %v1091_v11 = vpop.f32.mrf.mxu2 }
 0x166   : > { %v6819_v8 = vmul.f32 0.5, %v1091_v11  ;;  %v6846_v33 = vpop.f32.mrf.mxu1 }
 0x168   : > { %v1113_v20 = vpack.c.bf16 %v6819_v8, %v6817_v19 }
 0x16a   : > { %1226 = vmatmul.bf16.gmra.mxu3 %v1113_v20  ;;  %1255 = vmatmul.bf16.gmra.mxu2 %v1113_v20 }
 0x16b   : > { %v998_v39 = vpop.f32.mrf.mxu0 }
 0x16d   : > { %v1094_v21 = vpop.f32.mrf.mxu2 }
 0x16e   : > { %v6824_v23 = vmul.f32 0.5, %v1094_v21  ;;  %v1027_v44 = vpop.f32.mrf.mxu1  ;;  %v999_v21 = vadd.f32 %v998_v39, %v6850_v36 }
 0x16f   : > { %v1028_v11 = vadd.f32 %v1027_v44, %v6848_v35 }
 0x173   : > { %v6862_v54 = vpop.f32.mrf.mxu0 }
 0x175   : > { %v1096_v22 = vpop.f32.mrf.mxu2 }
 0x176   : > { %v6826_v24 = vmul.f32 0.5, %v1096_v22  ;;  %v6864_v62 = vpop.f32.mrf.mxu1 }
 0x178   : > { %v1114_v5 = vpack.c.bf16 %v6826_v24, %v6824_v23 }
 0x17a   : > { %1231 = vmatmul.bf16.gmra.mxu3 %v1114_v5  ;;  %1260 = vmatmul.bf16.gmra.mxu2 %v1114_v5 }
 0x17d   : > { %v1099_v25 = vpop.f32.mrf.mxu2 }
 0x17e   : > { %v6830_v27 = vmul.f32 0.5, %v1099_v25  ;;  %v1032_v47 = vpop.f32.mrf.mxu1 }
 0x185   : > { %v1101_v26 = vpop.f32.mrf.mxu2 }
 0x186   : > { %v6832_v29 = vmul.f32 0.5, %v1101_v26 }
 0x188   : > { %v1115_v30 = vpack.c.bf16 %v6832_v29, %v6830_v27 }
 0x18a   : > { %1236 = vmatmul.bf16.gmra.mxu3 %v1115_v30  ;;  %1265 = vmatmul.bf16.gmra.mxu2 %v1115_v30 }
 0x18b   : > { %1291 = vmatpush.bf16.msrb.mxu0 %v1115_v30  ;;  %v4525_v30 = vld [vmem:[#allocation9 + $0x140] sm:$0xf] }
 0x18c   : > { %v4526_v34 = vor.u32 %v5438_v3, %v4525_v30 }
 0x18e   : > { %1428 = vmatpush.bf16.msrb.mxu1 %v4526_v34 }
 0x18f   : > { %1292 = vmatpush.bf16.msrb.mxu0 %v1114_v5 }
 0x193   : > { %1293 = vmatpush.bf16.msrb.mxu0 %v1113_v20 }
 0x197   : > { %1294 = vmatpush.bf16.msrb.mxu0 %v1112_v17  ;;  %v4535_v17 = vld [vmem:[#allocation9 + $0x158] sm:$0xf0] }
 0x198   : > { %v4538_v20 = vor.u32 %v5439_v14, %v4535_v17  ;;  %v5431_v14 = vld [vmem:[#allocation9 + $0x114] sm:$0xf]  ;;  %v4502_v17 = vor.u32 %v5432_v63, %v4501_v61 }
 0x19a   : > { %4487 = vmatmul.msk.bf16.vlgmr.msrb.gmra.mxu0 %vm1062_vm0, %v6784_v12  ;;  %1456 = vmatpush.bf16.msrb.mxu3 %v4538_v20  ;;  %v1033_v20 = vadd.f32 %v1032_v47, %v6848_v35 }
 0x1aa   : > { %4488 = vmatmul.msk.bf16.gmra.mxu0 %vm1062_vm0, %v6790_v13 }
 0x1ba   : > { %4489 = vmatmul.msk.bf16.gmra.mxu0 %vm1062_vm0, %v6795_v50 }
 0x1ca   : > { %4490 = vmatmul.msk.bf16.gmra.mxu0 %vm1062_vm0, %v6800_v28 }
 0x1dd   : > { %v1222_v40 = vpop.f32.mrf.mxu3  ;;  %v1251_v41 = vpop.f32.mrf.mxu2 }
 0x1de   : > { %v6854_v42 = vadd.f32 %v1222_v40, %v994_v38  ;;  %v6856_v43 = vadd.f32 %v1251_v41, %v1023_v37  ;;  %v4527_v37 = vld [vmem:[#allocation9 + $0x148] sm:$0xf0]  ;;  %v4517_v38 = vld [vmem:[#allocation9 + $0x130] sm:$0xf]  ;;  %v5436_v40 = vld [vmem:[#allocation9 + $0x134] sm:$0xf0]  ;;  %v1003_v41 = vpop.f32.mrf.mxu0 }
 0x1df   : > { %v4530_v44 = vor.u32 %v5437_v31, %v4527_v37  ;;  %v4518_v39 = vor.u32 %v5436_v40, %v4517_v38  ;;  %v4493_v37 = vld [vmem:[#allocation9 + $0x100] sm:$0xf]  ;;  %v5430_v38 = vld [vmem:[#allocation9 + $0x104] sm:$0xf0]  ;;  %v5429_v40 = vld [vmem:[#allocation9 + $0x104] sm:$0xf] }
 0x1e0   : > { %v4498_v46 = vor.u32 %v5429_v40, %v4495_v45 }
 0x1e1   : > { %1457 = vmatpush.bf16.msrb.mxu3 %v4530_v44  ;;  %1429 = vmatpush.bf16.msrb.mxu1 %v4518_v39  ;;  %v4494_v44 = vor.u32 %v5430_v38, %v4493_v37 }
 0x1e5   : > { %v6858_v52 = vpop.f32.mrf.mxu3  ;;  %v6860_v53 = vpop.f32.mrf.mxu2  ;;  %1458 = vmatpush.bf16.msrb.mxu3 %v4522_v48  ;;  %1430 = vmatpush.bf16.msrb.mxu1 %v4510_v58 }
 0x1e9   : > { %1459 = vmatpush.bf16.msrb.mxu3 %v4514_v60  ;;  %1431 = vmatpush.bf16.msrb.mxu1 %v4502_v17 }
 0x1ed   : > { %v1227_v22 = vpop.f32.mrf.mxu3  ;;  %v1256_v5 = vpop.f32.mrf.mxu2  ;;  %1432 = vmatpush.bf16.msrb.mxu1 %v4494_v44 }
 0x1ee   : > { %v6868_v25 = vadd.f32 %v1227_v22, %v999_v21  ;;  %v6870_v26 = vadd.f32 %v1256_v5, %v1028_v11  ;;  %v6876_v11 = vpop.f32.mrf.mxu0  ;;  %v4506_v21 = vor.u32 %v5431_v14, %v4503_v18  ;;  %v1004_v22 = vadd.f32 %v1003_v41, %v6850_v36  ;;  %v6880_v5 = vpop.f32.mrf.mxu1 }
 0x1f0   : > { %1460 = vmatpush.bf16.msrb.mxu3 %v4506_v21 }
 0x1f4   : > { %1461 = vmatpush.bf16.msrb.mxu3 %v4498_v46 }
 0x1f5   : > { %v6872_v49 = vpop.f32.mrf.mxu3  ;;  %v6874_v51 = vpop.f32.mrf.mxu2 }
 0x1f6   : > { %v1008_v39 = vpop.f32.mrf.mxu0  ;;  %v1037_v48 = vpop.f32.mrf.mxu1 }
 0x1f7   : > { %v1038_v55 = vadd.f32 %v1037_v48, %v6848_v35  ;;  %v1009_v56 = vadd.f32 %v1008_v39, %v6850_v36 }
 0x1fd   : > { %v1232_v30 = vpop.f32.mrf.mxu3  ;;  %v1261_v3 = vpop.f32.mrf.mxu2 }
 0x1fe   : > { %v6882_v31 = vadd.f32 %v1232_v30, %v1004_v22  ;;  %v6884_v34 = vadd.f32 %v1261_v3, %v1033_v20  ;;  %v6896_v61 = vpop.f32.mrf.mxu0 }
 0x205   : > { %v6886_v41 = vpop.f32.mrf.mxu3  ;;  %v6888_v47 = vpop.f32.mrf.mxu2 }
 0x20d   : > { %v1237_v57 = vpop.f32.mrf.mxu3  ;;  %v1266_v58 = vpop.f32.mrf.mxu2 }
 0x20e   : > { %v6892_v59 = vadd.f32 %v1237_v57, %v1009_v56  ;;  %v6894_v60 = vadd.f32 %v1266_v58, %v1038_v55  ;;  %v4617_v55 = vld [vmem:[#allocation9 + $0x1f0] sm:$0xf]  ;;  %v5459_v56 = vld [vmem:[#allocation9 + $0x1f4] sm:$0xf] }
 0x217   : > { %v1296_v63 = vpop.f32.mrf.mxu0 }
 0x218   : > { %v1316_v17 = vsub.f32 %v1296_v63, %v6773_v9  ;;  %v5458_v63 = vld [vmem:[#allocation9 + $0x1e4] sm:$0xf0] }
 0x21f   : > { %v1298_v14 = vpop.f32.mrf.mxu0 }
 0x220   : > { %v1317_v18 = vsub.f32 %v1298_v14, %v6776_v10  ;;  %v5457_v14 = vld [vmem:[#allocation9 + $0x1e4] sm:$0xf] }
 0x222   : > { %v1324_v20 = vpack.c.bf16 %v1317_v18, %v1316_v17 }
 0x224   : > { %1433 = vmatmul.bf16.vlgmr.msrb.gmra.mxu1 %v1324_v20  ;;  %1462 = vmatmul.bf16.vlgmr.msrb.gmra.mxu3 %v1324_v20 }
 0x227   : > { %v1301_v21 = vpop.f32.mrf.mxu0 }
 0x228   : > { %v1318_v30 = vsub.f32 %v1301_v21, %v6762_v6  ;;  %v5456_v21 = vld [vmem:[#allocation9 + $0x1d4] sm:$0xf0] }
 0x22f   : > { %v1303_v22 = vpop.f32.mrf.mxu0 }
 0x230   : > { %v1319_v3 = vsub.f32 %v1303_v22, %v6765_v7  ;;  %v5455_v22 = vld [vmem:[#allocation9 + $0x1d4] sm:$0xf] }
 0x232   : > { %v1325_v37 = vpack.c.bf16 %v1319_v3, %v1318_v30  ;;  %v4603_v3 = vld [vmem:[#allocation9 + $0x1d8] sm:$0xf0] }
 0x234   : > { %1438 = vmatmul.bf16.gmra.mxu1 %v1325_v37  ;;  %1467 = vmatmul.bf16.gmra.mxu3 %v1325_v37 }
 0x237   : > { %v1306_v38 = vpop.f32.mrf.mxu0 }
 0x238   : > { %v1320_v44 = vsub.f32 %v1306_v38, %v6747_v2  ;;  %v4593_v38 = vld [vmem:[#allocation9 + $0x1c0] sm:$0xf] }
 0x23f   : > { %v1308_v40 = vpop.f32.mrf.mxu0 }
 0x240   : > { %v1321_v9 = vsub.f32 %v1308_v40, %v6754_v4  ;;  %v5454_v40 = vld [vmem:[#allocation9 + $0x1c4] sm:$0xf0] }
 0x242   : > { %v1326_v45 = vpack.c.bf16 %v1321_v9, %v1320_v44  ;;  %v5453_v44 = vld [vmem:[#allocation9 + $0x1c4] sm:$0xf]  ;;  %v4594_v9 = vor.u32 %v5454_v40, %v4593_v38  ;;  %v4563_v38 = vld [vmem:[#allocation9 + $0x188] sm:$0xf0] }
 0x244   : > { %1443 = vmatmul.bf16.gmra.mxu1 %v1326_v45  ;;  %1472 = vmatmul.bf16.gmra.mxu3 %v1326_v45 }
 0x247   : > { %v1311_v10 = vpop.f32.mrf.mxu0 }
 0x248   : > { %v1322_v39 = vsub.f32 %v1311_v10, %v6741_v0  ;;  %v6914_v0 = vpop.f32.mrf.mxu1 }
 0x24f   : > { %v1313_v46 = vpop.f32.mrf.mxu0 }
 0x250   : > { %v1323_v6 = vsub.f32 %v1313_v46, %v6744_v1  ;;  %v4585_v46 = vld [vmem:[#allocation9 + $0x1b0] sm:$0xf] }
 0x252   : > { %v1327_v48 = vpack.c.bf16 %v1323_v6, %v1322_v39  ;;  %v5452_v39 = vld [vmem:[#allocation9 + $0x1b4] sm:$0xf0]  ;;  %v5451_v6 = vld [vmem:[#allocation9 + $0x1b4] sm:$0xf] }
 0x254   : > { %1448 = vmatmul.bf16.gmra.mxu1 %v1327_v48  ;;  %1477 = vmatmul.bf16.gmra.mxu3 %v1327_v48 }
 0x255   : > { %1503 = vmatpush.bf16.msra.mxu2 %v1327_v48 }
 0x259   : > { %1504 = vmatpush.bf16.msra.mxu2 %v1326_v45  ;;  %v4595_v45 = vld [vmem:[#allocation9 + $0x1c8] sm:$0xf0] }
 0x25a   : > { %v4598_v10 = vor.u32 %v5453_v44, %v4595_v45  ;;  %v6934_v45 = vpop.f32.mrf.mxu2 }
 0x25d   : > { %1505 = vmatpush.bf16.msra.mxu2 %v1325_v37  ;;  %v4606_v37 = vor.u32 %v5455_v22, %v4603_v3  ;;  %v4561_v22 = vld [vmem:[#allocation9 + $0x180] sm:$0xf]  ;;  %v5445_v3 = vld [vmem:[#allocation9 + $0x184] sm:$0xf] }
 0x25e   : > { %v4566_v40 = vor.u32 %v5445_v3, %v4563_v38  ;;  %v4657_v38 = vld [vmem:[#allocation9 + $0x240] sm:$0xf] }
 0x261   : > { %1506 = vmatpush.bf16.msra.mxu2 %v1324_v20 }
 0x264   : > { %4555 = vmatmul.msk.bf16.vlgmr.msra.gmra.mxu2 %vm1062_vm0, %v6784_v12 }
 0x274   : > { %4556 = vmatmul.msk.bf16.gmra.mxu2 %vm1062_vm0, %v6790_v13  ;;  %v5460_v13 = vld [vmem:[#allocation9 + $0x1f4] sm:$0xf0] }
 0x275   : > { %v4618_v57 = vor.u32 %v5460_v13, %v4617_v55 }
 0x277   : > { %1637 = vmatpush.bf16.msra.mxu0 %v4618_v57  ;;  %v5450_v57 = vld [vmem:[#allocation9 + $0x1a4] sm:$0xf0] }
 0x284   : > { %4557 = vmatmul.msk.bf16.gmra.mxu2 %vm1062_vm0, %v6795_v50  ;;  %v4619_v50 = vld [vmem:[#allocation9 + $0x1f8] sm:$0xf0] }
 0x285   : > { %v4622_v58 = vor.u32 %v5459_v56, %v4619_v50  ;;  %v4577_v56 = vld [vmem:[#allocation9 + $0x1a0] sm:$0xf]  ;;  %v5449_v50 = vld [vmem:[#allocation9 + $0x1a4] sm:$0xf] }
 0x287   : > { %1666 = vmatpush.bf16.msra.mxu1 %v4622_v58  ;;  %v4578_v58 = vor.u32 %v5450_v57, %v4577_v56  ;;  %v4681_v57 = vld [vmem:[#allocation9 + $0x270] sm:$0xf] }
 0x294   : > { %4558 = vmatmul.msk.bf16.gmra.mxu2 %vm1062_vm0, %v6800_v28  ;;  %v4609_v28 = vld [vmem:[#allocation9 + $0x1e0] sm:$0xf] }
 0x295   : > { %v4610_v17 = vor.u32 %v5458_v63, %v4609_v28  ;;  %v4579_v28 = vld [vmem:[#allocation9 + $0x1a8] sm:$0xf0] }
 0x296   : > { %v4582_v63 = vor.u32 %v5449_v50, %v4579_v28  ;;  %v5476_v50 = vld [vmem:[#allocation9 + $0x274] sm:$0xf0] }
 0x297   : > { %1638 = vmatpush.bf16.msra.mxu0 %v4610_v17  ;;  %v5448_v17 = vld [vmem:[#allocation9 + $0x194] sm:$0xf0]  ;;  %v4682_v28 = vor.u32 %v5476_v50, %v4681_v57 }
 0x299   : > { %1835 = vmatpush.bf16.msra.mxu3 %v4682_v28  ;;  %v5467_v28 = vld [vmem:[#allocation9 + $0x234] sm:$0xf] }
 0x2a1   : > { %v1434_v1 = vpop.f32.mrf.mxu1 }
 0x2a2   : > { %v6917_v2 = vadd.f32 %v1434_v1, %v6854_v42  ;;  %v4611_v42 = vld [vmem:[#allocation9 + $0x1e8] sm:$0xf0]  ;;  %v4586_v1 = vor.u32 %v5452_v39, %v4585_v46 }
 0x2a3   : > { %v4614_v18 = vor.u32 %v5457_v14, %v4611_v42  ;;  %v4569_v14 = vld [vmem:[#allocation9 + $0x190] sm:$0xf]  ;;  %v5447_v42 = vld [vmem:[#allocation9 + $0x194] sm:$0xf] }
 0x2a5   : > { %1667 = vmatpush.bf16.msra.mxu1 %v4614_v18 }
 0x2a9   : > { %v6919_v4 = vpop.f32.mrf.mxu1  ;;  %1668 = vmatpush.bf16.msra.mxu1 %v4606_v37 }
 0x2ad   : > { %1669 = vmatpush.bf16.msra.mxu1 %v4598_v10 }
 0x2b1   : > { %v1439_v7 = vpop.f32.mrf.mxu1 }
 0x2b2   : > { %v6922_v12 = vadd.f32 %v1439_v7, %v6868_v25  ;;  %v4601_v25 = vld [vmem:[#allocation9 + $0x1d0] sm:$0xf]  ;;  %v4587_v7 = vld [vmem:[#allocation9 + $0x1b8] sm:$0xf0] }
 0x2b3   : > { %v4602_v30 = vor.u32 %v5456_v21, %v4601_v25  ;;  %v4590_v13 = vor.u32 %v5451_v6, %v4587_v7  ;;  %v4570_v25 = vor.u32 %v5448_v17, %v4569_v14  ;;  %v4571_v21 = vld [vmem:[#allocation9 + $0x198] sm:$0xf0]  ;;  %v5474_v14 = vld [vmem:[#allocation9 + $0x264] sm:$0xf0]  ;;  %v5473_v17 = vld [vmem:[#allocation9 + $0x264] sm:$0xf] }
 0x2b5   : > { %1639 = vmatpush.bf16.msra.mxu0 %v4602_v30  ;;  %1670 = vmatpush.bf16.msra.mxu1 %v4590_v13  ;;  %v5446_v30 = vld [vmem:[#allocation9 + $0x184] sm:$0xf0] }
 0x2b6   : > { %v4562_v37 = vor.u32 %v5446_v30, %v4561_v22  ;;  %v5471_v22 = vld [vmem:[#allocation9 + $0x254] sm:$0xf]  ;;  %v4667_v30 = vld [vmem:[#allocation9 + $0x258] sm:$0xf0] }
 0x2b9   : > { %v6924_v20 = vpop.f32.mrf.mxu1  ;;  %1640 = vmatpush.bf16.msra.mxu0 %v4594_v9  ;;  %1671 = vmatpush.bf16.msra.mxu1 %v4582_v63  ;;  %v4683_v63 = vld [vmem:[#allocation9 + $0x278] sm:$0xf0] }
 0x2bd   : > { %1641 = vmatpush.bf16.msra.mxu0 %v4586_v1 }
 0x2c1   : > { %v1444_v48 = vpop.f32.mrf.mxu1  ;;  %1642 = vmatpush.bf16.msra.mxu0 %v4578_v58  ;;  %v5475_v58 = vld [vmem:[#allocation9 + $0x274] sm:$0xf] }
 0x2c2   : > { %v6927_v55 = vadd.f32 %v1444_v48, %v6882_v31  ;;  %v4574_v31 = vor.u32 %v5447_v42, %v4571_v21  ;;  %v4675_v42 = vld [vmem:[#allocation9 + $0x268] sm:$0xf0] }
 0x2c4   : > { %1672 = vmatpush.bf16.msra.mxu1 %v4574_v31  ;;  %v4665_v31 = vld [vmem:[#allocation9 + $0x250] sm:$0xf] }
 0x2c5   : > { %1643 = vmatpush.bf16.msra.mxu0 %v4570_v25 }
 0x2c8   : > { %1673 = vmatpush.bf16.msra.mxu1 %v4566_v40  ;;  %v5470_v40 = vld [vmem:[#allocation9 + $0x244] sm:$0xf0] }
 0x2c9   : > { %v6929_v18 = vpop.f32.mrf.mxu1  ;;  %1644 = vmatpush.bf16.msra.mxu0 %v4562_v37  ;;  %v4670_v37 = vor.u32 %v5471_v22, %v4667_v30  ;;  %v4635_v22 = vld [vmem:[#allocation9 + $0x218] sm:$0xf0] }
 0x2d1   : > { %v1449_v44 = vpop.f32.mrf.mxu1 }
 0x2d2   : > { %v6932_v9 = vadd.f32 %v1449_v44, %v6892_v59  ;;  %v5469_v44 = vld [vmem:[#allocation9 + $0x244] sm:$0xf] }
 0x2e7   : > { %v1508_v10 = vpop.f32.mrf.mxu2 }
 0x2e8   : > { %v1528_v39 = vsub.f32 %v1508_v10, %v6809_v15  ;;  %v4673_v15 = vld [vmem:[#allocation9 + $0x260] sm:$0xf]  ;;  %v4659_v10 = vld [vmem:[#allocation9 + $0x248] sm:$0xf0] }
 0x2e9   : > { %v4674_v21 = vor.u32 %v5474_v14, %v4673_v15  ;;  %v4641_v14 = vld [vmem:[#allocation9 + $0x220] sm:$0xf] }
 0x2eb   : > { %1836 = vmatpush.bf16.msra.mxu3 %v4674_v21 }
 0x2ef   : > { %v1510_v46 = vpop.f32.mrf.mxu2 }
 0x2f0   : > { %v1529_v6 = vsub.f32 %v1510_v46, %v6811_v16  ;;  %v4686_v16 = vor.u32 %v5475_v58, %v4683_v63  ;;  %v4649_v58 = vld [vmem:[#allocation9 + $0x230] sm:$0xf]  ;;  %v4651_v63 = vld [vmem:[#allocation9 + $0x238] sm:$0xf0] }
 0x2f1   : > { %v4654_v15 = vor.u32 %v5467_v28, %v4651_v63 }
 0x2f2   : > { %v1536_v48 = vpack.c.bf16 %v1529_v6, %v1528_v39  ;;  %1864 = vmatpush.bf16.msrb.mxu2 %v4686_v16  ;;  %v4658_v39 = vor.u32 %v5470_v40, %v4657_v38  ;;  %v5466_v16 = vld [vmem:[#allocation9 + $0x224] sm:$0xf0]  ;;  %v5461_v38 = vld [vmem:[#allocation9 + $0x204] sm:$0xf] }
 0x2f4   : > { %1645 = vmatmul.bf16.vlgmr.msra.gmra.mxu0 %v1536_v48  ;;  %1674 = vmatmul.bf16.vlgmr.msra.gmra.mxu1 %v1536_v48 }
 0x2f7   : > { %v1513_v1 = vpop.f32.mrf.mxu2 }
 0x2f8   : > { %v1530_v13 = vsub.f32 %v1513_v1, %v6817_v19  ;;  %v4678_v19 = vor.u32 %v5473_v17, %v4675_v42  ;;  %v4662_v1 = vor.u32 %v5469_v44, %v4659_v10  ;;  %v5465_v17 = vld [vmem:[#allocation9 + $0x224] sm:$0xf]  ;;  %v4642_v42 = vor.u32 %v5466_v16, %v4641_v14  ;;  %v4627_v44 = vld [vmem:[#allocation9 + $0x208] sm:$0xf0] }
 0x2f9   : > { %v4630_v10 = vor.u32 %v5461_v38, %v4627_v44 }
 0x2fa   : > { %1865 = vmatpush.bf16.msrb.mxu2 %v4678_v19  ;;  %v5464_v19 = vld [vmem:[#allocation9 + $0x214] sm:$0xf0] }
 0x2fe   : > { %1866 = vmatpush.bf16.msrb.mxu2 %v4670_v37  ;;  %v5462_v37 = vld [vmem:[#allocation9 + $0x204] sm:$0xf0] }
 0x2ff   : > { %v1515_v7 = vpop.f32.mrf.mxu2 }
 0x300   : > { %v1531_v56 = vsub.f32 %v1515_v7, %v6819_v8  ;;  %v5472_v8 = vld [vmem:[#allocation9 + $0x254] sm:$0xf0] }
 0x301   : > { %v4666_v3 = vor.u32 %v5472_v8, %v4665_v31  ;;  %v5463_v31 = vld [vmem:[#allocation9 + $0x214] sm:$0xf] }
 0x302   : > { %v1537_v59 = vpack.c.bf16 %v1531_v56, %v1530_v13  ;;  %1867 = vmatpush.bf16.msrb.mxu2 %v4662_v1  ;;  %v4638_v30 = vor.u32 %v5463_v31, %v4635_v22 }
 0x303   : > { %1837 = vmatpush.bf16.msra.mxu3 %v4666_v3  ;;  %v4625_v3 = vld [vmem:[#allocation9 + $0x200] sm:$0xf] }
 0x304   : > { %1650 = vmatmul.bf16.gmra.mxu0 %v1537_v59  ;;  %1679 = vmatmul.bf16.gmra.mxu1 %v1537_v59  ;;  %v4626_v40 = vor.u32 %v5462_v37, %v4625_v3 }
 0x306   : > { %1868 = vmatpush.bf16.msrb.mxu2 %v4654_v15 }
 0x307   : > { %v1518_v25 = vpop.f32.mrf.mxu2  ;;  %1838 = vmatpush.bf16.msra.mxu3 %v4658_v39  ;;  %v6946_v39 = vpop.f32.mrf.mxu1 }
 0x308   : > { %v1532_v6 = vsub.f32 %v1518_v25, %v6824_v23  ;;  %v5468_v23 = vld [vmem:[#allocation9 + $0x234] sm:$0xf0]  ;;  %v4643_v25 = vld [vmem:[#allocation9 + $0x228] sm:$0xf0] }
 0x309   : > { %v4646_v21 = vor.u32 %v5465_v17, %v4643_v25 }
 0x30b   : > { %1869 = vmatpush.bf16.msrb.mxu2 %v4646_v21 }
 0x30f   : > { %v1520_v46 = vpop.f32.mrf.mxu2  ;;  %1870 = vmatpush.bf16.msrb.mxu2 %v4638_v30 }
 0x310   : > { %v1533_v48 = vsub.f32 %v1520_v46, %v6826_v24  ;;  %v4650_v24 = vor.u32 %v5468_v23, %v4649_v58 }
 0x312   : > { %v1538_v7 = vpack.c.bf16 %v1533_v48, %v1532_v6  ;;  %1839 = vmatpush.bf16.msra.mxu3 %v4650_v24 }
 0x313   : > { %1871 = vmatpush.bf16.msrb.mxu2 %v4630_v10 }
 0x314   : > { %1655 = vmatmul.bf16.gmra.mxu0 %v1538_v7  ;;  %1684 = vmatmul.bf16.gmra.mxu1 %v1538_v7 }
 0x316   : > { %1840 = vmatpush.bf16.msra.mxu3 %v4642_v42 }
 0x317   : > { %v1523_v13 = vpop.f32.mrf.mxu2 }
 0x318   : > { %v1534_v59 = vsub.f32 %v1523_v13, %v6830_v27  ;;  %v6944_v27 = vpop.f32.mrf.mxu3 }
 0x31f   : > { %v1525_v56 = vpop.f32.mrf.mxu2 }
 0x320   : > { %v1535_v57 = vsub.f32 %v1525_v56, %v6832_v29  ;;  %v4633_v29 = vld [vmem:[#allocation9 + $0x210] sm:$0xf]  ;;  %v1463_v46 = vpop.f32.mrf.mxu3  ;;  %v996_v56 = vadd.f32 %v6844_v32, %v6850_v36 }
 0x321   : > { %v4634_v8 = vor.u32 %v5464_v19, %v4633_v29  ;;  %v1484_v7 = vadd.f32 %v1463_v46, %v6856_v43  ;;  %v1030_v29 = vadd.f32 %v6864_v62, %v6848_v35 }
 0x322   : > { %v1539_v50 = vpack.c.bf16 %v1535_v57, %v1534_v59  ;;  %v1025_v59 = vadd.f32 %v6846_v33, %v6848_v35  ;;  %v1273_v23 = vadd.f32 %v6858_v52, %v996_v56 }
 0x323   : > { %1841 = vmatpush.bf16.msra.mxu3 %v4634_v8 }
 0x324   : > { %1660 = vmatmul.bf16.gmra.mxu0 %v1539_v50  ;;  %1689 = vmatmul.bf16.gmra.mxu1 %v1539_v50  ;;  %v1274_v24 = vadd.f32 %v6860_v53, %v1025_v59  ;;  %v1485_v63 = vadd.f32 %v6919_v4, %v1273_v23  ;;  %v1001_v4 = vadd.f32 %v6862_v54, %v6850_v36 }
 0x326   : > { %v1277_v8 = vadd.f32 %v6872_v49, %v1001_v4 }
 0x327   : > { %1842 = vmatpush.bf16.msra.mxu3 %v4626_v40 }
 0x328   : > { %v1465_v6 = vpop.f32.mrf.mxu3 }
 0x330   : > { %v1468_v57 = vpop.f32.mrf.mxu3 }
 0x331   : > { %v1488_v21 = vadd.f32 %v1468_v57, %v6870_v26  ;;  %v1278_v26 = vadd.f32 %v6874_v51, %v1030_v29  ;;  %v7024_v29 = vld [vmem:[%s6695_s8 + $0x10] sm:$0xff] }
 0x338   : > { %v1470_v17 = vpop.f32.mrf.mxu3 }
 0x339   : > { %v1490_v38 = vadd.f32 %v1470_v17, %v1278_v26 }
 0x340   : > { %v1473_v30 = vpop.f32.mrf.mxu3 }
 0x371   : > { %v1646_v48 = vpop.f32.mrf.mxu0  ;;  %v1675_v1 = vpop.f32.mrf.mxu1 }
 0x372   : > { %v1695_v13 = vadd.f32 %v1646_v48, %v6917_v2  ;;  %v1696_v58 = vadd.f32 %v1675_v1, %v1484_v7  ;;  %v1486_v2 = vadd.f32 %v1465_v6, %v1274_v24  ;;  %v1492_v6 = vadd.f32 %v1473_v30, %v6884_v34 }
 0x373   : > { %v1006_v48 = vadd.f32 %v6876_v11, %v6850_v36  ;;  %v1035_v1 = vadd.f32 %v6880_v5, %v6848_v35 }
 0x374   : > { %v1711_v50 = vmax.f32 %v1695_v13, 0.0 }
 0x375   : > { %v1281_v56 = vadd.f32 %v6886_v41, %v1006_v48  ;;  %v1282_v57 = vadd.f32 %v6888_v47, %v1035_v1  ;;  %v4725_v48 = vld [vmem:[#allocation9 + $0x2c0] sm:$0xf]  ;;  %v5486_v1 = vld [vmem:[#allocation9 + $0x2c4] sm:$0xf0] }
 0x376   : > { %v6955_v28 = vadd.f32 %v1711_v50, %v1696_v58 }
 0x377   : > { %v1493_v34 = vadd.f32 %v6929_v18, %v1281_v56  ;;  %v1011_v18 = vadd.f32 %v6896_v61, %v6850_v36  ;;  %v4727_v56 = vld [vmem:[#allocation9 + $0x2c8] sm:$0xf0] }
 0x379   : > { %v1648_v43 = vpop.f32.mrf.mxu0  ;;  %v1677_v15 = vpop.f32.mrf.mxu1  ;;  %v1285_v17 = vadd.f32 %v6944_v27, %v1011_v18  ;;  %v5480_v18 = vld [vmem:[#allocation9 + $0x294] sm:$0xf0] }
 0x37a   : > { %v1697_v14 = vadd.f32 %v1648_v43, %v1485_v63  ;;  %v1698_v32 = vadd.f32 %v1677_v15, %v1486_v2 }
 0x37c   : > { %v1712_v16 = vmax.f32 %v1697_v14, 0.0  ;;  %v1040_v14 = vadd.f32 %v6914_v0, %v6848_v35 }
 0x37e   : > { %v6959_v42 = vadd.f32 %v1712_v16, %v1698_v32 }
 0x380   : > { %v6963_v33 = vpack.c.bf16 %v6959_v42, %v6955_v28 }
 0x381   : > { %v1651_v52 = vpop.f32.mrf.mxu0  ;;  %v1680_v25 = vpop.f32.mrf.mxu1 }
 0x382   : > { %v1699_v53 = vadd.f32 %v1651_v52, %v6922_v12  ;;  %1843 = vmatmul.bf16.vlgmr.msra.gmra.mxu3 %v6963_v33  ;;  %1872 = vmatmul.bf16.vlgmr.msrb.gmra.mxu2 %v6963_v33  ;;  %v1700_v31 = vadd.f32 %v1680_v25, %v1488_v21  ;;  %v1489_v12 = vadd.f32 %v6924_v20, %v1277_v8  ;;  %v1475_v20 = vpop.f32.mrf.mxu3  ;;  %v5491_v8 = vld [vmem:[#allocation9 + $0x2f4] sm:$0xf] }
 0x383   : > { %v1494_v58 = vadd.f32 %v1475_v20, %v1282_v57  ;;  %v1286_v21 = vadd.f32 %v6934_v45, %v1040_v14  ;;  %v7014_v45 = vld [vmem:[%s6695_s8] sm:$0xff]  ;;  %v4717_v57 = vld [vmem:[#allocation9 + $0x2b0] sm:$0xf]  ;;  %v5479_v14 = vld [vmem:[#allocation9 + $0x294] sm:$0xf] }
 0x384   : > { %v1713_v19 = vmax.f32 %v1699_v53, 0.0 }
 0x386   : > { %v6974_v22 = vadd.f32 %v1713_v19, %v1700_v31  ;;  %v7029_v19 = vld [vmem:[%s6695_s8 + $0x18] sm:$0xff] }
 0x387   : > { %v5492_v31 = vld [vmem:[#allocation9 + $0x2f4] sm:$0xf0] }
 0x389   : > { %v1653_v3 = vpop.f32.mrf.mxu0  ;;  %v1682_v37 = vpop.f32.mrf.mxu1 }
 0x38a   : > { %v1701_v40 = vadd.f32 %v1653_v3, %v1489_v12  ;;  %v1702_v54 = vadd.f32 %v1682_v37, %v1490_v38  ;;  %v1478_v11 = vpop.f32.mrf.mxu3  ;;  %v4751_v12 = vld [vmem:[#allocation9 + $0x2f8] sm:$0xf0]  ;;  %v4741_v3 = vld [vmem:[#allocation9 + $0x2e0] sm:$0xf]  ;;  %v5490_v37 = vld [vmem:[#allocation9 + $0x2e4] sm:$0xf0] }
 0x38b   : > { %v1496_v2 = vadd.f32 %v1478_v11, %v6894_v60  ;;  %v1497_v60 = vadd.f32 %v6946_v39, %v1285_v17  ;;  %v7019_v39 = vld [vmem:[%s6695_s8 + $0x8] sm:$0xff]  ;;  %v4754_v30 = vor.u32 %v5491_v8, %v4751_v12  ;;  %v5489_v38 = vld [vmem:[#allocation9 + $0x2e4] sm:$0xf] }
 0x38c   : > { %v1714_v44 = vmax.f32 %v1701_v40, 0.0  ;;  %v4742_v40 = vor.u32 %v5490_v37, %v4741_v3  ;;  %v5482_v11 = vld [vmem:[#allocation9 + $0x2a4] sm:$0xf0] }
 0x38d   : > { %2060 = vmatpush.bf16.msrb.mxu3 %v4754_v30 }
 0x38e   : > { %v6978_v10 = vadd.f32 %v1714_v44, %v1702_v54  ;;  %v4743_v44 = vld [vmem:[#allocation9 + $0x2e8] sm:$0xf0]  ;;  %v4733_v54 = vld [vmem:[#allocation9 + $0x2d0] sm:$0xf] }
 0x390   : > { %v1730_v62 = vpack.c.bf16 %v6978_v10, %v6974_v22 }
 0x391   : > { %v1656_v46 = vpop.f32.mrf.mxu0  ;;  %v1685_v49 = vpop.f32.mrf.mxu1 }
 0x392   : > { %v1703_v51 = vadd.f32 %v1656_v46, %v6927_v55  ;;  %1848 = vmatmul.bf16.gmra.mxu3 %v1730_v62  ;;  %1877 = vmatmul.bf16.gmra.mxu2 %v1730_v62  ;;  %v1704_v13 = vadd.f32 %v1685_v49, %v1492_v6  ;;  %v1480_v25 = vpop.f32.mrf.mxu3  ;;  %v4746_v46 = vor.u32 %v5489_v38, %v4743_v44  ;;  %v5487_v49 = vld [vmem:[#allocation9 + $0x2d4] sm:$0xf]  ;;  %v4735_v6 = vld [vmem:[#allocation9 + $0x2d8] sm:$0xf0] }
 0x393   : > { %v1498_v4 = vadd.f32 %v1480_v25, %v1286_v21  ;;  %v4738_v20 = vor.u32 %v5487_v49, %v4735_v6  ;;  %v4693_v25 = vld [vmem:[#allocation9 + $0x280] sm:$0xf]  ;;  %v5478_v21 = vld [vmem:[#allocation9 + $0x284] sm:$0xf0] }
 0x394   : > { %v1715_v7 = vmax.f32 %v1703_v51, 0.0  ;;  %2061 = vmatpush.bf16.msrb.mxu3 %v4746_v46 }
 0x396   : > { %v6989_v59 = vadd.f32 %v1715_v7, %v1704_v13  ;;  %v5485_v7 = vld [vmem:[#allocation9 + $0x2c4] sm:$0xf]  ;;  %v4726_v13 = vor.u32 %v5486_v1, %v4725_v48 }
 0x398   : > { %2062 = vmatpush.bf16.msrb.mxu3 %v4738_v20 }
 0x399   : > { %v1658_v55 = vpop.f32.mrf.mxu0  ;;  %v1687_v50 = vpop.f32.mrf.mxu1 }
 0x39a   : > { %v1705_v23 = vadd.f32 %v1658_v55, %v1493_v34  ;;  %v1706_v63 = vadd.f32 %v1687_v50, %v1494_v58  ;;  %v5484_v34 = vld [vmem:[#allocation9 + $0x2b4] sm:$0xf0]  ;;  %v4730_v55 = vor.u32 %v5485_v7, %v4727_v56  ;;  %v5483_v50 = vld [vmem:[#allocation9 + $0x2b4] sm:$0xf]  ;;  %v4719_v58 = vld [vmem:[#allocation9 + $0x2b8] sm:$0xf0] }
 0x39c   : > { %v1716_v24 = vmax.f32 %v1705_v23, 0.0  ;;  %v4718_v23 = vor.u32 %v5484_v34, %v4717_v57  ;;  %2063 = vmatpush.bf16.msrb.mxu3 %v4730_v55  ;;  %v1728_v34 = vld [vmem:[#allocation10 + $0x2] sm:$0x3] }
 0x39d   : > { %v7073_v55 = vperm.slane %v1728_v34, 0 }
 0x39e   : > { %v6993_v43 = vadd.f32 %v1716_v24, %v1706_v63  ;;  %v4722_v24 = vor.u32 %v5483_v50, %v4719_v58  ;;  %v4709_v63 = vld [vmem:[#allocation9 + $0x2a0] sm:$0xf] }
 0x3a0   : > { %v1731_v5 = vpack.c.bf16 %v6993_v43, %v6989_v59  ;;  %2064 = vmatpush.bf16.msrb.mxu3 %v4722_v24 }
 0x3a1   : > { %v1661_v15 = vpop.f32.mrf.mxu0  ;;  %v1690_v41 = vpop.f32.mrf.mxu1 }
 0x3a2   : > { %v1707_v47 = vadd.f32 %v1661_v15, %v6932_v9  ;;  %1853 = vmatmul.bf16.gmra.mxu3 %v1731_v5  ;;  %1882 = vmatmul.bf16.gmra.mxu2 %v1731_v5  ;;  %v1708_v32 = vadd.f32 %v1690_v41, %v1496_v2  ;;  %v4710_v15 = vor.u32 %v5482_v11, %v4709_v63  ;;  %v4711_v41 = vld [vmem:[#allocation9 + $0x2a8] sm:$0xf0]  ;;  %v7080_v63 = vperm.slane %v1728_v34, 1 }
 0x3a4   : > { %v1717_v16 = vmax.f32 %v1707_v47, 0.0  ;;  %v4701_v47 = vld [vmem:[#allocation9 + $0x290] sm:$0xf] }
 0x3a6   : > { %v7004_v52 = vadd.f32 %v1717_v16, %v1708_v32  ;;  %v4702_v16 = vor.u32 %v5480_v18, %v4701_v47  ;;  %v4703_v32 = vld [vmem:[#allocation9 + $0x298] sm:$0xf0] }
 0x3a7   : > { %v4706_v17 = vor.u32 %v5479_v14, %v4703_v32 }
 0x3a9   : > { %v1663_v9 = vpop.f32.mrf.mxu0  ;;  %v1692_v53 = vpop.f32.mrf.mxu1 }
 0x3aa   : > { %v1709_v36 = vadd.f32 %v1663_v9, %v1497_v60  ;;  %v1710_v35 = vadd.f32 %v1692_v53, %v1498_v4  ;;  %v5477_v60 = vld [vmem:[#allocation9 + $0x284] sm:$0xf]  ;;  %v4694_v9 = vor.u32 %v5478_v21, %v4693_v25  ;;  %v4695_v53 = vld [vmem:[#allocation9 + $0x288] sm:$0xf0]  ;;  %v5508_v25 = vld [vmem:[#allocation9 + $0x374] sm:$0xf0] }
 0x3ab   : > { %v4698_v4 = vor.u32 %v5477_v60, %v4695_v53  ;;  %v5507_v21 = vld [vmem:[#allocation9 + $0x374] sm:$0xf] }
 0x3ac   : > { %v1718_v61 = vmax.f32 %v1709_v36, 0.0 }
 0x3ae   : > { %v7008_v0 = vadd.f32 %v1718_v61, %v1710_v35 }
 0x3b0   : > { %v1732_v27 = vpack.c.bf16 %v7008_v0, %v7004_v52 }
 0x3b2   : > { %1858 = vmatmul.bf16.gmra.mxu3 %v1732_v27  ;;  %1887 = vmatmul.bf16.gmra.mxu2 %v1732_v27 }
 0x3b3   : > { %1897 = vmatpush.bf16.msrb.mxu0 %v1732_v27 }
 0x3b7   : > { %1898 = vmatpush.bf16.msrb.mxu0 %v1731_v5  ;;  %v5481_v5 = vld [vmem:[#allocation9 + $0x2a4] sm:$0xf] }
 0x3b8   : > { %v4714_v2 = vor.u32 %v5481_v5, %v4711_v41 }
 0x3ba   : > { %2065 = vmatpush.bf16.msrb.mxu3 %v4714_v2 }
 0x3bb   : > { %1899 = vmatpush.bf16.msrb.mxu0 %v1730_v62  ;;  %v5488_v62 = vld [vmem:[#allocation9 + $0x2d4] sm:$0xf0] }
 0x3bc   : > { %v4734_v51 = vor.u32 %v5488_v62, %v4733_v54 }
 0x3be   : > { %2066 = vmatpush.bf16.msrb.mxu3 %v4706_v17  ;;  %v4817_v17 = vld [vmem:[#allocation9 + $0x370] sm:$0xf] }
 0x3bf   : > { %1900 = vmatpush.bf16.msrb.mxu0 %v6963_v33  ;;  %v4749_v33 = vld [vmem:[#allocation9 + $0x2f0] sm:$0xf]  ;;  %v4818_v60 = vor.u32 %v5508_v25, %v4817_v17 }
 0x3c0   : > { %v4750_v26 = vor.u32 %v5492_v31, %v4749_v33 }
 0x3c2   : > { %4687 = vmatmul.msk.bf16.vlgmr.msrb.gmra.mxu0 %vm1062_vm0, %v7014_v45  ;;  %2031 = vmatpush.bf16.msrb.mxu1 %v4750_v26 }
 0x3c3   : > { %2067 = vmatpush.bf16.msrb.mxu3 %v4698_v4  ;;  %2243 = vmatpush.bf16.msra.mxu0 %v4818_v60  ;;  %v5500_v60 = vld [vmem:[#allocation9 + $0x334] sm:$0xf0] }
 0x3c6   : > { %2032 = vmatpush.bf16.msrb.mxu1 %v4742_v40 }
 0x3ca   : > { %2033 = vmatpush.bf16.msrb.mxu1 %v4734_v51 }
 0x3ce   : > { %2034 = vmatpush.bf16.msrb.mxu1 %v4726_v13 }
 0x3d2   : > { %4688 = vmatmul.msk.bf16.gmra.mxu0 %vm1062_vm0, %v7019_v39  ;;  %2035 = vmatpush.bf16.msrb.mxu1 %v4718_v23 }
 0x3d6   : > { %2036 = vmatpush.bf16.msrb.mxu1 %v4710_v15 }
 0x3da   : > { %2037 = vmatpush.bf16.msrb.mxu1 %v4702_v16 }
 0x3de   : > { %2038 = vmatpush.bf16.msrb.mxu1 %v4694_v9  ;;  %v4819_v9 = vld [vmem:[#allocation9 + $0x378] sm:$0xf0] }
 0x3df   : > { %v4822_v53 = vor.u32 %v5507_v21, %v4819_v9  ;;  %v4785_v21 = vld [vmem:[#allocation9 + $0x330] sm:$0xf]  ;;  %v5499_v9 = vld [vmem:[#allocation9 + $0x334] sm:$0xf] }
 0x3e2   : > { %4689 = vmatmul.msk.bf16.gmra.mxu0 %vm1062_vm0, %v7024_v29  ;;  %2272 = vmatpush.bf16.msra.mxu1 %v4822_v53 }
 0x3f2   : > { %4690 = vmatmul.msk.bf16.gmra.mxu0 %vm1062_vm0, %v7029_v19 }
 0x405   : > { %v1844_v51 = vpop.f32.mrf.mxu3  ;;  %v1873_v57 = vpop.f32.mrf.mxu2 }
 0x406   : > { %v1845_v58 = vadd.f32 %v1844_v51, %v7073_v55  ;;  %v1874_v5 = vadd.f32 %v1873_v57, %v7080_v63  ;;  %v5503_v51 = vld [vmem:[#allocation9 + $0x354] sm:$0xf]  ;;  %v4803_v57 = vld [vmem:[#allocation9 + $0x358] sm:$0xf0] }
 0x407   : > { %v4806_v34 = vor.u32 %v5503_v51, %v4803_v57  ;;  %v4769_v57 = vld [vmem:[#allocation9 + $0x310] sm:$0xf] }
 0x40d   : > { %v7057_v20 = vpop.f32.mrf.mxu3  ;;  %v7078_v23 = vpop.f32.mrf.mxu2 }
 0x415   : > { %v1849_v48 = vpop.f32.mrf.mxu3  ;;  %v1878_v47 = vpop.f32.mrf.mxu2 }
 0x416   : > { %v1850_v14 = vadd.f32 %v1849_v48, %v7073_v55 }
 0x41d   : > { %v7063_v1 = vpop.f32.mrf.mxu3  ;;  %v7094_v4 = vpop.f32.mrf.mxu2 }
 0x425   : > { %v1854_v7 = vpop.f32.mrf.mxu3 }
 0x426   : > { %v1855_v17 = vadd.f32 %v1854_v7, %v7073_v55 }
 0x42d   : > { %v7067_v13 = vpop.f32.mrf.mxu3 }
 0x435   : > { %v7071_v56 = vpop.f32.mrf.mxu3 }
 0x43d   : > { %v7075_v50 = vpop.f32.mrf.mxu3 }
 0x43f   : > { %v1902_v36 = vpop.f32.mrf.mxu0 }
 0x440   : > { %v7033_v35 = vmul.f32 0.5, %v1902_v36  ;;  %v1879_v36 = vadd.f32 %v1878_v47, %v7080_v63 }
 0x447   : > { %v1904_v61 = vpop.f32.mrf.mxu0 }
 0x448   : > { %v7035_v27 = vmul.f32 0.5, %v1904_v61  ;;  %v4809_v61 = vld [vmem:[#allocation9 + $0x360] sm:$0xf] }
 0x44a   : > { %v1930_v33 = vpack.c.bf16 %v7035_v27, %v7033_v35 }
 0x44c   : > { %2039 = vmatmul.bf16.vlgmr.msrb.gmra.mxu1 %v1930_v33  ;;  %2068 = vmatmul.bf16.vlgmr.msrb.gmra.mxu3 %v1930_v33 }
 0x44f   : > { %v1907_v31 = vpop.f32.mrf.mxu0 }
 0x450   : > { %v7039_v26 = vmul.f32 0.5, %v1907_v31  ;;  %v5505_v31 = vld [vmem:[#allocation9 + $0x364] sm:$0xf] }
 0x457   : > { %v1909_v8 = vpop.f32.mrf.mxu0 }
 0x458   : > { %v7041_v12 = vmul.f32 0.5, %v1909_v8 }
 0x45a   : > { %v1931_v30 = vpack.c.bf16 %v7041_v12, %v7039_v26 }
 0x45c   : > { %2044 = vmatmul.bf16.gmra.mxu1 %v1931_v30  ;;  %2073 = vmatmul.bf16.gmra.mxu3 %v1931_v30 }
 0x45f   : > { %v1912_v3 = vpop.f32.mrf.mxu0 }
 0x460   : > { %v7045_v38 = vmul.f32 0.5, %v1912_v3  ;;  %v4811_v3 = vld [vmem:[#allocation9 + $0x368] sm:$0xf0] }
 0x467   : > { %v1914_v37 = vpop.f32.mrf.mxu0 }
 0x468   : > { %v7047_v40 = vmul.f32 0.5, %v1914_v37 }
 0x46a   : > { %v1932_v44 = vpack.c.bf16 %v7047_v40, %v7045_v38 }
 0x46c   : > { %2049 = vmatmul.bf16.gmra.mxu1 %v1932_v44  ;;  %2078 = vmatmul.bf16.gmra.mxu3 %v1932_v44 }
 0x46f   : > { %v1917_v54 = vpop.f32.mrf.mxu0 }
 0x470   : > { %v7051_v46 = vmul.f32 0.5, %v1917_v54 }
 0x477   : > { %v1919_v62 = vpop.f32.mrf.mxu0 }
 0x478   : > { %v7053_v49 = vmul.f32 0.5, %v1919_v62  ;;  %v4801_v62 = vld [vmem:[#allocation9 + $0x350] sm:$0xf] }
 0x47a   : > { %v1933_v6 = vpack.c.bf16 %v7053_v49, %v7051_v46 }
 0x47c   : > { %2054 = vmatmul.bf16.gmra.mxu1 %v1933_v6  ;;  %2083 = vmatmul.bf16.gmra.mxu3 %v1933_v6 }
 0x47d   : > { %2109 = vmatpush.bf16.msra.mxu2 %v1933_v6  ;;  %v5504_v6 = vld [vmem:[#allocation9 + $0x354] sm:$0xf0] }
 0x47e   : > { %v4802_v48 = vor.u32 %v5504_v6, %v4801_v62  ;;  %v4779_v6 = vld [vmem:[#allocation9 + $0x328] sm:$0xf0] }
 0x481   : > { %2110 = vmatpush.bf16.msra.mxu2 %v1932_v44  ;;  %v4814_v44 = vor.u32 %v5505_v31, %v4811_v3  ;;  %v5498_v3 = vld [vmem:[#allocation9 + $0x324] sm:$0xf0] }
 0x483   : > { %2273 = vmatpush.bf16.msra.mxu1 %v4814_v44  ;;  %v5497_v44 = vld [vmem:[#allocation9 + $0x324] sm:$0xf] }
 0x485   : > { %2111 = vmatpush.bf16.msra.mxu2 %v1931_v30 }
 0x487   : > { %2274 = vmatpush.bf16.msra.mxu1 %v4806_v34  ;;  %v5496_v34 = vld [vmem:[#allocation9 + $0x314] sm:$0xf0] }
 0x489   : > { %2112 = vmatpush.bf16.msra.mxu2 %v1930_v33  ;;  %v5506_v33 = vld [vmem:[#allocation9 + $0x364] sm:$0xf0] }
 0x48a   : > { %v4810_v30 = vor.u32 %v5506_v33, %v4809_v61  ;;  %v4787_v61 = vld [vmem:[#allocation9 + $0x338] sm:$0xf0] }
 0x48b   : > { %v4790_v31 = vor.u32 %v5499_v9, %v4787_v61 }
 0x48c   : > { %4755 = vmatmul.msk.bf16.vlgmr.msra.gmra.mxu2 %vm1062_vm0, %v7014_v45  ;;  %2244 = vmatpush.bf16.msra.mxu0 %v4810_v30  ;;  %v4777_v30 = vld [vmem:[#allocation9 + $0x320] sm:$0xf] }
 0x48d   : > { %v4778_v62 = vor.u32 %v5498_v3, %v4777_v30 }
 0x490   : > { %2245 = vmatpush.bf16.msra.mxu0 %v4802_v48  ;;  %v4782_v48 = vor.u32 %v5497_v44, %v4779_v6 }
 0x49c   : > { %4756 = vmatmul.msk.bf16.gmra.mxu2 %vm1062_vm0, %v7019_v39 }
 0x4ac   : > { %4757 = vmatmul.msk.bf16.gmra.mxu2 %vm1062_vm0, %v7024_v29 }
 0x4bc   : > { %4758 = vmatmul.msk.bf16.gmra.mxu2 %vm1062_vm0, %v7029_v19 }
 0x4c9   : > { %v2040_v24 = vpop.f32.mrf.mxu1 }
 0x4ca   : > { %v7082_v11 = vadd.f32 %v2040_v24, %v1845_v58  ;;  %v4793_v58 = vld [vmem:[#allocation9 + $0x340] sm:$0xf]  ;;  %v5502_v24 = vld [vmem:[#allocation9 + $0x344] sm:$0xf0] }
 0x4cf   : > { %v2069_v15 = vpop.f32.mrf.mxu3 }
 0x4d0   : > { %v7085_v41 = vadd.f32 %v2069_v15, %v1874_v5  ;;  %v5501_v5 = vld [vmem:[#allocation9 + $0x344] sm:$0xf]  ;;  %v1883_v15 = vpop.f32.mrf.mxu2 }
 0x4d1   : > { %v7087_v2 = vpop.f32.mrf.mxu1 }
 0x4d7   : > { %v7089_v18 = vpop.f32.mrf.mxu3 }
 0x4d9   : > { %v2045_v16 = vpop.f32.mrf.mxu1 }
 0x4da   : > { %v7092_v32 = vadd.f32 %v2045_v16, %v1850_v14  ;;  %v4794_v14 = vor.u32 %v5502_v24, %v4793_v58  ;;  %v4795_v16 = vld [vmem:[#allocation9 + $0x348] sm:$0xf0]  ;;  %v5495_v58 = vld [vmem:[#allocation9 + $0x314] sm:$0xf]  ;;  %v7109_v24 = vpop.f32.mrf.mxu2 }
 0x4db   : > { %v4798_v25 = vor.u32 %v5501_v5, %v4795_v16 }
 0x4dc   : > { %2246 = vmatpush.bf16.msra.mxu0 %v4794_v14  ;;  %v4770_v14 = vor.u32 %v5496_v34, %v4769_v57 }
 0x4dd   : > { %2275 = vmatpush.bf16.msra.mxu1 %v4798_v25  ;;  %v5494_v25 = vld [vmem:[#allocation9 + $0x304] sm:$0xf0] }
 0x4df   : > { %v2074_v8 = vpop.f32.mrf.mxu3 }
 0x4e0   : > { %v7097_v37 = vadd.f32 %v2074_v8, %v1879_v36  ;;  %v4786_v36 = vor.u32 %v5500_v60, %v4785_v21  ;;  %v1884_v8 = vadd.f32 %v1883_v15, %v7080_v63  ;;  %v4771_v15 = vld [vmem:[#allocation9 + $0x318] sm:$0xf0]  ;;  %v5493_v21 = vld [vmem:[#allocation9 + $0x304] sm:$0xf] }
 0x4e1   : > { %v7099_v54 = vpop.f32.mrf.mxu1  ;;  %2276 = vmatpush.bf16.msra.mxu1 %v4790_v31  ;;  %v4774_v16 = vor.u32 %v5495_v58, %v4771_v15 }
 0x4e2   : > { %2247 = vmatpush.bf16.msra.mxu0 %v4786_v36  ;;  %v1860_v36 = vadd.f32 %v7071_v56, %v7073_v55  ;;  %v1888_v30 = vpop.f32.mrf.mxu2 }
 0x4e3   : > { %v1889_v3 = vadd.f32 %v1888_v30, %v7080_v63  ;;  %v5524_v30 = vld [vmem:[#allocation9 + $0x3f4] sm:$0xf0] }
 0x4e5   : > { %2277 = vmatpush.bf16.msra.mxu1 %v4782_v48 }
 0x4e6   : > { %2248 = vmatpush.bf16.msra.mxu0 %v4778_v62 }
 0x4e7   : > { %v7101_v47 = vpop.f32.mrf.mxu3 }
 0x4e9   : > { %v2050_v53 = vpop.f32.mrf.mxu1  ;;  %2278 = vmatpush.bf16.msra.mxu1 %v4774_v16 }
 0x4ea   : > { %v7104_v33 = vadd.f32 %v2050_v53, %v1855_v17  ;;  %2249 = vmatpush.bf16.msra.mxu0 %v4770_v14  ;;  %v4761_v17 = vld [vmem:[#allocation9 + $0x300] sm:$0xf]  ;;  %v4763_v53 = vld [vmem:[#allocation9 + $0x308] sm:$0xf0]  ;;  %v7122_v62 = vpop.f32.mrf.mxu2 }
 0x4eb   : > { %v4762_v9 = vor.u32 %v5494_v25, %v4761_v17  ;;  %v4766_v61 = vor.u32 %v5493_v21, %v4763_v53 }
 0x4ed   : > { %2279 = vmatpush.bf16.msra.mxu1 %v4766_v61 }
 0x4ee   : > { %2250 = vmatpush.bf16.msra.mxu0 %v4762_v9 }
 0x4ef   : > { %v2079_v7 = vpop.f32.mrf.mxu3 }
 0x4f0   : > { %v7107_v51 = vadd.f32 %v2079_v7, %v1884_v8 }
 0x4f1   : > { %v7111_v5 = vpop.f32.mrf.mxu1 }
 0x4f7   : > { %v7113_v60 = vpop.f32.mrf.mxu3 }
 0x4f9   : > { %v2055_v31 = vpop.f32.mrf.mxu1 }
 0x4fa   : > { %v7117_v8 = vadd.f32 %v2055_v31, %v1860_v36 }
 0x4ff   : > { %v2084_v44 = vpop.f32.mrf.mxu3 }
 0x500   : > { %v7120_v7 = vadd.f32 %v2084_v44, %v1889_v3  ;;  %v5523_v3 = vld [vmem:[#allocation9 + $0x3f4] sm:$0xf]  ;;  %v4887_v44 = vld [vmem:[#allocation9 + $0x3f8] sm:$0xf0] }
 0x50f   : > { %v2114_v6 = vpop.f32.mrf.mxu2 }
 0x510   : > { %v2134_v57 = vsub.f32 %v2114_v6, %v6955_v28  ;;  %v4877_v6 = vld [vmem:[#allocation9 + $0x3e0] sm:$0xf] }
 0x517   : > { %v2116_v48 = vpop.f32.mrf.mxu2 }
 0x518   : > { %v2135_v56 = vsub.f32 %v2116_v48, %v6959_v42  ;;  %v4890_v48 = vor.u32 %v5523_v3, %v4887_v44  ;;  %v4845_v3 = vld [vmem:[#allocation9 + $0x3a0] sm:$0xf]  ;;  %v5513_v44 = vld [vmem:[#allocation9 + $0x3a4] sm:$0xf] }
 0x51a   : > { %v2142_v34 = vpack.c.bf16 %v2135_v56, %v2134_v57  ;;  %v5521_v57 = vld [vmem:[#allocation9 + $0x3e4] sm:$0xf]  ;;  %2484 = vmatpush.bf16.msrb.mxu0 %v4890_v48 }
 0x51c   : > { %2251 = vmatmul.bf16.vlgmr.msra.gmra.mxu0 %v2142_v34  ;;  %2280 = vmatmul.bf16.vlgmr.msra.gmra.mxu1 %v2142_v34 }
 0x51f   : > { %v2119_v58 = vpop.f32.mrf.mxu2 }
 0x520   : > { %v2136_v15 = vsub.f32 %v2119_v58, %v6974_v22  ;;  %v5520_v58 = vld [vmem:[#allocation9 + $0x3d4] sm:$0xf0] }
 0x527   : > { %v2121_v14 = vpop.f32.mrf.mxu2 }
 0x528   : > { %v2137_v16 = vsub.f32 %v2121_v14, %v6978_v10  ;;  %v5519_v14 = vld [vmem:[#allocation9 + $0x3d4] sm:$0xf] }
 0x52a   : > { %v2143_v17 = vpack.c.bf16 %v2137_v16, %v2136_v15  ;;  %v4871_v16 = vld [vmem:[#allocation9 + $0x3d8] sm:$0xf0] }
 0x52c   : > { %2256 = vmatmul.bf16.gmra.mxu0 %v2143_v17  ;;  %2285 = vmatmul.bf16.gmra.mxu1 %v2143_v17 }
 0x52f   : > { %v2124_v25 = vpop.f32.mrf.mxu2 }
 0x530   : > { %v2138_v9 = vsub.f32 %v2124_v25, %v6989_v59  ;;  %v5518_v25 = vld [vmem:[#allocation9 + $0x3c4] sm:$0xf0] }
 0x537   : > { %v2126_v21 = vpop.f32.mrf.mxu2 }
 0x538   : > { %v2139_v28 = vsub.f32 %v2126_v21, %v6993_v43  ;;  %v4874_v21 = vor.u32 %v5519_v14, %v4871_v16  ;;  %v4829_v14 = vld [vmem:[#allocation9 + $0x380] sm:$0xf]  ;;  %v5509_v16 = vld [vmem:[#allocation9 + $0x384] sm:$0xf] }
 0x53a   : > { %v2144_v53 = vpack.c.bf16 %v2139_v28, %v2138_v9  ;;  %v5517_v9 = vld [vmem:[#allocation9 + $0x3c4] sm:$0xf]  ;;  %v4863_v28 = vld [vmem:[#allocation9 + $0x3c8] sm:$0xf0] }
 0x53c   : > { %2261 = vmatmul.bf16.gmra.mxu0 %v2144_v53  ;;  %2290 = vmatmul.bf16.gmra.mxu1 %v2144_v53 }
 0x53f   : > { %v2129_v42 = vpop.f32.mrf.mxu2 }
 0x540   : > { %v2140_v61 = vsub.f32 %v2129_v42, %v7004_v52  ;;  %v4866_v42 = vor.u32 %v5517_v9, %v4863_v28 }
 0x547   : > { %v2131_v36 = vpop.f32.mrf.mxu2 }
 0x548   : > { %v2141_v22 = vsub.f32 %v2131_v36, %v7008_v0  ;;  %v4853_v36 = vld [vmem:[#allocation9 + $0x3b0] sm:$0xf] }
 0x54a   : > { %v2145_v31 = vpack.c.bf16 %v2141_v22, %v2140_v61  ;;  %v5516_v61 = vld [vmem:[#allocation9 + $0x3b4] sm:$0xf0]  ;;  %v5515_v22 = vld [vmem:[#allocation9 + $0x3b4] sm:$0xf] }
 0x54c   : > { %2266 = vmatmul.bf16.gmra.mxu0 %v2145_v31  ;;  %2295 = vmatmul.bf16.gmra.mxu1 %v2145_v31 }
 0x54d   : > { %2321 = vmatpush.bf16.msra.mxu3 %v2145_v31  ;;  %v4855_v31 = vld [vmem:[#allocation9 + $0x3b8] sm:$0xf0] }
 0x551   : > { %2322 = vmatpush.bf16.msra.mxu3 %v2144_v53 }
 0x555   : > { %2323 = vmatpush.bf16.msra.mxu3 %v2143_v17  ;;  %v4861_v17 = vld [vmem:[#allocation9 + $0x3c0] sm:$0xf] }
 0x556   : > { %v4862_v53 = vor.u32 %v5518_v25, %v4861_v17  ;;  %v4831_v25 = vld [vmem:[#allocation9 + $0x388] sm:$0xf0] }
 0x559   : > { %2324 = vmatpush.bf16.msra.mxu3 %v2142_v34 }
 0x55c   : > { %4823 = vmatmul.msk.bf16.vlgmr.msra.gmra.mxu3 %vm1062_vm0, %v7014_v45  ;;  %v4885_v45 = vld [vmem:[#allocation9 + $0x3f0] sm:$0xf] }
 0x56c   : > { %4824 = vmatmul.msk.bf16.gmra.mxu3 %vm1062_vm0, %v7019_v39  ;;  %v4886_v39 = vor.u32 %v5524_v30, %v4885_v45  ;;  %v4858_v30 = vor.u32 %v5515_v22, %v4855_v31 }
 0x56e   : > { %2455 = vmatpush.bf16.msrb.mxu2 %v4886_v39  ;;  %v5514_v39 = vld [vmem:[#allocation9 + $0x3a4] sm:$0xf0] }
 0x57c   : > { %4825 = vmatmul.msk.bf16.gmra.mxu3 %vm1062_vm0, %v7024_v29  ;;  %v5522_v29 = vld [vmem:[#allocation9 + $0x3e4] sm:$0xf0] }
 0x57d   : > { %v4878_v56 = vor.u32 %v5522_v29, %v4877_v6  ;;  %v4846_v6 = vor.u32 %v5514_v39, %v4845_v3  ;;  %v4847_v29 = vld [vmem:[#allocation9 + $0x3a8] sm:$0xf0]  ;;  %v4949_v39 = vld [vmem:[#allocation9 + $0x470] sm:$0xf] }
 0x57e   : > { %v4850_v48 = vor.u32 %v5513_v44, %v4847_v29  ;;  %v5540_v44 = vld [vmem:[#allocation9 + $0x474] sm:$0xf0] }
 0x57f   : > { %2456 = vmatpush.bf16.msrb.mxu2 %v4878_v56  ;;  %v5511_v56 = vld [vmem:[#allocation9 + $0x394] sm:$0xf]  ;;  %v4950_v29 = vor.u32 %v5540_v44, %v4949_v39 }
 0x580   : > { %v5531_v39 = vld [vmem:[#allocation9 + $0x434] sm:$0xf] }
 0x581   : > { %2653 = vmatpush.bf16.msrb.mxu1 %v4950_v29 }
 0x58c   : > { %4826 = vmatmul.msk.bf16.gmra.mxu3 %vm1062_vm0, %v7029_v19  ;;  %v4879_v19 = vld [vmem:[#allocation9 + $0x3e8] sm:$0xf0] }
 0x599   : > { %v2252_v10 = vpop.f32.mrf.mxu0 }
 0x59a   : > { %v7141_v59 = vadd.f32 %v2252_v10, %v7082_v11  ;;  %v4882_v11 = vor.u32 %v5521_v57, %v4879_v19  ;;  %v4837_v57 = vld [vmem:[#allocation9 + $0x390] sm:$0xf]  ;;  %v5512_v19 = vld [vmem:[#allocation9 + $0x394] sm:$0xf0] }
 0x59c   : > { %2485 = vmatpush.bf16.msrb.mxu0 %v4882_v11 }
 0x5a0   : > { %2486 = vmatpush.bf16.msrb.mxu0 %v4874_v21  ;;  %v4834_v21 = vor.u32 %v5509_v16, %v4831_v25 }
 0x5a1   : > { %v7143_v43 = vpop.f32.mrf.mxu0 }
 0x5a4   : > { %2487 = vmatpush.bf16.msrb.mxu0 %v4866_v42 }
 0x5a8   : > { %2488 = vmatpush.bf16.msrb.mxu0 %v4858_v30 }
 0x5a9   : > { %v2257_v52 = vpop.f32.mrf.mxu0 }
 0x5aa   : > { %v7146_v0 = vadd.f32 %v2257_v52, %v7092_v32  ;;  %v4869_v32 = vld [vmem:[#allocation9 + $0x3d0] sm:$0xf]  ;;  %v4854_v52 = vor.u32 %v5516_v61, %v4853_v36 }
 0x5ab   : > { %v4870_v15 = vor.u32 %v5520_v58, %v4869_v32  ;;  %v4838_v32 = vor.u32 %v5512_v19, %v4837_v57  ;;  %v4839_v58 = vld [vmem:[#allocation9 + $0x398] sm:$0xf0]  ;;  %v5538_v57 = vld [vmem:[#allocation9 + $0x464] sm:$0xf0]  ;;  %v5537_v19 = vld [vmem:[#allocation9 + $0x464] sm:$0xf] }
 0x5ac   : > { %2489 = vmatpush.bf16.msrb.mxu0 %v4850_v48  ;;  %v4951_v48 = vld [vmem:[#allocation9 + $0x478] sm:$0xf0] }
 0x5ad   : > { %2457 = vmatpush.bf16.msrb.mxu2 %v4870_v15  ;;  %v5510_v15 = vld [vmem:[#allocation9 + $0x384] sm:$0xf0] }
 0x5ae   : > { %v4830_v17 = vor.u32 %v5510_v15, %v4829_v14 }
 0x5b1   : > { %v7148_v34 = vpop.f32.mrf.mxu0  ;;  %2458 = vmatpush.bf16.msrb.mxu2 %v4862_v53  ;;  %v7158_v53 = vpop.f32.mrf.mxu3 }
 0x5b5   : > { %2459 = vmatpush.bf16.msrb.mxu2 %v4854_v52 }
 0x5b9   : > { %v2262_v10 = vpop.f32.mrf.mxu0  ;;  %2460 = vmatpush.bf16.msrb.mxu2 %v4846_v6  ;;  %v5539_v6 = vld [vmem:[#allocation9 + $0x474] sm:$0xf] }
 0x5ba   : > { %v7151_v45 = vadd.f32 %v2262_v10, %v7104_v33  ;;  %v4842_v33 = vor.u32 %v5511_v56, %v4839_v58  ;;  %v4943_v56 = vld [vmem:[#allocation9 + $0x468] sm:$0xf0] }
 0x5bc   : > { %2490 = vmatpush.bf16.msrb.mxu0 %v4842_v33 }
 0x5bd   : > { %2461 = vmatpush.bf16.msrb.mxu2 %v4838_v32 }
 0x5c0   : > { %2491 = vmatpush.bf16.msrb.mxu0 %v4834_v21 }
 0x5c1   : > { %v7153_v11 = vpop.f32.mrf.mxu0  ;;  %2462 = vmatpush.bf16.msrb.mxu2 %v4830_v17 }
 0x5c9   : > { %v2267_v9 = vpop.f32.mrf.mxu0 }
 0x5ca   : > { %v7156_v28 = vadd.f32 %v2267_v9, %v7117_v8 }
 0x5df   : > { %v2326_v42 = vpop.f32.mrf.mxu3 }
 0x5e0   : > { %v2346_v61 = vsub.f32 %v2326_v42, %v7033_v35  ;;  %v4941_v35 = vld [vmem:[#allocation9 + $0x460] sm:$0xf]  ;;  %v4933_v42 = vld [vmem:[#allocation9 + $0x450] sm:$0xf] }
 0x5e1   : > { %v4942_v58 = vor.u32 %v5538_v57, %v4941_v35  ;;  %v5530_v35 = vld [vmem:[#allocation9 + $0x424] sm:$0xf0]  ;;  %v5529_v57 = vld [vmem:[#allocation9 + $0x424] sm:$0xf] }
 0x5e3   : > { %2654 = vmatpush.bf16.msrb.mxu1 %v4942_v58  ;;  %v5528_v58 = vld [vmem:[#allocation9 + $0x414] sm:$0xf0] }
 0x5e7   : > { %v2328_v36 = vpop.f32.mrf.mxu3 }
 0x5e8   : > { %v2347_v22 = vsub.f32 %v2328_v36, %v7035_v27  ;;  %v4954_v27 = vor.u32 %v5539_v6, %v4951_v48  ;;  %v5536_v36 = vld [vmem:[#allocation9 + $0x454] sm:$0xf0]  ;;  %v4919_v6 = vld [vmem:[#allocation9 + $0x438] sm:$0xf0]  ;;  %v4909_v48 = vld [vmem:[#allocation9 + $0x420] sm:$0xf] }
 0x5e9   : > { %v4922_v29 = vor.u32 %v5531_v39, %v4919_v6 }
 0x5ea   : > { %v2354_v31 = vpack.c.bf16 %v2347_v22, %v2346_v61  ;;  %2682 = vmatpush.bf16.msrb.mxu3 %v4954_v27  ;;  %v5535_v61 = vld [vmem:[#allocation9 + $0x454] sm:$0xf]  ;;  %v4934_v22 = vor.u32 %v5536_v36, %v4933_v42  ;;  %v4910_v27 = vor.u32 %v5530_v35, %v4909_v48 }
 0x5ec   : > { %2463 = vmatmul.bf16.vlgmr.msrb.gmra.mxu2 %v2354_v31  ;;  %2492 = vmatmul.bf16.vlgmr.msrb.gmra.mxu0 %v2354_v31  ;;  %v4935_v31 = vld [vmem:[#allocation9 + $0x458] sm:$0xf0] }
 0x5ed   : > { %2655 = vmatpush.bf16.msrb.mxu1 %v4934_v22 }
 0x5ef   : > { %v2331_v10 = vpop.f32.mrf.mxu3 }
 0x5f0   : > { %v2348_v30 = vsub.f32 %v2331_v10, %v7039_v26  ;;  %v4946_v26 = vor.u32 %v5537_v19, %v4943_v56  ;;  %v5534_v10 = vld [vmem:[#allocation9 + $0x444] sm:$0xf0]  ;;  %v4911_v19 = vld [vmem:[#allocation9 + $0x428] sm:$0xf0] }
 0x5f1   : > { %v4914_v56 = vor.u32 %v5529_v57, %v4911_v19 }
 0x5f2   : > { %2683 = vmatpush.bf16.msrb.mxu3 %v4946_v26  ;;  %v5527_v26 = vld [vmem:[#allocation9 + $0x414] sm:$0xf] }
 0x5f7   : > { %v2333_v52 = vpop.f32.mrf.mxu3 }
 0x5f8   : > { %v2349_v3 = vsub.f32 %v2333_v52, %v7041_v12  ;;  %v5533_v52 = vld [vmem:[#allocation9 + $0x444] sm:$0xf] }
 0x5fa   : > { %v2355_v8 = vpack.c.bf16 %v2349_v3, %v2348_v30  ;;  %v4927_v3 = vld [vmem:[#allocation9 + $0x448] sm:$0xf0] }
 0x5fc   : > { %2468 = vmatmul.bf16.gmra.mxu2 %v2355_v8  ;;  %2497 = vmatmul.bf16.gmra.mxu0 %v2355_v8  ;;  %v4930_v8 = vor.u32 %v5533_v52, %v4927_v3 }
 0x5ff   : > { %v2336_v32 = vpop.f32.mrf.mxu3 }
 0x600   : > { %v2350_v33 = vsub.f32 %v2336_v32, %v7045_v38  ;;  %v4938_v38 = vor.u32 %v5535_v61, %v4935_v31  ;;  %v4901_v32 = vld [vmem:[#allocation9 + $0x410] sm:$0xf]  ;;  %v7170_v61 = vpop.f32.mrf.mxu0 }
 0x602   : > { %2684 = vmatpush.bf16.msrb.mxu3 %v4938_v38 }
 0x606   : > { %2685 = vmatpush.bf16.msrb.mxu3 %v4930_v8 }
 0x607   : > { %v2338_v12 = vpop.f32.mrf.mxu3 }
 0x608   : > { %v2351_v14 = vsub.f32 %v2338_v12, %v7047_v40  ;;  %v4925_v40 = vld [vmem:[#allocation9 + $0x440] sm:$0xf]  ;;  %v7168_v12 = vpop.f32.mrf.mxu1 }
 0x609   : > { %v4926_v30 = vor.u32 %v5534_v10, %v4925_v40 }
 0x60a   : > { %v2356_v15 = vpack.c.bf16 %v2351_v14, %v2350_v33  ;;  %2686 = vmatpush.bf16.msrb.mxu3 %v4922_v29  ;;  %v4902_v33 = vor.u32 %v5528_v58, %v4901_v32  ;;  %v4903_v14 = vld [vmem:[#allocation9 + $0x418] sm:$0xf0]  ;;  %v1852_v32 = vadd.f32 %v7063_v1, %v7073_v55 }
 0x60b   : > { %2656 = vmatpush.bf16.msrb.mxu1 %v4926_v30  ;;  %v1847_v30 = vadd.f32 %v7057_v20, %v7073_v55 }
 0x60c   : > { %2473 = vmatmul.bf16.gmra.mxu2 %v2356_v15  ;;  %2502 = vmatmul.bf16.gmra.mxu0 %v2356_v15  ;;  %v4906_v15 = vor.u32 %v5527_v26, %v4903_v14  ;;  %v2095_v14 = vadd.f32 %v7099_v54, %v1852_v32 }
 0x60d   : > { %v2091_v39 = vadd.f32 %v7087_v2, %v1847_v30 }
 0x60e   : > { %2687 = vmatpush.bf16.msrb.mxu3 %v4914_v56 }
 0x60f   : > { %v2341_v16 = vpop.f32.mrf.mxu3 }
 0x610   : > { %v2352_v25 = vsub.f32 %v2341_v16, %v7051_v46  ;;  %v4917_v46 = vld [vmem:[#allocation9 + $0x430] sm:$0xf]  ;;  %v4893_v16 = vld [vmem:[#allocation9 + $0x400] sm:$0xf]  ;;  %v2281_v36 = vpop.f32.mrf.mxu1 }
 0x611   : > { %v2302_v40 = vadd.f32 %v2281_v36, %v7085_v41  ;;  %v2303_v41 = vadd.f32 %v7143_v43, %v2091_v39 }
 0x612   : > { %2688 = vmatpush.bf16.msrb.mxu3 %v4906_v15 }
 0x617   : > { %v2343_v17 = vpop.f32.mrf.mxu3 }
 0x618   : > { %v2353_v21 = vsub.f32 %v2343_v17, %v7053_v49  ;;  %v5532_v49 = vld [vmem:[#allocation9 + $0x434] sm:$0xf0]  ;;  %v5526_v17 = vld [vmem:[#allocation9 + $0x404] sm:$0xf0]  ;;  %v2283_v22 = vpop.f32.mrf.mxu1 }
 0x619   : > { %v4918_v44 = vor.u32 %v5532_v49, %v4917_v46  ;;  %v1876_v49 = vadd.f32 %v7078_v23, %v7080_v63 }
 0x61a   : > { %v2357_v9 = vpack.c.bf16 %v2353_v21, %v2352_v25  ;;  %v5525_v25 = vld [vmem:[#allocation9 + $0x404] sm:$0xf]  ;;  %v4894_v21 = vor.u32 %v5526_v17, %v4893_v16 }
 0x61b   : > { %2657 = vmatpush.bf16.msrb.mxu1 %v4918_v44  ;;  %v2092_v6 = vadd.f32 %v7089_v18, %v1876_v49 }
 0x61c   : > { %2478 = vmatmul.bf16.gmra.mxu2 %v2357_v9  ;;  %2507 = vmatmul.bf16.gmra.mxu0 %v2357_v9  ;;  %v4895_v9 = vld [vmem:[#allocation9 + $0x408] sm:$0xf0] }
 0x61d   : > { %v4898_v42 = vor.u32 %v5525_v25, %v4895_v9 }
 0x61f   : > { %2658 = vmatpush.bf16.msrb.mxu1 %v4910_v27  ;;  %2689 = vmatpush.bf16.msrb.mxu3 %v4898_v42 }
 0x620   : > { %v2286_v46 = vpop.f32.mrf.mxu1 }
 0x621   : > { %v2306_v56 = vadd.f32 %v2286_v46, %v7097_v37 }
 0x623   : > { %2659 = vmatpush.bf16.msrb.mxu1 %v4902_v33  ;;  %v1881_v33 = vadd.f32 %v7094_v4, %v7080_v63 }
 0x625   : > { %v2096_v37 = vadd.f32 %v7101_v47, %v1881_v33  ;;  %v5555_v33 = vld [vmem:[#allocation9 + $0x4f4] sm:$0xf] }
 0x627   : > { %2660 = vmatpush.bf16.msrb.mxu1 %v4894_v21 }
 0x628   : > { %v2288_v19 = vpop.f32.mrf.mxu1 }
 0x629   : > { %v2308_v25 = vadd.f32 %v2288_v19, %v2096_v37  ;;  %v5019_v37 = vld [vmem:[#allocation9 + $0x4f8] sm:$0xf0] }
 0x630   : > { %v2291_v16 = vpop.f32.mrf.mxu1 }
 0x631   : > { %v2310_v54 = vadd.f32 %v2291_v16, %v7107_v51  ;;  %v5009_v16 = vld [vmem:[#allocation9 + $0x4e0] sm:$0xf] }
 0x638   : > { %v2293_v47 = vpop.f32.mrf.mxu1 }
 0x669   : > { %v2493_v31 = vpop.f32.mrf.mxu0 }
 0x66a   : > { %v2514_v3 = vadd.f32 %v2493_v31, %v2302_v40 }
 0x66f   : > { %v2464_v38 = vpop.f32.mrf.mxu2 }
 0x670   : > { %v2513_v10 = vadd.f32 %v2464_v38, %v7141_v59  ;;  %v2304_v59 = vadd.f32 %v2283_v22, %v2092_v6 }
 0x671   : > { %v2495_v52 = vpop.f32.mrf.mxu0 }
 0x672   : > { %v2529_v8 = vmax.f32 %v2513_v10, 0.0  ;;  %v2516_v57 = vadd.f32 %v2495_v52, %v2304_v59  ;;  %v1886_v52 = vadd.f32 %v7109_v24, %v7080_v63 }
 0x674   : > { %v7179_v44 = vadd.f32 %v2529_v8, %v2514_v3  ;;  %v2100_v51 = vadd.f32 %v7113_v60, %v1886_v52  ;;  %v1862_v60 = vadd.f32 %v7075_v50, %v7073_v55  ;;  %v4995_v52 = vld [vmem:[#allocation9 + $0x4c8] sm:$0xf0] }
 0x676   : > { %v2312_v46 = vadd.f32 %v2293_v47, %v2100_v51  ;;  %v4985_v51 = vld [vmem:[#allocation9 + $0x4b0] sm:$0xf] }
 0x677   : > { %v2466_v29 = vpop.f32.mrf.mxu2 }
 0x678   : > { %v2515_v48 = vadd.f32 %v2466_v29, %v2303_v41 }
 0x679   : > { %v2498_v35 = vpop.f32.mrf.mxu0 }
 0x67a   : > { %v2530_v20 = vmax.f32 %v2515_v48, 0.0  ;;  %v2518_v58 = vadd.f32 %v2498_v35, %v2306_v56 }
 0x67c   : > { %v7183_v27 = vadd.f32 %v2530_v20, %v2516_v57  ;;  %v1891_v57 = vadd.f32 %v7122_v62, %v7080_v63  ;;  %v2103_v20 = vadd.f32 %v7168_v12, %v1862_v60  ;;  %v7243_v12 = vld [vmem:[%s6695_s8 + $0x8] sm:$0xff]  ;;  %v5544_v60 = vld [vmem:[#allocation9 + $0x494] sm:$0xf0] }
 0x67e   : > { %v7187_v23 = vpack.c.bf16 %v7183_v27, %v7179_v44  ;;  %v2104_v56 = vadd.f32 %v7158_v53, %v1891_v57  ;;  %v7238_v53 = vld [vmem:[%s6695_s8] sm:$0xff]  ;;  %v4971_v57 = vld [vmem:[#allocation9 + $0x498] sm:$0xf0] }
 0x67f   : > { %v2469_v2 = vpop.f32.mrf.mxu2 }
 0x680   : > { %v2517_v18 = vadd.f32 %v2469_v2, %v7146_v0  ;;  %2661 = vmatmul.bf16.vlgmr.msrb.gmra.mxu1 %v7187_v23  ;;  %2690 = vmatmul.bf16.vlgmr.msrb.gmra.mxu3 %v7187_v23  ;;  %v2307_v0 = vadd.f32 %v7148_v34, %v2095_v14  ;;  %v1857_v34 = vadd.f32 %v7067_v13, %v7073_v55  ;;  %v2296_v13 = vpop.f32.mrf.mxu1 }
 0x681   : > { %v2500_v43 = vpop.f32.mrf.mxu0 }
 0x682   : > { %v2531_v26 = vmax.f32 %v2517_v18, 0.0  ;;  %v2520_v42 = vadd.f32 %v2500_v43, %v2308_v25  ;;  %v2099_v30 = vadd.f32 %v7111_v5, %v1857_v34  ;;  %v2314_v5 = vadd.f32 %v2296_v13, %v7120_v7  ;;  %v5553_v25 = vld [vmem:[#allocation9 + $0x4e4] sm:$0xf]  ;;  %v4993_v34 = vld [vmem:[#allocation9 + $0x4c0] sm:$0xf] }
 0x683   : > { %v2315_v7 = vadd.f32 %v7170_v61, %v2103_v20  ;;  %v7248_v61 = vld [vmem:[%s6695_s8 + $0x10] sm:$0xff]  ;;  %v5546_v13 = vld [vmem:[#allocation9 + $0x4a4] sm:$0xf0] }
 0x684   : > { %v7198_v15 = vadd.f32 %v2531_v26, %v2518_v58  ;;  %v7253_v58 = vld [vmem:[%s6695_s8 + $0x18] sm:$0xff] }
 0x685   : > { %v5556_v26 = vld [vmem:[#allocation9 + $0x4f4] sm:$0xf0] }
 0x687   : > { %v2471_v17 = vpop.f32.mrf.mxu2 }
 0x688   : > { %v2519_v21 = vadd.f32 %v2471_v17, %v2307_v0  ;;  %v2298_v2 = vpop.f32.mrf.mxu1  ;;  %v5022_v0 = vor.u32 %v5555_v33, %v5019_v37  ;;  %v5554_v17 = vld [vmem:[#allocation9 + $0x4e4] sm:$0xf0] }
 0x689   : > { %v2503_v9 = vpop.f32.mrf.mxu0  ;;  %v2316_v43 = vadd.f32 %v2298_v2, %v2104_v56  ;;  %v4961_v2 = vld [vmem:[#allocation9 + $0x480] sm:$0xf]  ;;  %v5542_v56 = vld [vmem:[#allocation9 + $0x484] sm:$0xf0] }
 0x68a   : > { %v2532_v1 = vmax.f32 %v2519_v21, 0.0  ;;  %v2522_v38 = vadd.f32 %v2503_v9, %v2310_v54  ;;  %2878 = vmatpush.bf16.msra.mxu1 %v5022_v0  ;;  %v5010_v21 = vor.u32 %v5554_v17, %v5009_v16  ;;  %v5011_v9 = vld [vmem:[#allocation9 + $0x4e8] sm:$0xf0] }
 0x68c   : > { %v7202_v36 = vadd.f32 %v2532_v1, %v2520_v42  ;;  %v5014_v42 = vor.u32 %v5553_v25, %v5011_v9  ;;  %v5001_v1 = vld [vmem:[#allocation9 + $0x4d0] sm:$0xf] }
 0x68e   : > { %v2548_v4 = vpack.c.bf16 %v7202_v36, %v7198_v15  ;;  %2879 = vmatpush.bf16.msra.mxu1 %v5014_v42 }
 0x68f   : > { %v2474_v22 = vpop.f32.mrf.mxu2 }
 0x690   : > { %v2521_v31 = vadd.f32 %v2474_v22, %v7151_v45  ;;  %2666 = vmatmul.bf16.gmra.mxu1 %v2548_v4  ;;  %2695 = vmatmul.bf16.gmra.mxu3 %v2548_v4  ;;  %v2311_v45 = vadd.f32 %v7153_v11, %v2099_v30  ;;  %v5551_v22 = vld [vmem:[#allocation9 + $0x4d4] sm:$0xf] }
 0x691   : > { %v2505_v10 = vpop.f32.mrf.mxu0 }
 0x692   : > { %v2533_v40 = vmax.f32 %v2521_v31, 0.0  ;;  %v2524_v39 = vadd.f32 %v2505_v10, %v2312_v46  ;;  %v5003_v31 = vld [vmem:[#allocation9 + $0x4d8] sm:$0xf0] }
 0x693   : > { %v5006_v47 = vor.u32 %v5551_v22, %v5003_v31 }
 0x694   : > { %v7213_v3 = vadd.f32 %v2533_v40, %v2522_v38  ;;  %v5550_v38 = vld [vmem:[#allocation9 + $0x4c4] sm:$0xf0]  ;;  %v5549_v40 = vld [vmem:[#allocation9 + $0x4c4] sm:$0xf] }
 0x695   : > { %2880 = vmatpush.bf16.msra.mxu1 %v5006_v47  ;;  %v4994_v10 = vor.u32 %v5550_v38, %v4993_v34  ;;  %v4998_v30 = vor.u32 %v5549_v40, %v4995_v52 }
 0x697   : > { %v2476_v8 = vpop.f32.mrf.mxu2 }
 0x698   : > { %v2523_v49 = vadd.f32 %v2476_v8, %v2311_v45  ;;  %v5548_v45 = vld [vmem:[#allocation9 + $0x4b4] sm:$0xf0]  ;;  %v5547_v8 = vld [vmem:[#allocation9 + $0x4b4] sm:$0xf] }
 0x699   : > { %v2508_v29 = vpop.f32.mrf.mxu0  ;;  %v4986_v46 = vor.u32 %v5548_v45, %v4985_v51  ;;  %2881 = vmatpush.bf16.msra.mxu1 %v4998_v30  ;;  %v2546_v51 = vld [vmem:[#allocation10 + $0x4] sm:$0x3] }
 0x69a   : > { %v2534_v6 = vmax.f32 %v2523_v49, 0.0  ;;  %v2526_v11 = vadd.f32 %v2508_v29, %v2314_v5  ;;  %v4987_v49 = vld [vmem:[#allocation9 + $0x4b8] sm:$0xf0]  ;;  %v5545_v29 = vld [vmem:[#allocation9 + $0x4a4] sm:$0xf] }
 0x69c   : > { %v7217_v41 = vadd.f32 %v2534_v6, %v2524_v39  ;;  %v4990_v39 = vor.u32 %v5547_v8, %v4987_v49  ;;  %v4977_v6 = vld [vmem:[#allocation9 + $0x4a0] sm:$0xf]  ;;  %v7305_v49 = vperm.slane %v2546_v51, 1 }
 0x69e   : > { %v2549_v24 = vpack.c.bf16 %v7217_v41, %v7213_v3  ;;  %2882 = vmatpush.bf16.msra.mxu1 %v4990_v39 }
 0x69f   : > { %v2479_v59 = vpop.f32.mrf.mxu2 }
 0x6a0   : > { %v2525_v48 = vadd.f32 %v2479_v59, %v7156_v28  ;;  %2671 = vmatmul.bf16.gmra.mxu1 %v2549_v24  ;;  %2700 = vmatmul.bf16.gmra.mxu3 %v2549_v24  ;;  %v4979_v59 = vld [vmem:[#allocation9 + $0x4a8] sm:$0xf0] }
 0x6a1   : > { %v2510_v28 = vpop.f32.mrf.mxu0  ;;  %v4982_v5 = vor.u32 %v5545_v29, %v4979_v59 }
 0x6a2   : > { %v2535_v35 = vmax.f32 %v2525_v48, 0.0  ;;  %v2528_v50 = vadd.f32 %v2510_v28, %v2316_v43  ;;  %v4969_v48 = vld [vmem:[#allocation9 + $0x490] sm:$0xf]  ;;  %v4962_v28 = vor.u32 %v5542_v56, %v4961_v2 }
 0x6a3   : > { %2883 = vmatpush.bf16.msra.mxu1 %v4982_v5 }
 0x6a4   : > { %v7228_v19 = vadd.f32 %v2535_v35, %v2526_v11  ;;  %v5543_v11 = vld [vmem:[#allocation9 + $0x494] sm:$0xf]  ;;  %v4970_v35 = vor.u32 %v5544_v60, %v4969_v48 }
 0x6a5   : > { %v4974_v20 = vor.u32 %v5543_v11, %v4971_v57 }
 0x6a7   : > { %v2481_v18 = vpop.f32.mrf.mxu2  ;;  %2884 = vmatpush.bf16.msra.mxu1 %v4974_v20 }
 0x6a8   : > { %v2527_v55 = vadd.f32 %v2481_v18, %v2315_v7  ;;  %v5541_v7 = vld [vmem:[#allocation9 + $0x484] sm:$0xf]  ;;  %v4963_v18 = vld [vmem:[#allocation9 + $0x488] sm:$0xf0] }
 0x6a9   : > { %v4966_v43 = vor.u32 %v5541_v7, %v4963_v18  ;;  %v5572_v18 = vld [vmem:[#allocation9 + $0x574] sm:$0xf0] }
 0x6aa   : > { %v2536_v32 = vmax.f32 %v2527_v55, 0.0 }
 0x6ab   : > { %2885 = vmatpush.bf16.msra.mxu1 %v4966_v43  ;;  %v5571_v43 = vld [vmem:[#allocation9 + $0x574] sm:$0xf] }
 0x6ac   : > { %v7232_v63 = vadd.f32 %v2536_v32, %v2528_v50 }
 0x6ae   : > { %v2550_v62 = vpack.c.bf16 %v7232_v63, %v7228_v19 }
 0x6b0   : > { %2676 = vmatmul.bf16.gmra.mxu1 %v2550_v62  ;;  %2705 = vmatmul.bf16.gmra.mxu3 %v2550_v62 }
 0x6b1   : > { %2715 = vmatpush.bf16.msra.mxu2 %v2550_v62 }
 0x6b5   : > { %2716 = vmatpush.bf16.msra.mxu2 %v2549_v24  ;;  %v4978_v24 = vor.u32 %v5546_v13, %v4977_v6 }
 0x6b9   : > { %2717 = vmatpush.bf16.msra.mxu2 %v2548_v4  ;;  %v5552_v4 = vld [vmem:[#allocation9 + $0x4d4] sm:$0xf0] }
 0x6ba   : > { %v5002_v54 = vor.u32 %v5552_v4, %v5001_v1 }
 0x6bd   : > { %2718 = vmatpush.bf16.msra.mxu2 %v7187_v23  ;;  %v5017_v23 = vld [vmem:[#allocation9 + $0x4f0] sm:$0xf] }
 0x6be   : > { %v5018_v14 = vor.u32 %v5556_v26, %v5017_v23 }
 0x6c0   : > { %4955 = vmatmul.msk.bf16.vlgmr.msra.gmra.mxu2 %vm1062_vm0, %v7238_v53  ;;  %2849 = vmatpush.bf16.msra.mxu0 %v5018_v14 }
 0x6c4   : > { %2850 = vmatpush.bf16.msra.mxu0 %v5010_v21 }
 0x6c8   : > { %2851 = vmatpush.bf16.msra.mxu0 %v5002_v54 }
 0x6cc   : > { %2852 = vmatpush.bf16.msra.mxu0 %v4994_v10 }
 0x6d0   : > { %4956 = vmatmul.msk.bf16.gmra.mxu2 %vm1062_vm0, %v7243_v12  ;;  %2853 = vmatpush.bf16.msra.mxu0 %v4986_v46  ;;  %v7303_v46 = vperm.slane %v2546_v51, 0 }
 0x6d4   : > { %2854 = vmatpush.bf16.msra.mxu0 %v4978_v24 }
 0x6d8   : > { %2855 = vmatpush.bf16.msra.mxu0 %v4970_v35 }
 0x6dc   : > { %2856 = vmatpush.bf16.msra.mxu0 %v4962_v28  ;;  %v5085_v28 = vld [vmem:[#allocation9 + $0x570] sm:$0xf] }
 0x6e0   : > { %4957 = vmatmul.msk.bf16.gmra.mxu2 %vm1062_vm0, %v7248_v61 }
 0x6f0   : > { %4958 = vmatmul.msk.bf16.gmra.mxu2 %vm1062_vm0, %v7253_v58 }
 0x6fd   : > { %v2662_v31 = vpop.f32.mrf.mxu1 }
 0x6fe   : > { %v2663_v39 = vadd.f32 %v2662_v31, %v7303_v46  ;;  %v5069_v31 = vld [vmem:[#allocation9 + $0x550] sm:$0xf] }
 0x703   : > { %v2691_v30 = vpop.f32.mrf.mxu3 }
 0x704   : > { %v2692_v6 = vadd.f32 %v2691_v30, %v7305_v49  ;;  %v5567_v30 = vld [vmem:[#allocation9 + $0x554] sm:$0xf] }
 0x705   : > { %v7281_v47 = vpop.f32.mrf.mxu1 }
 0x70b   : > { %v7301_v8 = vpop.f32.mrf.mxu3 }
 0x70d   : > { %v2667_v34 = vpop.f32.mrf.mxu1 }
 0x70e   : > { %v2668_v35 = vadd.f32 %v2667_v34, %v7303_v46  ;;  %v5568_v34 = vld [vmem:[#allocation9 + $0x554] sm:$0xf0] }
 0x70f   : > { %v5070_v51 = vor.u32 %v5568_v34, %v5069_v31  ;;  %v5045_v31 = vld [vmem:[#allocation9 + $0x520] sm:$0xf]  ;;  %v5562_v34 = vld [vmem:[#allocation9 + $0x524] sm:$0xf0] }
 0x713   : > { %v2696_v5 = vpop.f32.mrf.mxu3 }
 0x714   : > { %v2697_v57 = vadd.f32 %v2696_v5, %v7305_v49  ;;  %v5565_v5 = vld [vmem:[#allocation9 + $0x544] sm:$0xf] }
 0x715   : > { %v7285_v38 = vpop.f32.mrf.mxu1 }
 0x71b   : > { %v7317_v11 = vpop.f32.mrf.mxu3 }
 0x71d   : > { %v7289_v40 = vpop.f32.mrf.mxu1 }
 0x725   : > { %v7293_v10 = vpop.f32.mrf.mxu1 }
 0x72d   : > { %v7295_v52 = vpop.f32.mrf.mxu1 }
 0x735   : > { %v7299_v45 = vpop.f32.mrf.mxu1 }
 0x743   : > { %v2720_v55 = vpop.f32.mrf.mxu2 }
 0x744   : > { %v7257_v32 = vmul.f32 0.5, %v2720_v55  ;;  %v5086_v55 = vor.u32 %v5572_v18, %v5085_v28  ;;  %v5564_v28 = vld [vmem:[#allocation9 + $0x534] sm:$0xf0]  ;;  %v5563_v18 = vld [vmem:[#allocation9 + $0x534] sm:$0xf] }
 0x746   : > { %3061 = vmatpush.bf16.msrb.mxu2 %v5086_v55  ;;  %v2673_v55 = vadd.f32 %v7289_v40, %v7303_v46  ;;  %v5561_v40 = vld [vmem:[#allocation9 + $0x524] sm:$0xf] }
 0x74b   : > { %v2722_v50 = vpop.f32.mrf.mxu2 }
 0x74c   : > { %v7259_v62 = vmul.f32 0.5, %v2722_v50  ;;  %v5087_v50 = vld [vmem:[#allocation9 + $0x578] sm:$0xf0] }
 0x74e   : > { %v2748_v23 = vpack.c.bf16 %v7259_v62, %v7257_v32 }
 0x750   : > { %2857 = vmatmul.bf16.vlgmr.msra.gmra.mxu0 %v2748_v23  ;;  %2886 = vmatmul.bf16.vlgmr.msra.gmra.mxu1 %v2748_v23 }
 0x753   : > { %v2725_v26 = vpop.f32.mrf.mxu2 }
 0x754   : > { %v7263_v14 = vmul.f32 0.5, %v2725_v26  ;;  %v5570_v26 = vld [vmem:[#allocation9 + $0x564] sm:$0xf0] }
 0x75b   : > { %v2727_v33 = vpop.f32.mrf.mxu2 }
 0x75c   : > { %v7265_v37 = vmul.f32 0.5, %v2727_v33  ;;  %v5090_v33 = vor.u32 %v5571_v43, %v5087_v50  ;;  %v5055_v43 = vld [vmem:[#allocation9 + $0x538] sm:$0xf0] }
 0x75e   : > { %v2749_v0 = vpack.c.bf16 %v7265_v37, %v7263_v14  ;;  %3090 = vmatpush.bf16.msrb.mxu0 %v5090_v33  ;;  %5645 = vmatpush.bf16.msrb.mxu1 %v5090_v33 }
 0x760   : > { %2862 = vmatmul.bf16.gmra.mxu0 %v2749_v0  ;;  %2891 = vmatmul.bf16.gmra.mxu1 %v2749_v0 }
 0x763   : > { %v2730_v16 = vpop.f32.mrf.mxu2 }
 0x764   : > { %v7269_v25 = vmul.f32 0.5, %v2730_v16  ;;  %v5079_v16 = vld [vmem:[#allocation9 + $0x568] sm:$0xf0] }
 0x76b   : > { %v2732_v17 = vpop.f32.mrf.mxu2 }
 0x76c   : > { %v7271_v21 = vmul.f32 0.5, %v2732_v17 }
 0x76e   : > { %v2750_v9 = vpack.c.bf16 %v7271_v21, %v7269_v25 }
 0x770   : > { %2867 = vmatmul.bf16.gmra.mxu0 %v2750_v9  ;;  %2896 = vmatmul.bf16.gmra.mxu1 %v2750_v9 }
 0x773   : > { %v2735_v42 = vpop.f32.mrf.mxu2 }
 0x774   : > { %v7275_v4 = vmul.f32 0.5, %v2735_v42  ;;  %v2701_v42 = vpop.f32.mrf.mxu3 }
 0x775   : > { %v2702_v50 = vadd.f32 %v2701_v42, %v7305_v49  ;;  %v5046_v42 = vor.u32 %v5562_v34, %v5045_v31 }
 0x77b   : > { %v2737_v1 = vpop.f32.mrf.mxu2 }
 0x77c   : > { %v7277_v22 = vmul.f32 0.5, %v2737_v1 }
 0x77e   : > { %v2751_v54 = vpack.c.bf16 %v7277_v22, %v7275_v4 }
 0x780   : > { %2872 = vmatmul.bf16.gmra.mxu0 %v2751_v54  ;;  %2901 = vmatmul.bf16.gmra.mxu1 %v2751_v54 }
 0x781   : > { %2927 = vmatpush.bf16.msra.mxu3 %v2751_v54 }
 0x785   : > { %2928 = vmatpush.bf16.msra.mxu3 %v2750_v9 }
 0x789   : > { %2929 = vmatpush.bf16.msra.mxu3 %v2749_v0  ;;  %v5569_v0 = vld [vmem:[#allocation9 + $0x564] sm:$0xf] }
 0x78a   : > { %v5082_v9 = vor.u32 %v5569_v0, %v5079_v16 }
 0x78c   : > { %3091 = vmatpush.bf16.msrb.mxu0 %v5082_v9  ;;  %5646 = vmatpush.bf16.msrb.mxu1 %v5082_v9  ;;  %v7336_v9 = vpop.f32.mrf.mxu3 }
 0x78d   : > { %2930 = vmatpush.bf16.msra.mxu3 %v2748_v23  ;;  %v5077_v23 = vld [vmem:[#allocation9 + $0x560] sm:$0xf] }
 0x78e   : > { %v5078_v17 = vor.u32 %v5570_v26, %v5077_v23 }
 0x790   : > { %5023 = vmatmul.msk.bf16.vlgmr.msra.gmra.mxu3 %vm1062_vm0, %v7238_v53  ;;  %3062 = vmatpush.bf16.msrb.mxu2 %v5078_v17  ;;  %v5058_v17 = vor.u32 %v5563_v18, %v5055_v43  ;;  %v5558_v18 = vld [vmem:[#allocation9 + $0x504] sm:$0xf0]  ;;  %v5557_v43 = vld [vmem:[#allocation9 + $0x504] sm:$0xf] }
 0x794   : > { %3063 = vmatpush.bf16.msrb.mxu2 %v5070_v51 }
 0x7a0   : > { %5024 = vmatmul.msk.bf16.gmra.mxu3 %vm1062_vm0, %v7243_v12 }
 0x7b0   : > { %5025 = vmatmul.msk.bf16.gmra.mxu3 %vm1062_vm0, %v7248_v61 }
 0x7c0   : > { %5026 = vmatmul.msk.bf16.gmra.mxu3 %vm1062_vm0, %v7253_v58 }
 0x7cd   : > { %v2858_v13 = vpop.f32.mrf.mxu0  ;;  %v2887_v29 = vpop.f32.mrf.mxu1 }
 0x7ce   : > { %v7309_v24 = vadd.f32 %v2858_v13, %v2663_v39  ;;  %v7311_v59 = vadd.f32 %v2887_v29, %v2692_v6  ;;  %v5071_v39 = vld [vmem:[#allocation9 + $0x558] sm:$0xf0]  ;;  %v5061_v6 = vld [vmem:[#allocation9 + $0x540] sm:$0xf]  ;;  %v5566_v13 = vld [vmem:[#allocation9 + $0x544] sm:$0xf0] }
 0x7cf   : > { %v5074_v29 = vor.u32 %v5567_v30, %v5071_v39  ;;  %v5047_v30 = vld [vmem:[#allocation9 + $0x528] sm:$0xf0]  ;;  %v5037_v39 = vld [vmem:[#allocation9 + $0x510] sm:$0xf] }
 0x7d0   : > { %v5050_v51 = vor.u32 %v5561_v40, %v5047_v30 }
 0x7d1   : > { %3092 = vmatpush.bf16.msrb.mxu0 %v5074_v29  ;;  %5647 = vmatpush.bf16.msrb.mxu1 %v5074_v29 }
 0x7d5   : > { %v7313_v48 = vpop.f32.mrf.mxu0  ;;  %v7315_v60 = vpop.f32.mrf.mxu1 }
 0x7dd   : > { %v2863_v20 = vpop.f32.mrf.mxu0  ;;  %v2892_v2 = vpop.f32.mrf.mxu1 }
 0x7de   : > { %v7321_v56 = vadd.f32 %v2863_v20, %v2668_v35  ;;  %v7323_v7 = vadd.f32 %v2892_v2, %v2697_v57  ;;  %v5063_v35 = vld [vmem:[#allocation9 + $0x548] sm:$0xf0]  ;;  %v5062_v57 = vor.u32 %v5566_v13, %v5061_v6  ;;  %v5053_v2 = vld [vmem:[#allocation9 + $0x530] sm:$0xf]  ;;  %v5560_v6 = vld [vmem:[#allocation9 + $0x514] sm:$0xf0] }
 0x7df   : > { %v5066_v20 = vor.u32 %v5565_v5, %v5063_v35  ;;  %v5054_v33 = vor.u32 %v5564_v28, %v5053_v2  ;;  %v5559_v13 = vld [vmem:[#allocation9 + $0x514] sm:$0xf]  ;;  %v5038_v35 = vor.u32 %v5560_v6, %v5037_v39  ;;  %v2706_v2 = vpop.f32.mrf.mxu3  ;;  %v5029_v28 = vld [vmem:[#allocation9 + $0x500] sm:$0xf] }
 0x7e0   : > { %3064 = vmatpush.bf16.msrb.mxu2 %v5062_v57  ;;  %v5039_v57 = vld [vmem:[#allocation9 + $0x518] sm:$0xf0] }
 0x7e1   : > { %3093 = vmatpush.bf16.msrb.mxu0 %v5066_v20  ;;  %5648 = vmatpush.bf16.msrb.mxu1 %v5066_v20  ;;  %v5042_v20 = vor.u32 %v5559_v13, %v5039_v57 }
 0x7e4   : > { %3065 = vmatpush.bf16.msrb.mxu2 %v5054_v33 }
 0x7e5   : > { %v7325_v1 = vpop.f32.mrf.mxu0  ;;  %v7327_v54 = vpop.f32.mrf.mxu1  ;;  %3094 = vmatpush.bf16.msrb.mxu0 %v5058_v17  ;;  %5649 = vmatpush.bf16.msrb.mxu1 %v5058_v17 }
 0x7e8   : > { %3066 = vmatpush.bf16.msrb.mxu2 %v5046_v42  ;;  %v7349_v42 = vpop.f32.mrf.mxu3 }
 0x7e9   : > { %3095 = vmatpush.bf16.msrb.mxu0 %v5050_v51  ;;  %5650 = vmatpush.bf16.msrb.mxu1 %v5050_v51 }
 0x7ec   : > { %3067 = vmatpush.bf16.msrb.mxu2 %v5038_v35 }
 0x7ed   : > { %v2868_v23 = vpop.f32.mrf.mxu0  ;;  %v2897_v26 = vpop.f32.mrf.mxu1  ;;  %3096 = vmatpush.bf16.msrb.mxu0 %v5042_v20  ;;  %5651 = vmatpush.bf16.msrb.mxu1 %v5042_v20 }
 0x7ee   : > { %v7332_v0 = vadd.f32 %v2868_v23, %v2673_v55  ;;  %v7334_v16 = vadd.f32 %v2897_v26, %v2702_v50  ;;  %v5030_v55 = vor.u32 %v5558_v18, %v5029_v28  ;;  %v5031_v50 = vld [vmem:[#allocation9 + $0x508] sm:$0xf0]  ;;  %v2678_v23 = vadd.f32 %v7295_v52, %v7303_v46 }
 0x7ef   : > { %v2707_v26 = vadd.f32 %v2706_v2, %v7305_v49  ;;  %v5034_v33 = vor.u32 %v5557_v43, %v5031_v50 }
 0x7f0   : > { %3068 = vmatpush.bf16.msrb.mxu2 %v5030_v55 }
 0x7f1   : > { %3097 = vmatpush.bf16.msrb.mxu0 %v5034_v33  ;;  %5652 = vmatpush.bf16.msrb.mxu1 %v5034_v33 }
 0x7f5   : > { %v7338_v29 = vpop.f32.mrf.mxu0  ;;  %v7340_v5 = vpop.f32.mrf.mxu1 }
 0x7fd   : > { %v2873_v17 = vpop.f32.mrf.mxu0  ;;  %v2902_v31 = vpop.f32.mrf.mxu1 }
 0x7fe   : > { %v7345_v34 = vadd.f32 %v2873_v17, %v2678_v23  ;;  %v7347_v40 = vadd.f32 %v2902_v31, %v2707_v26  ;;  %v5155_v17 = vld [vmem:[#allocation9 + $0x5f8] sm:$0xf0] }
 0x813   : > { %v2932_v30 = vpop.f32.mrf.mxu3 }
 0x814   : > { %v2952_v39 = vsub.f32 %v2932_v30, %v7179_v44 }
 0x81b   : > { %v2934_v51 = vpop.f32.mrf.mxu3 }
 0x81c   : > { %v2953_v52 = vsub.f32 %v2934_v51, %v7183_v27  ;;  %v5145_v51 = vld [vmem:[#allocation9 + $0x5e0] sm:$0xf] }
 0x81e   : > { %v2960_v6 = vpack.c.bf16 %v2953_v52, %v2952_v39  ;;  %v5586_v39 = vld [vmem:[#allocation9 + $0x5e4] sm:$0xf0]  ;;  %v5585_v52 = vld [vmem:[#allocation9 + $0x5e4] sm:$0xf] }
 0x820   : > { %3069 = vmatmul.bf16.vlgmr.msrb.gmra.mxu2 %v2960_v6  ;;  %3098 = vmatmul.bf16.vlgmr.msrb.gmra.mxu0 %v2960_v6 }
 0x823   : > { %v2937_v13 = vpop.f32.mrf.mxu3 }
 0x824   : > { %v2954_v57 = vsub.f32 %v2937_v13, %v7198_v15  ;;  %v5147_v13 = vld [vmem:[#allocation9 + $0x5e8] sm:$0xf0] }
 0x82b   : > { %v2939_v35 = vpop.f32.mrf.mxu3 }
 0x82c   : > { %v2955_v20 = vsub.f32 %v2939_v35, %v7202_v36  ;;  %v5150_v35 = vor.u32 %v5585_v52, %v5147_v13  ;;  %v5105_v13 = vld [vmem:[#allocation9 + $0x590] sm:$0xf] }
 0x82e   : > { %v2961_v2 = vpack.c.bf16 %v2955_v20, %v2954_v57  ;;  %v5584_v57 = vld [vmem:[#allocation9 + $0x5d4] sm:$0xf0]  ;;  %v5583_v20 = vld [vmem:[#allocation9 + $0x5d4] sm:$0xf] }
 0x830   : > { %3074 = vmatmul.bf16.gmra.mxu2 %v2961_v2  ;;  %3103 = vmatmul.bf16.gmra.mxu0 %v2961_v2 }
 0x833   : > { %v2942_v28 = vpop.f32.mrf.mxu3 }
 0x834   : > { %v2956_v43 = vsub.f32 %v2942_v28, %v7213_v3  ;;  %v5139_v28 = vld [vmem:[#allocation9 + $0x5d8] sm:$0xf0] }
 0x83b   : > { %v2944_v18 = vpop.f32.mrf.mxu3 }
 0x83c   : > { %v2957_v44 = vsub.f32 %v2944_v18, %v7217_v41  ;;  %v5153_v41 = vld [vmem:[#allocation9 + $0x5f0] sm:$0xf] }
 0x83e   : > { %v2962_v55 = vpack.c.bf16 %v2957_v44, %v2956_v43  ;;  %v5142_v43 = vor.u32 %v5583_v20, %v5139_v28  ;;  %v5107_v20 = vld [vmem:[#allocation9 + $0x598] sm:$0xf0] }
 0x840   : > { %3079 = vmatmul.bf16.gmra.mxu2 %v2962_v55  ;;  %3108 = vmatmul.bf16.gmra.mxu0 %v2962_v55 }
 0x843   : > { %v2947_v27 = vpop.f32.mrf.mxu3 }
 0x844   : > { %v2958_v23 = vsub.f32 %v2947_v27, %v7228_v19  ;;  %v5588_v19 = vld [vmem:[#allocation9 + $0x5f4] sm:$0xf0]  ;;  %v5582_v27 = vld [vmem:[#allocation9 + $0x5c4] sm:$0xf0] }
 0x845   : > { %v5154_v33 = vor.u32 %v5588_v19, %v5153_v41  ;;  %v5580_v41 = vld [vmem:[#allocation9 + $0x5b4] sm:$0xf0]  ;;  %v5579_v19 = vld [vmem:[#allocation9 + $0x5b4] sm:$0xf] }
 0x847   : > { %3273 = vmatpush.bf16.msrb.mxu3 %v5154_v33  ;;  %v5123_v33 = vld [vmem:[#allocation9 + $0x5b8] sm:$0xf0] }
 0x84b   : > { %v2949_v50 = vpop.f32.mrf.mxu3 }
 0x84c   : > { %v2959_v15 = vsub.f32 %v2949_v50, %v7232_v63  ;;  %v5587_v63 = vld [vmem:[#allocation9 + $0x5f4] sm:$0xf]  ;;  %v5581_v50 = vld [vmem:[#allocation9 + $0x5c4] sm:$0xf] }
 0x84d   : > { %v5158_v30 = vor.u32 %v5587_v63, %v5155_v17 }
 0x84e   : > { %v2963_v26 = vpack.c.bf16 %v2959_v15, %v2958_v23  ;;  %v5131_v15 = vld [vmem:[#allocation9 + $0x5c8] sm:$0xf0] }
 0x84f   : > { %3302 = vmatpush.bf16.msra.mxu2 %v5158_v30  ;;  %v5126_v30 = vor.u32 %v5579_v19, %v5123_v33 }
 0x850   : > { %3084 = vmatmul.bf16.gmra.mxu2 %v2963_v26  ;;  %3113 = vmatmul.bf16.vlgmr.msrb.gmra.mxu1 %v2963_v26 }
 0x851   : > { %3139 = vmatpush.bf16.msra.mxu1 %v2963_v26  ;;  %v5134_v26 = vor.u32 %v5581_v50, %v5131_v15  ;;  %v5574_v50 = vld [vmem:[#allocation9 + $0x584] sm:$0xf0] }
 0x853   : > { %3303 = vmatpush.bf16.msra.mxu2 %v5150_v35  ;;  %v5576_v35 = vld [vmem:[#allocation9 + $0x594] sm:$0xf0] }
 0x855   : > { %3140 = vmatpush.bf16.msra.mxu1 %v2962_v55  ;;  %v5129_v55 = vld [vmem:[#allocation9 + $0x5c0] sm:$0xf] }
 0x856   : > { %v5130_v23 = vor.u32 %v5582_v27, %v5129_v55  ;;  %v7380_v55 = vpop.f32.mrf.mxu1  ;;  %v5097_v27 = vld [vmem:[#allocation9 + $0x580] sm:$0xf] }
 0x857   : > { %3304 = vmatpush.bf16.msra.mxu2 %v5142_v43  ;;  %v5098_v15 = vor.u32 %v5574_v50, %v5097_v27 }
 0x859   : > { %3141 = vmatpush.bf16.msra.mxu1 %v2961_v2 }
 0x85b   : > { %3305 = vmatpush.bf16.msra.mxu2 %v5134_v26  ;;  %v5099_v26 = vld [vmem:[#allocation9 + $0x588] sm:$0xf0] }
 0x85d   : > { %3142 = vmatpush.bf16.msra.mxu1 %v2960_v6  ;;  %v5146_v6 = vor.u32 %v5586_v39, %v5145_v51  ;;  %v5578_v51 = vld [vmem:[#allocation9 + $0x5a4] sm:$0xf0]  ;;  %v5577_v39 = vld [vmem:[#allocation9 + $0x5a4] sm:$0xf] }
 0x85f   : > { %3274 = vmatpush.bf16.msrb.mxu3 %v5146_v6  ;;  %3306 = vmatpush.bf16.msra.mxu2 %v5126_v30  ;;  %v5115_v6 = vld [vmem:[#allocation9 + $0x5a8] sm:$0xf0] }
 0x860   : > { %5091 = vmatmul.msk.bf16.vlgmr.msra.gmra.mxu1 %vm1062_vm0, %v7238_v53 }
 0x870   : > { %5092 = vmatmul.msk.bf16.gmra.mxu1 %vm1062_vm0, %v7243_v12 }
 0x880   : > { %5093 = vmatmul.msk.bf16.gmra.mxu1 %vm1062_vm0, %v7248_v61 }
 0x890   : > { %5094 = vmatmul.msk.bf16.gmra.mxu1 %vm1062_vm0, %v7253_v58 }
 0x8a3   : > { %v3070_v36 = vpop.f32.mrf.mxu2 }
 0x8a4   : > { %v7368_v3 = vadd.f32 %v3070_v36, %v7309_v24  ;;  %v5137_v24 = vld [vmem:[#allocation9 + $0x5d0] sm:$0xf] }
 0x8a5   : > { %v5138_v2 = vor.u32 %v5584_v57, %v5137_v24  ;;  %v5121_v36 = vld [vmem:[#allocation9 + $0x5b0] sm:$0xf]  ;;  %v5118_v24 = vor.u32 %v5577_v39, %v5115_v6  ;;  %v5575_v57 = vld [vmem:[#allocation9 + $0x594] sm:$0xf] }
 0x8a6   : > { %v5122_v63 = vor.u32 %v5580_v41, %v5121_v36  ;;  %v5110_v28 = vor.u32 %v5575_v57, %v5107_v20  ;;  %v5595_v20 = vld [vmem:[#allocation12 + $0x30] sm:$0xff] }
 0x8a7   : > { %3275 = vmatpush.bf16.msrb.mxu3 %v5138_v2  ;;  %v5106_v2 = vor.u32 %v5576_v35, %v5105_v13  ;;  %3307 = vmatpush.bf16.msra.mxu2 %v5118_v24 }
 0x8ab   : > { %v7370_v31 = vpop.f32.mrf.mxu2  ;;  %3276 = vmatpush.bf16.msrb.mxu3 %v5130_v23  ;;  %3308 = vmatpush.bf16.msra.mxu2 %v5110_v28  ;;  %v5573_v23 = vld [vmem:[#allocation9 + $0x584] sm:$0xf] }
 0x8ac   : > { %v5102_v36 = vor.u32 %v5573_v23, %v5099_v26 }
 0x8af   : > { %3277 = vmatpush.bf16.msrb.mxu3 %v5122_v63  ;;  %3309 = vmatpush.bf16.msra.mxu2 %v5102_v36  ;;  %v5592_v36 = vld [vmem:[#allocation12 + $0x18] sm:$0xff] }
 0x8b3   : > { %v3075_v18 = vpop.f32.mrf.mxu2 }
 0x8b4   : > { %v7373_v44 = vadd.f32 %v3075_v18, %v7321_v56  ;;  %v5113_v56 = vld [vmem:[#allocation9 + $0x5a0] sm:$0xf] }
 0x8b5   : > { %v5114_v52 = vor.u32 %v5578_v51, %v5113_v56 }
 0x8b7   : > { %3278 = vmatpush.bf16.msrb.mxu3 %v5114_v52 }
 0x8bb   : > { %v7375_v17 = vpop.f32.mrf.mxu2  ;;  %3279 = vmatpush.bf16.msrb.mxu3 %v5106_v2 }
 0x8bf   : > { %3280 = vmatpush.bf16.msrb.mxu3 %v5098_v15 }
 0x8c3   : > { %v3080_v18 = vpop.f32.mrf.mxu2 }
 0x8c4   : > { %v7378_v43 = vadd.f32 %v3080_v18, %v7332_v0 }
 0x8cb   : > { %v7382_v41 = vpop.f32.mrf.mxu2 }
 0x8cd   : > { %v3114_v19 = vpop.f32.mrf.mxu1 }
 0x8ce   : > { %v7385_v63 = vadd.f32 %v3114_v19, %v7347_v40  ;;  %v5591_v19 = vld [vmem:[#allocation12 + $0x10] sm:$0xff] }
 0x8d3   : > { %v3085_v0 = vpop.f32.mrf.mxu2 }
 0x8d4   : > { %v7388_v33 = vadd.f32 %v3085_v0, %v7345_v34  ;;  %v5596_v34 = vld [vmem:[#allocation12 + $0x38] sm:$0xff]  ;;  %v7400_v0 = vpop.f32.mrf.mxu0 }
 0x8d5   : > { %v7390_v30 = vpop.f32.mrf.mxu1  ;;  %3435 = vmatpush.bf16.msra.mxu0 %v5596_v34 }
 0x8d9   : > { %3436 = vmatpush.bf16.msra.mxu0 %v5595_v20 }
 0x8dd   : > { %v3144_v56 = vpop.f32.mrf.mxu1 }
 0x8de   : > { %v3164_v39 = vsub.f32 %v3144_v56, %v7257_v32  ;;  %v5594_v32 = vld [vmem:[#allocation12 + $0x28] sm:$0xff]  ;;  %v3099_v56 = vpop.f32.mrf.mxu0 }
 0x8df   : > { %3437 = vmatpush.bf16.msra.mxu0 %v5594_v32 }
 0x8e5   : > { %v3146_v51 = vpop.f32.mrf.mxu1 }
 0x8e6   : > { %v3165_v52 = vsub.f32 %v3146_v51, %v7259_v62  ;;  %v5593_v62 = vld [vmem:[#allocation12 + $0x20] sm:$0xff]  ;;  %v7402_v51 = vpop.f32.mrf.mxu2 }
 0x8e7   : > { %3438 = vmatpush.bf16.msra.mxu0 %v5593_v62 }
 0x8e8   : > { %v3172_v6 = vpack.c.bf16 %v3165_v52, %v3164_v39  ;;  %v3101_v39 = vpop.f32.mrf.mxu0 }
 0x8ea   : > { %3281 = vmatmul.bf16.vlgmr.msrb.gmra.mxu3 %v3172_v6  ;;  %3310 = vmatmul.bf16.vlgmr.msra.gmra.mxu2 %v3172_v6 }
 0x8eb   : > { %3439 = vmatpush.bf16.msra.mxu0 %v5592_v36 }
 0x8ed   : > { %v3149_v13 = vpop.f32.mrf.mxu1 }
 0x8ee   : > { %v3166_v40 = vsub.f32 %v3149_v13, %v7263_v14  ;;  %v2665_v13 = vadd.f32 %v7281_v47, %v7303_v46 }
 0x8ef   : > { %3440 = vmatpush.bf16.msra.mxu0 %v5591_v19 }
 0x8f0   : > { %v3104_v32 = vpop.f32.mrf.mxu0 }
 0x8f5   : > { %v3151_v35 = vpop.f32.mrf.mxu1 }
 0x8f6   : > { %v3167_v24 = vsub.f32 %v3151_v35, %v7265_v37 }
 0x8f8   : > { %v3173_v57 = vpack.c.bf16 %v3167_v24, %v3166_v40  ;;  %v2694_v24 = vadd.f32 %v7301_v8, %v7305_v49  ;;  %v3124_v8 = vadd.f32 %v3104_v32, %v7323_v7 }
 0x8fa   : > { %3286 = vmatmul.bf16.gmra.mxu3 %v3173_v57  ;;  %3315 = vmatmul.bf16.gmra.mxu2 %v3173_v57  ;;  %v2909_v57 = vadd.f32 %v7313_v48, %v2665_v13  ;;  %v2910_v20 = vadd.f32 %v7315_v60, %v2694_v24  ;;  %v3106_v60 = vpop.f32.mrf.mxu0  ;;  %v2704_v24 = vadd.f32 %v7336_v9, %v7305_v49 }
 0x8fd   : > { %v3154_v2 = vpop.f32.mrf.mxu1 }
 0x8fe   : > { %v3168_v18 = vsub.f32 %v3154_v2, %v7269_v25  ;;  %v5590_v25 = vld [vmem:[#allocation12 + $0x8] sm:$0xff]  ;;  %v3121_v2 = vadd.f32 %v7370_v31, %v2909_v57  ;;  %v2670_v31 = vadd.f32 %v7285_v38, %v7303_v46 }
 0x8ff   : > { %3441 = vmatpush.bf16.msra.mxu0 %v5590_v25 }
 0x900   : > { %v2913_v36 = vadd.f32 %v7325_v1, %v2670_v31 }
 0x902   : > { %v3125_v7 = vadd.f32 %v7375_v17, %v2913_v36 }
 0x905   : > { %v3156_v28 = vpop.f32.mrf.mxu1 }
 0x906   : > { %v3169_v27 = vsub.f32 %v3156_v28, %v7271_v21  ;;  %v5589_v21 = vld [vmem:[#allocation12] sm:$0xff]  ;;  %v3122_v28 = vadd.f32 %v3101_v39, %v2910_v20 }
 0x907   : > { %3442 = vmatpush.bf16.msra.mxu0 %v5589_v21 }
 0x908   : > { %v3174_v50 = vpack.c.bf16 %v3169_v27, %v3168_v18 }
 0x90a   : > { %3291 = vmatmul.bf16.gmra.mxu3 %v3174_v50  ;;  %3320 = vmatmul.bf16.gmra.mxu2 %v3174_v50 }
 0x90d   : > { %v3159_v14 = vpop.f32.mrf.mxu1 }
 0x90e   : > { %v3170_v23 = vsub.f32 %v3159_v14, %v7275_v4 }
 0x915   : > { %v3161_v37 = vpop.f32.mrf.mxu1 }
 0x916   : > { %v3171_v15 = vsub.f32 %v3161_v37, %v7277_v22  ;;  %v3120_v22 = vadd.f32 %v3099_v56, %v7311_v59 }
 0x918   : > { %v3175_v26 = vpack.c.bf16 %v3171_v15, %v3170_v23 }
 0x91a   : > { %3296 = vmatmul.bf16.gmra.mxu3 %v3175_v26  ;;  %3325 = vmatmul.bf16.gmra.mxu2 %v3175_v26  ;;  %v2699_v26 = vadd.f32 %v7317_v11, %v7305_v49 }
 0x91c   : > { %v2914_v25 = vadd.f32 %v7327_v54, %v2699_v26  ;;  %v2675_v54 = vadd.f32 %v7293_v10, %v7303_v46 }
 0x91e   : > { %v3126_v56 = vadd.f32 %v3106_v60, %v2914_v25  ;;  %v2917_v57 = vadd.f32 %v7338_v29, %v2675_v54  ;;  %v2680_v29 = vadd.f32 %v7299_v45, %v7303_v46 }
 0x920   : > { %v3129_v32 = vadd.f32 %v7382_v41, %v2917_v57  ;;  %v2709_v41 = vadd.f32 %v7349_v42, %v7305_v49  ;;  %v5604_v49 = vld [vmem:[#allocation12 + $0x78] sm:$0xff]  ;;  %v5603_v42 = vld [vmem:[#allocation12 + $0x70] sm:$0xff] }
 0x921   : > { %3570 = vmatpush.bf16.msra.mxu3 %v5604_v49 }
 0x925   : > { %3571 = vmatpush.bf16.msra.mxu3 %v5603_v42 }
 0x96d   : > { %v3282_v4 = vpop.f32.mrf.mxu3  ;;  %v3311_v52 = vpop.f32.mrf.mxu2 }
 0x96e   : > { %v3331_v6 = vadd.f32 %v3282_v4, %v7368_v3  ;;  %v3332_v40 = vadd.f32 %v3311_v52, %v3120_v22  ;;  %v3109_v22 = vpop.f32.mrf.mxu0 }
 0x96f   : > { %v3128_v11 = vadd.f32 %v3109_v22, %v7334_v16 }
 0x970   : > { %v3347_v35 = vmax.f32 %v3331_v6, 0.0 }
 0x972   : > { %v3355_v34 = vadd.f32 %v3347_v35, %v3332_v40 }
 0x975   : > { %v3284_v62 = vpop.f32.mrf.mxu3  ;;  %v3313_v59 = vpop.f32.mrf.mxu2 }
 0x976   : > { %v3333_v3 = vadd.f32 %v3284_v62, %v3121_v2  ;;  %v3334_v27 = vadd.f32 %v3313_v59, %v3122_v28  ;;  %v3111_v20 = vpop.f32.mrf.mxu0  ;;  %v2918_v2 = vadd.f32 %v7340_v5, %v2704_v24 }
 0x978   : > { %v3348_v18 = vmax.f32 %v3333_v3, 0.0 }
 0x97a   : > { %v3356_v47 = vadd.f32 %v3348_v18, %v3334_v27 }
 0x97c   : > { %v7413_v50 = vpack.c.bf16 %v3356_v47, %v3355_v34 }
 0x97d   : > { %v3287_v14 = vpop.f32.mrf.mxu3  ;;  %v3316_v37 = vpop.f32.mrf.mxu2 }
 0x97e   : > { %v3335_v48 = vadd.f32 %v3287_v14, %v7373_v44  ;;  %3443 = vmatmul.bf16.vlgmr.msra.gmra.mxu0 %v7413_v50  ;;  %v3336_v15 = vadd.f32 %v3316_v37, %v3124_v8  ;;  %v2921_v37 = vadd.f32 %v7400_v0, %v2680_v29  ;;  %v5598_v0 = vld [vmem:[#allocation12 + $0x48] sm:$0xff] }
 0x97f   : > { %v5606_v29 = vld [vmem:[#allocation13 + $0x8] sm:$0xff] }
 0x980   : > { %v3349_v23 = vmax.f32 %v3335_v48, 0.0  ;;  %v2922_v48 = vadd.f32 %v7380_v55, %v2709_v41  ;;  %v3133_v60 = vadd.f32 %v7402_v51, %v2921_v37  ;;  %v5602_v55 = vld [vmem:[#allocation12 + $0x68] sm:$0xff] }
 0x981   : > { %3572 = vmatpush.bf16.msra.mxu3 %v5602_v55  ;;  %v3631_v37 = vld [vmem:[%s6710_s1] sm:$0xff] }
 0x982   : > { %v3357_v19 = vadd.f32 %v3349_v23, %v3336_v15  ;;  %v5616_v55 = vld [vmem:[#allocation15 + $0x18] sm:$0xff] }
 0x985   : > { %v3289_v21 = vpop.f32.mrf.mxu3  ;;  %v3318_v44 = vpop.f32.mrf.mxu2 }
 0x986   : > { %v3337_v39 = vadd.f32 %v3289_v21, %v3125_v7  ;;  %v3338_v52 = vadd.f32 %v3318_v44, %v3126_v56 }
 0x988   : > { %v3350_v4 = vmax.f32 %v3337_v39, 0.0 }
 0x98a   : > { %v3358_v38 = vadd.f32 %v3350_v4, %v3338_v52 }
 0x98c   : > { %v3365_v6 = vpack.c.bf16 %v3358_v38, %v3357_v19 }
 0x98d   : > { %v3292_v13 = vpop.f32.mrf.mxu3  ;;  %v3321_v35 = vpop.f32.mrf.mxu2 }
 0x98e   : > { %v3339_v1 = vadd.f32 %v3292_v13, %v7378_v43  ;;  %3448 = vmatmul.bf16.gmra.mxu0 %v3365_v6  ;;  %v3340_v40 = vadd.f32 %v3321_v35, %v3128_v11  ;;  %v3130_v43 = vadd.f32 %v3111_v20, %v2918_v2 }
 0x990   : > { %v3351_v17 = vmax.f32 %v3339_v1, 0.0 }
 0x992   : > { %v3359_v34 = vadd.f32 %v3351_v17, %v3340_v40  ;;  %v7458_v40 = vld [vmem:[%s7578_s15] ss:$0 sm:$0xff] }
 0x995   : > { %v3294_v16 = vpop.f32.mrf.mxu3  ;;  %v3323_v62 = vpop.f32.mrf.mxu2 }
 0x996   : > { %v3341_v59 = vadd.f32 %v3294_v16, %v3129_v32  ;;  %v3342_v3 = vadd.f32 %v3323_v62, %v3130_v43  ;;  %v5612_v16 = vld [vmem:[#allocation13 + $0x38] sm:$0xff]  ;;  %v5611_v43 = vld [vmem:[#allocation13 + $0x30] sm:$0xff] }
 0x997   : > { %3701 = vmatpush.bf16.msrb.mxu0 %v5612_v16 }
 0x998   : > { %v3352_v28 = vmax.f32 %v3341_v59, 0.0  ;;  %v5610_v59 = vld [vmem:[#allocation13 + $0x28] sm:$0xff] }
 0x99a   : > { %v3360_v10 = vadd.f32 %v3352_v28, %v3342_v3 }
 0x99b   : > { %3702 = vmatpush.bf16.msrb.mxu0 %v5611_v43 }
 0x99c   : > { %v3366_v18 = vpack.c.bf16 %v3360_v10, %v3359_v34  ;;  %v5609_v10 = vld [vmem:[#allocation13 + $0x20] sm:$0xff] }
 0x99d   : > { %v3297_v27 = vpop.f32.mrf.mxu3  ;;  %v3326_v47 = vpop.f32.mrf.mxu2 }
 0x99e   : > { %v3343_v9 = vadd.f32 %v3297_v27, %v7388_v33  ;;  %3453 = vmatmul.bf16.gmra.mxu0 %v3366_v18  ;;  %v3344_v5 = vadd.f32 %v3326_v47, %v7385_v63  ;;  %v3134_v33 = vadd.f32 %v7390_v30, %v2922_v48  ;;  %v5601_v63 = vld [vmem:[#allocation12 + $0x60] sm:$0xff]  ;;  %v5600_v30 = vld [vmem:[#allocation12 + $0x58] sm:$0xff] }
 0x99f   : > { %3573 = vmatpush.bf16.msra.mxu3 %v5601_v63  ;;  %3703 = vmatpush.bf16.msrb.mxu0 %v5610_v59  ;;  %v5628_v48 = vld [vmem:[#allocation16 + $0x38] sm:$0xff]  ;;  %v5630_v59 = vld [vmem:[#allocation19 + $0x8] sm:$0xff] }
 0x9a0   : > { %v3353_v14 = vmax.f32 %v3343_v9, 0.0  ;;  %v5607_v9 = vld [vmem:[#allocation13 + $0x10] sm:$0xff]  ;;  %v5624_v63 = vld [vmem:[#allocation16 + $0x18] sm:$0xff] }
 0x9a2   : > { %v3361_v8 = vadd.f32 %v3353_v14, %v3344_v5  ;;  %v5605_v5 = vld [vmem:[#allocation13] sm:$0xff] }
 0x9a3   : > { %3574 = vmatpush.bf16.msra.mxu3 %v5600_v30  ;;  %3704 = vmatpush.bf16.msrb.mxu0 %v5609_v10  ;;  %v5644_v10 = vld [vmem:[#allocation22 + $0x38] sm:$0xff] }
 0x9a5   : > { %v3299_v31 = vpop.f32.mrf.mxu3  ;;  %v3328_v23 = vpop.f32.mrf.mxu2 }
 0x9a6   : > { %v3345_v15 = vadd.f32 %v3299_v31, %v3133_v60  ;;  %v3346_v45 = vadd.f32 %v3328_v23, %v3134_v33  ;;  %v3632_v60 = vpack.c.bf16 %v3631_v37, %v3631_v37  ;;  %v5619_v31 = vld [vmem:[#allocation15 + $0x30] sm:$0xff] }
 0x9a7   : > { %v5627_v23 = vld [vmem:[#allocation16 + $0x30] sm:$0xff] }
 0x9a8   : > { %v3354_v26 = vmax.f32 %v3345_v15, 0.0  ;;  %v5618_v15 = vld [vmem:[#allocation15 + $0x28] sm:$0xff] }
 0x9aa   : > { %v3362_v46 = vadd.f32 %v3354_v26, %v3346_v45  ;;  %v5626_v26 = vld [vmem:[#allocation16 + $0x28] sm:$0xff] }
 0x9ac   : > { %v3367_v36 = vpack.c.bf16 %v3362_v46, %v3361_v8  ;;  %v5620_v8 = vld [vmem:[#allocation15 + $0x38] sm:$0xff]  ;;  %v5617_v46 = vld [vmem:[#allocation15 + $0x20] sm:$0xff] }
 0x9ae   : > { %3458 = vmatmul.bf16.gmra.mxu0 %v3367_v36  ;;  %3468 = vmatpush.bf16.msrb.mxu1 %v3367_v36  ;;  %v5625_v36 = vld [vmem:[#allocation16 + $0x20] sm:$0xff] }
 0x9b2   : > { %3469 = vmatpush.bf16.msrb.mxu1 %v3366_v18  ;;  %v5608_v18 = vld [vmem:[#allocation13 + $0x18] sm:$0xff] }
 0x9b3   : > { %3705 = vmatpush.bf16.msrb.mxu0 %v5608_v18  ;;  %v5643_v18 = vld [vmem:[#allocation22 + $0x30] sm:$0xff] }
 0x9b6   : > { %3470 = vmatpush.bf16.msrb.mxu1 %v3365_v6 }
 0x9b7   : > { %3706 = vmatpush.bf16.msrb.mxu0 %v5607_v9  ;;  %v5640_v9 = vld [vmem:[#allocation22 + $0x18] sm:$0xff] }
 0x9ba   : > { %3471 = vmatpush.bf16.msrb.mxu1 %v7413_v50 }
 0x9bb   : > { %3707 = vmatpush.bf16.msrb.mxu0 %v5606_v29  ;;  %v5639_v29 = vld [vmem:[#allocation22 + $0x10] sm:$0xff] }
 0x9bd   : > { %5191 = vmatmul.msk.bf16.vlgmr.msrb.gmra.mxu1 %vm1062_vm0, %v7238_v53  ;;  %v5599_v53 = vld [vmem:[#allocation12 + $0x50] sm:$0xff] }
 0x9be   : > { %3575 = vmatpush.bf16.msra.mxu3 %v5599_v53  ;;  %3798 = vmatpush.bf16.msra.mxu1 %v5628_v48 }
 0x9bf   : > { %3708 = vmatpush.bf16.msrb.mxu0 %v5605_v5 }
 0x9c2   : > { %3576 = vmatpush.bf16.msra.mxu3 %v5598_v0  ;;  %3709 = vmatmul.bf16.vlgmr.msrb.gmra.mxu0 %v3632_v60 }
 0x9c3   : > { %3799 = vmatpush.bf16.msra.mxu1 %v5627_v23  ;;  %4030 = vmatpush.bf16.msra.mxu0 %v5644_v10  ;;  %v5637_v23 = vld [vmem:[#allocation22] sm:$0xff] }
 0x9c7   : > { %3800 = vmatpush.bf16.msra.mxu1 %v5626_v26  ;;  %4031 = vmatpush.bf16.msra.mxu0 %v5643_v18 }
 0x9cb   : > { %3801 = vmatpush.bf16.msra.mxu1 %v5625_v36 }
 0x9cd   : > { %5192 = vmatmul.msk.bf16.gmra.mxu1 %vm1062_vm0, %v7243_v12  ;;  %v5597_v12 = vld [vmem:[#allocation12 + $0x40] sm:$0xff] }
 0x9ce   : > { %3577 = vmatpush.bf16.msra.mxu3 %v5597_v12 }
 0x9cf   : > { %3802 = vmatpush.bf16.msra.mxu1 %v5624_v63 }
 0x9d2   : > { %3859 = vmatpush.bf16.msrb.mxu3 %v5620_v8 }
 0x9d6   : > { %3860 = vmatpush.bf16.msrb.mxu3 %v5619_v31  ;;  %v5638_v31 = vld [vmem:[#allocation22 + $0x8] sm:$0xff] }
 0x9da   : > { %3861 = vmatpush.bf16.msrb.mxu3 %v5618_v15 }
 0x9dd   : > { %5193 = vmatmul.msk.bf16.gmra.mxu1 %vm1062_vm0, %v7248_v61 }
 0x9de   : > { %3862 = vmatpush.bf16.msrb.mxu3 %v5617_v46 }
 0x9e2   : > { %3863 = vmatpush.bf16.msrb.mxu3 %v5616_v55 }
 0x9ed   : > { %5194 = vmatmul.msk.bf16.gmra.mxu1 %vm1062_vm0, %v7253_v58 }
 0x9fb   : > { %v3444_v54 = vpop.f32.mrf.mxu0 }
 0x9fc   : > { %v3445_v24 = vadd.f32 %v7458_v40, %v3444_v54 }
 0xa03   : > { %v7453_v17 = vpop.f32.mrf.mxu0 }
 0xa0b   : > { %v7463_v20 = vpop.f32.mrf.mxu0 }
 0xa13   : > { %v3451_v32 = vpop.f32.mrf.mxu0 }
 0xa1b   : > { %v3454_v28 = vpop.f32.mrf.mxu0 }
 0xa23   : > { %v3456_v27 = vpop.f32.mrf.mxu0 }
 0xa24   : > { %v3457_v0 = vadd.f32 %v7458_v40, %v3456_v27  ;;  %v5642_v27 = vld [vmem:[#allocation22 + $0x28] sm:$0xff] }
 0xa25   : > { %4032 = vmatpush.bf16.msra.mxu0 %v5642_v27 }
 0xa2b   : > { %v3459_v41 = vpop.f32.mrf.mxu0 }
 0xa2c   : > { %v3460_v30 = vadd.f32 %v7458_v40, %v3459_v41 }
 0xa33   : > { %v3461_v45 = vpop.f32.mrf.mxu0 }
 0xa34   : > { %v3462_v49 = vadd.f32 %v7458_v40, %v3461_v45 }
 0xa3a   : > { %v3473_v61 = vpop.f32.mrf.mxu1 }
 0xa3b   : > { %v3493_v50 = vmul.f32 0.5, %v3473_v61  ;;  %v5615_v61 = vld [vmem:[#allocation15 + $0x10] sm:$0xff] }
 0xa3c   : > { %3864 = vmatpush.bf16.msrb.mxu3 %v5615_v61 }
 0xa42   : > { %v3475_v51 = vpop.f32.mrf.mxu1 }
 0xa43   : > { %v3494_v58 = vmul.f32 0.5, %v3475_v51  ;;  %v3455_v51 = vadd.f32 %v7458_v40, %v3454_v28 }
 0xa45   : > { %v3501_v19 = vpack.c.bf16 %v3494_v58, %v3493_v50  ;;  %v3452_v58 = vadd.f32 %v7458_v40, %v3451_v32 }
 0xa47   : > { %3578 = vmatmul.bf16.vlgmr.msra.gmra.mxu3 %v3501_v19 }
 0xa4a   : > { %v3478_v25 = vpop.f32.mrf.mxu1 }
 0xa4b   : > { %v3495_v21 = vmul.f32 0.5, %v3478_v25  ;;  %v5614_v25 = vld [vmem:[#allocation15 + $0x8] sm:$0xff] }
 0xa4c   : > { %3865 = vmatpush.bf16.msrb.mxu3 %v5614_v25 }
 0xa52   : > { %v3480_v7 = vpop.f32.mrf.mxu1 }
 0xa53   : > { %v3496_v44 = vmul.f32 0.5, %v3480_v7  ;;  %v3450_v7 = vadd.f32 %v7458_v40, %v7463_v20  ;;  %v5632_v20 = vld [vmem:[#allocation19 + $0x18] sm:$0xff] }
 0xa55   : > { %v3502_v56 = vpack.c.bf16 %v3496_v44, %v3495_v21  ;;  %v3447_v44 = vadd.f32 %v7458_v40, %v7453_v17  ;;  %v5636_v40 = vld [vmem:[#allocation19 + $0x38] sm:$0xff] }
 0xa57   : > { %3583 = vmatmul.bf16.gmra.mxu3 %v3502_v56 }
 0xa5a   : > { %v3483_v39 = vpop.f32.mrf.mxu1 }
 0xa5b   : > { %v3497_v52 = vmul.f32 0.5, %v3483_v39 }
 0xa62   : > { %v3485_v4 = vpop.f32.mrf.mxu1 }
 0xa63   : > { %v3498_v22 = vmul.f32 0.5, %v3485_v4  ;;  %v3607_v4 = vld [vmem:[%s6708_s10] sm:$0xff] }
 0xa65   : > { %v3503_v38 = vpack.c.bf16 %v3498_v22, %v3497_v52  ;;  %v5623_v52 = vld [vmem:[#allocation16 + $0x10] sm:$0xff]  ;;  %v5622_v22 = vld [vmem:[#allocation16 + $0x8] sm:$0xff] }
 0xa66   : > { %3803 = vmatpush.bf16.msra.mxu1 %v5623_v52 }
 0xa67   : > { %3588 = vmatmul.bf16.gmra.mxu3 %v3503_v38  ;;  %v5825_v38 = vld [vmem:[%s7579_s6] ss:$0 sm:$0xff] }
 0xa6a   : > { %v3488_v6 = vpop.f32.mrf.mxu1  ;;  %3804 = vmatpush.bf16.msra.mxu1 %v5622_v22 }
 0xa6b   : > { %v3499_v35 = vmul.f32 0.5, %v3488_v6  ;;  %v3710_v6 = vpop.f32.mrf.mxu0 }
 0xa72   : > { %v3490_v13 = vpop.f32.mrf.mxu1 }
 0xa73   : > { %v3500_v11 = vmul.f32 0.5, %v3490_v13  ;;  %v3711_v13 = vadd.f32 %v5825_v38, %v3710_v6  ;;  %v3712_v17 = vpop.f32.mrf.mxu0 }
 0xa75   : > { %v3504_v1 = vpack.c.bf16 %v3500_v11, %v3499_v35  ;;  %v5621_v35 = vld [vmem:[#allocation16] sm:$0xff]  ;;  %v3732_v11 = vmax.f32 %v3711_v13, 0.0 }
 0xa76   : > { %3805 = vmatpush.bf16.msra.mxu1 %v5621_v35 }
 0xa77   : > { %3593 = vmatmul.bf16.gmra.mxu3 %v3504_v1  ;;  %v5613_v1 = vld [vmem:[#allocation15] sm:$0xff]  ;;  %v3733_v54 = vpack.c.bf16 %v3732_v11, %v3732_v11 }
 0xa78   : > { %3866 = vmatpush.bf16.msrb.mxu3 %v5613_v1 }
 0xa79   : > { %3806 = vmatmul.bf16.vlgmr.msra.gmra.mxu1 %v3733_v54 }
 0xaca   : > { %v3579_v57 = vpop.f32.mrf.mxu3 }
 0xacb   : > { %v7461_v34 = vadd.f32 %v3579_v57, %v3445_v24  ;;  %v5635_v24 = vld [vmem:[#allocation19 + $0x30] sm:$0xff]  ;;  %v5634_v57 = vld [vmem:[#allocation19 + $0x28] sm:$0xff] }
 0xad2   : > { %v7465_v2 = vpop.f32.mrf.mxu3 }
 0xad3   : > { %v3600_v39 = vadd.f32 %v7465_v2, %v3447_v44  ;;  %v5631_v2 = vld [vmem:[#allocation19 + $0x10] sm:$0xff] }
 0xada   : > { %v7467_v62 = vpop.f32.mrf.mxu3 }
 0xadb   : > { %v3601_v56 = vadd.f32 %v7467_v62, %v3450_v7 }
 0xae2   : > { %v3586_v3 = vpop.f32.mrf.mxu3 }
 0xae3   : > { %v3602_v21 = vadd.f32 %v3586_v3, %v3452_v58  ;;  %v5629_v3 = vld [vmem:[#allocation19] sm:$0xff] }
 0xaea   : > { %v3589_v47 = vpop.f32.mrf.mxu3 }
 0xaeb   : > { %v3603_v19 = vadd.f32 %v3589_v47, %v3455_v51  ;;  %v5641_v47 = vld [vmem:[#allocation22 + $0x20] sm:$0xff] }
 0xaec   : > { %4033 = vmatpush.bf16.msra.mxu0 %v5641_v47 }
 0xaf0   : > { %4034 = vmatpush.bf16.msra.mxu0 %v5640_v9 }
 0xaf2   : > { %v3591_v14 = vpop.f32.mrf.mxu3 }
 0xaf3   : > { %v3604_v50 = vadd.f32 %v3591_v14, %v3457_v0  ;;  %v5826_v14 = vld [vmem:[#allocation18] ss:$0 sm:$0xff] }
 0xaf4   : > { %4035 = vmatpush.bf16.msra.mxu0 %v5639_v29 }
 0xaf6   : > { %v3807_v43 = vpop.f32.mrf.mxu1 }
 0xaf8   : > { %4036 = vmatpush.bf16.msra.mxu0 %v5638_v31 }
 0xafa   : > { %v3594_v33 = vpop.f32.mrf.mxu3 }
 0xafb   : > { %v3605_v12 = vadd.f32 %v3594_v33, %v3460_v30  ;;  %v5827_v33 = vld [vmem:[#allocation21] ss:$0 sm:$0xff] }
 0xafc   : > { %4037 = vmatpush.bf16.msra.mxu0 %v5637_v23 }
 0xafe   : > { %v3809_v28 = vpop.f32.mrf.mxu1 }
 0xb02   : > { %v3596_v42 = vpop.f32.mrf.mxu3 }
 0xb03   : > { %v3606_v53 = vadd.f32 %v3596_v42, %v3462_v49  ;;  %v5828_v49 = vld [vmem:[#allocation24] ss:$0 sm:$0xff] }
 0xb05   : > { %3619 = vmatpush.msrb.mxu2 %v3606_v53 }
 0xb07   : > { %3620 = vmatpush.msrb.mxu2 %v3605_v12 }
 0xb09   : > { %3621 = vmatpush.msrb.mxu2 %v3604_v50 }
 0xb0b   : > { %3622 = vmatpush.msrb.mxu2 %v3603_v19 }
 0xb0d   : > { %3623 = vmatpush.msrb.mxu2 %v3602_v21 }
 0xb0f   : > { %3624 = vmatpush.msrb.mxu2 %v3601_v56 }
 0xb11   : > { %3625 = vmatpush.msrb.mxu2 %v3600_v39 }
 0xb13   : > { %3626 = vmatpush.msrb.mxu2 %v7461_v34  ;;  %v5633_v34 = vld [vmem:[#allocation19 + $0x20] sm:$0xff] }
 0xb14   : > { %5227 = vmatmul.msk.f32.vlgmr.msrb.gmra.mxu2 %vm1062_vm0, %v3607_v4 }
 0xb15   : > { %3947 = vmatpush.bf16.msra.mxu2 %v5636_v40 }
 0xb19   : > { %3948 = vmatpush.bf16.msra.mxu2 %v5635_v24 }
 0xb1d   : > { %3949 = vmatpush.bf16.msra.mxu2 %v5634_v57 }
 0xb21   : > { %3950 = vmatpush.bf16.msra.mxu2 %v5633_v34 }
 0xb25   : > { %3951 = vmatpush.bf16.msra.mxu2 %v5632_v20 }
 0xb29   : > { %3952 = vmatpush.bf16.msra.mxu2 %v5631_v2 }
 0xb2d   : > { %3953 = vmatpush.bf16.msra.mxu2 %v5630_v59 }
 0xb31   : > { %3954 = vmatpush.bf16.msra.mxu2 %v5629_v3 }
 0xb97   : > { %v3628_v32 = vpop.f32.mrf.mxu2 }
 0xb98   : > { %v3714_v16 = vmax.f32 %v3628_v32, 0.0 }
 0xb9a   : > { %v3715_v62 = vpack.c.bf16 %v3714_v16, %v3714_v16 }
 0xb9c   : > { %3867 = vmatmul.bf16.vlgmr.msrb.gmra.mxu3 %v3715_v62 }
 0xc1f   : > { %v3868_v5 = vpop.f32.mrf.mxu3 }
 0xc20   : > { %v3869_v41 = vadd.f32 %v3868_v5, %v3807_v43 }
 0xc22   : > { %v3876_v37 = vadd.f32 %v5826_v14, %v3869_v41 }
 0xc24   : > { %v3877_v8 = vmax.f32 %v3876_v37, 0.0 }
 0xc26   : > { %v3878_v48 = vpack.c.bf16 %v3877_v8, %v3877_v8 }
 0xc27   : > { %v3870_v60 = vpop.f32.mrf.mxu3 }
 0xc28   : > { %3955 = vmatmul.bf16.vlgmr.msra.gmra.mxu2 %v3878_v48 }
 0xcab   : > { %v3956_v15 = vpop.f32.mrf.mxu2 }
 0xcac   : > { %v3957_v26 = vadd.f32 %v5827_v33, %v3956_v15 }
 0xcae   : > { %v3960_v45 = vmax.f32 %v3957_v26, 0.0 }
 0xcb0   : > { %v3961_v46 = vpack.c.bf16 %v3960_v45, %v3960_v45 }
 0xcb2   : > { %4038 = vmatmul.bf16.vlgmr.msra.gmra.mxu0 %v3961_v46 }
 0xcb3   : > { %v3958_v36 = vpop.f32.mrf.mxu2 }
 0xd2f   : > { %v4039_v42 = vpop.f32.mrf.mxu0 }
 0xd30   : > { %v4040_v55 = vadd.f32 %v5828_v49, %v4039_v42 }
 0xd32   : > { %v5388_v63 = vmul.f32 -1.442695, %v4040_v55 }
 0xd34   : > { %5829 = vpow2.f32 %v5388_v63 }
 0xd37   : > { %v4041_v30 = vpop.f32.mrf.mxu0 }
 0xd3a   : > { %v5830_v53 = vpop.eup %5829 }
 0xd3b   : > { %v4046_v0 = vadd.f32 1.0, %v5830_v53 }
 0xd3d   : > { %5831 = vrcp.f32 %v4046_v0  ;;  %v4058_v50 = vand.u32 2147483648, %v4046_v0  ;;  %v4056_v19 = vand.u32 2147483647, %v4046_v0  ;;  %vm4052_vm2 = vweird.f32 %v4046_v0 }
 0xd3f   : > { %v4059_v7 = vor.u32 1.1754944e-38, %v4058_v50  ;;  %vm4057_vm4 = vcmp.eq.f32.partialorder %v4056_v19, 8.507059e+37 }
 0xd43   : > { %v5832_v12 = vpop.eup %5831 }
 0xd44   : > { %v4048_v61 = vmul.f32 %v5832_v12, %v4046_v0  ;;  %vm4053_vm1 = vweird.f32 %v5832_v12 }
 0xd45   : > { %vm4054_vm3 = vmor %vm4052_vm2, %vm4053_vm1 }
 0xd46   : > { %v4049_v51 = vsub.f32 1.0, %v4048_v61 }
 0xd48   : > { %v4050_v58 = vmul.f32 %v5832_v12, %v4049_v51 }
 0xd4a   : > { %v4051_v25 = vadd.f32 %v5832_v12, %v4050_v58 }
 0xd4c   : > { %v4055_v21 = vsel %vm4054_vm3, %v5832_v12, %v4051_v25 }
 0xd4d   : > { %v4060_v44 = vsel %vm4057_vm4, %v4059_v7, %v4055_v21 }
 0xd4e   : > { %4062 = vst [vmem:[%s860_s21] sm:$0xff] %v4060_v44 }
 0xd4f PF: > { %p38_p3 = scmp.ge.s32.totalorder %s6550_s5, 4   ;;  %s7581_s24 = smov %s6349_s25 }
 0xd50   : > { %s7582_s25 = smov %s6353_s26  ;;  %s7583_s26 = smov %s6562_s29 }
 0xd51   : > { %s7584_s27 = smov %s6550_s5  ;;  %40 = sbr.rel (!%p38_p3) target bundleno = 30 (0x1e), region = 223 }
 0xd56   :  { %4082 = vsyncpa [#allocation3], 1 }
 0xd57   :  { %4084 = vsyncpa [#allocation3 + $0x1], 1 }
 0xd58   :  { %4085 = vsyncpa [#allocation5], 1 }
 0xd59   :  { %4087 = vsyncpa [#allocation5 + $0x1], 1 }
 0xd5a   :  { %4088 = vsyncpa [#allocation8], 1 }
 0xd5b   :  { %4090 = vsyncpa [#allocation8 + $0x1], 1 }
 0xd5c   :  { %4091 = vsyncpa [#allocation11], 1 }
 0xd5d   :  { %4092 = vsyncpa [#allocation14], 1 }
 0xd5e   :  { %4093 = vsyncpa [#allocation17], 1 }
 0xd5f   :  { %4094 = vsyncpa [#allocation20], 1 }
 0xd60   :  { %4095 = vsyncpa [#allocation23], 1 }

</bundles_post_ra>
